<compile_context>
chip_gen: v6e
topology: v6e:2x2x1
jax: 0.10.0
libtpu: 0.0.40
codegen_flags: <defaults>
</compile_context>

<pallas_src>
import math

import jax
import jax.numpy as jnp
from jax.experimental import pallas as pl
from jax.experimental.pallas import tpu as pltpu

NEG_SLOPE = 0.01  # nn.LeakyReLU() default negative_slope


def _leaky_relu(h):
    return jnp.where(h > 0, h, NEG_SLOPE * h)


def _round_up(x, m):
    return ((x + m - 1) // m) * m


def _cdiv(a, b):
    return -(-a // b)


# --------------------------------------------------------------------------- #
# Kernel
# --------------------------------------------------------------------------- #
def mlp_head_kernel(x_ref, w1_ref, b1_ref, w2_ref, b2_ref,
                    w3_ref, b3_ref, w4_ref, b4_ref, o_ref):
    """Fused 4-layer MLP head over one batch tile.

    f32 feats are cast to bf16 in-kernel; each dot accumulates in f32 on the
    MXU, LeakyReLU runs on the f32 accumulator, and the result is cast back to
    bf16 before feeding the next matmul.  The final (tb, 128) block is stored
    as bf16 (lane-dense, unmasked vst).
    """
    x = x_ref[...].astype(jnp.bfloat16)
    h = jnp.dot(x, w1_ref[...], preferred_element_type=jnp.float32) + b1_ref[...]
    h = _leaky_relu(h).astype(jnp.bfloat16)
    h = jnp.dot(h, w2_ref[...], preferred_element_type=jnp.float32) + b2_ref[...]
    h = _leaky_relu(h).astype(jnp.bfloat16)
    h = jnp.dot(h, w3_ref[...], preferred_element_type=jnp.float32) + b3_ref[...]
    h = _leaky_relu(h).astype(jnp.bfloat16)
    h = jnp.dot(h, w4_ref[...], preferred_element_type=jnp.float32) + b4_ref[...]
    o_ref[...] = h.astype(o_ref.dtype)


# --------------------------------------------------------------------------- #
# Wrapper
# --------------------------------------------------------------------------- #
def prepare_params(params):
    """One-time layout plumbing: cast weights to bf16, biases to f32, and
    zero-pad the final layer's 10 output columns to 128 lanes.  Hoisted out of
    the per-call path so repeated inference doesn't redo this HBM traffic."""
    (w1, b1), (w2, b2), (w3, b3), (w4, b4) = params
    out_dim = w4.shape[1]
    np_out = _round_up(out_dim, 128)   # 10 -> 128 lane-dense output

    w4p = jnp.zeros((w4.shape[0], np_out), jnp.bfloat16)
    w4p = w4p.at[:, :out_dim].set(w4.astype(jnp.bfloat16))
    b4p = jnp.zeros((1, np_out), jnp.float32)
    b4p = b4p.at[:, :out_dim].set(b4.astype(jnp.float32).reshape(1, -1))

    prepared = (
        (w1.astype(jnp.bfloat16), b1.astype(jnp.float32).reshape(1, -1)),
        (w2.astype(jnp.bfloat16), b2.astype(jnp.float32).reshape(1, -1)),
        (w3.astype(jnp.bfloat16), b3.astype(jnp.float32).reshape(1, -1)),
        (w4p, b4p),
    )
    return prepared, out_dim


def hidden_layer_head(feats, prepared_params, out_dim, *, tb=512):
    """Runs the fused MLP head over batch tiles.

    `prepared_params` comes from prepare_params().  `tb` is the desired batch
    tile (default 512); it is balanced so every grid step gets a near-equal,
    8-aligned block, and the grid is forced to >= 2 steps for Bp >= 256 so both
    v7x TensorCores get work.
    """
    B, F = feats.shape
    (w1, b1), (w2, b2), (w3, b3), (w4, b4) = prepared_params
    np_out = w4.shape[1]

    feats = feats.astype(jnp.float32)
    Bp = _round_up(B, 8)
    if Bp != B:
        # Rare path: sublane-align the batch.  When B is already a multiple of
        # 8 no activation copy happens at all (feats are consumed directly).
        feats = jnp.zeros((Bp, F), feats.dtype).at[:B, :].set(feats)

    # ---- batch-tile selection -------------------------------------------- #
    tb_desired = max(8, min(_round_up(tb, 8), Bp))
    steps = _cdiv(Bp, tb_desired)
    if Bp >= 256 and steps < 2:
        steps = 2          # v7x: >= 2 grid steps so the 2nd TensorCore is used
    tb = min(Bp, _round_up(_cdiv(Bp, steps), 8))   # balanced, 8-aligned tiles
    grid = _cdiv(Bp, tb)

    def const_spec(shape, pipeline_mode):
        if pipeline_mode is None:
            return pl.BlockSpec(shape, lambda i: (0, 0))
        # Weights never change across grid steps -> single-buffer them.
        return pl.BlockSpec(shape, lambda i: (0, 0), pipeline_mode=pipeline_mode)

    def build_and_run(weight_pipeline_mode):
        in_specs = [
            # activations: tiled on batch, full (unpadded) 1000-wide last dim
            pl.BlockSpec((tb, F), lambda i: (i, 0)),
            const_spec(w1.shape, weight_pipeline_mode),
            const_spec(b1.shape, weight_pipeline_mode),
            const_spec(w2.shape, weight_pipeline_mode),
            const_spec(b2.shape, weight_pipeline_mode),
            const_spec(w3.shape, weight_pipeline_mode),
            const_spec(b3.shape, weight_pipeline_mode),
            const_spec(w4.shape, weight_pipeline_mode),
            const_spec(b4.shape, weight_pipeline_mode),
        ]
        out_spec = pl.BlockSpec((tb, np_out), lambda i: (i, 0))
        return pl.pallas_call(
            mlp_head_kernel,
            out_shape=jax.ShapeDtypeStruct((Bp, np_out), jnp.bfloat16),
            grid_spec=pltpu.PrefetchScalarGridSpec(
                num_scalar_prefetch=0,
                grid=(grid,),
                in_specs=in_specs,
                out_specs=out_spec,
            ),
            compiler_params=pltpu.CompilerParams(
                dimension_semantics=("parallel",),
                vmem_limit_bytes=32 * 1024 * 1024,   # v5e default is only 16 MiB
            ),
        )(feats, w1, b1, w2, b2, w3, b3, w4, b4)

    try:
        out = build_and_run(pl.Buffered(1))
    except Exception:
        # Fallback: default double-buffering (weights are only ~1.8 MiB bf16,
        # so this still fits comfortably in scoped VMEM).
        out = build_and_run(None)

    # drop batch / lane padding; cast the tiny (B, 10) slice back to f32
    return out[:B, :out_dim].astype(jnp.float32)


# --------------------------------------------------------------------------- #
# Init + reference
# --------------------------------------------------------------------------- #
def init_linear(key, fan_in, fan_out, dtype=jnp.float32):
    """Deterministic init matching torch.nn.Linear defaults:
    weight, bias ~ U(-1/sqrt(fan_in), 1/sqrt(fan_in)); stored [in, out]."""
    kw, kb = jax.random.split(key)
    bound = 1.0 / math.sqrt(fan_in)
    w = jax.random.uniform(kw, (fan_in, fan_out), dtype, -bound, bound)
    b = jax.random.uniform(kb, (1, fan_out), dtype, -bound, bound)
    return w, b


def reference_head(feats, params):
    """Plain-JAX reference mirroring the kernel's bf16/f32 mixed precision
    (including the final bf16 writeback round-trip)."""
    h = feats.astype(jnp.float32)
    n = len(params)
    for i, (w, b) in enumerate(params):
        h = jnp.dot(h.astype(jnp.bfloat16), w.astype(jnp.bfloat16),
                    preferred_element_type=jnp.float32)
        h = h + b.astype(jnp.float32).reshape(1, -1)
        if i < n - 1:
            h = _leaky_relu(h)
    return h.astype(jnp.bfloat16).astype(jnp.float32)


# --------------------------------------------------------------------------- #
if __name__ == "__main__":
    key = jax.random.PRNGKey(0)
    k_x, k1, k2, k3, k4 = jax.random.split(key, 5)

    B = 16            # small batch
    F = 1000          # ResNet50 classifier output width (premodel features)

    # stand-in for `self.premodel(x)` output features
    feats = jax.random.normal(k_x, (B, F), jnp.float32)

    params = (
        init_linear(k1, 1000, 512),
        init_linear(k2, 512, 512),
        init_linear(k3, 512, 256),
        init_linear(k4, 256, 10),
    )

    prepared, out_dim = prepare_params(params)

    out = hidden_layer_head(feats, prepared, out_dim, tb=512)
    out = jax.block_until_ready(out)

    ref = reference_head(feats, params)
    assert out.shape == (B, 10), out.shape
    assert jnp.allclose(out, ref, atol=1e-2, rtol=1e-2), "mismatch vs reference"

    print("KERNEL_OK")
</pallas_src>

<mosaic_0001>
module attributes {stable_mosaic.version = 11 : i64} {
  func.func @mlp_head_kernel(%arg0: i32, %arg1: memref<16x1000xf32, #tpu.memory_space<vmem>>, %arg2: memref<1000x512xbf16, #tpu.memory_space<vmem>>, %arg3: memref<1x512xf32, #tpu.memory_space<vmem>>, %arg4: memref<512x512xbf16, #tpu.memory_space<vmem>>, %arg5: memref<1x512xf32, #tpu.memory_space<vmem>>, %arg6: memref<512x256xbf16, #tpu.memory_space<vmem>>, %arg7: memref<1x256xf32, #tpu.memory_space<vmem>>, %arg8: memref<256x128xbf16, #tpu.memory_space<vmem>>, %arg9: memref<1x128xf32, #tpu.memory_space<vmem>>, %arg10: memref<16x128xbf16, #tpu.memory_space<vmem>>) attributes {dimension_semantics = [#tpu.dimension_semantics<parallel>], iteration_bounds = array<i64: 1>, scalar_prefetch = 0 : i64, scratch_operands = 0 : i64, tpu.core_type = #tpu.core_type<tc>, window_params = [{transform_indices = @transform_0, window_bounds = array<i64: 16, 1000>}, {pipeline_mode = #tpu.pipeline_mode<synchronous>, transform_indices = @transform_1, window_bounds = array<i64: 1000, 512>}, {pipeline_mode = #tpu.pipeline_mode<synchronous>, transform_indices = @transform_2, window_bounds = array<i64: 1, 512>}, {pipeline_mode = #tpu.pipeline_mode<synchronous>, transform_indices = @transform_3, window_bounds = array<i64: 512, 512>}, {pipeline_mode = #tpu.pipeline_mode<synchronous>, transform_indices = @transform_4, window_bounds = array<i64: 1, 512>}, {pipeline_mode = #tpu.pipeline_mode<synchronous>, transform_indices = @transform_5, window_bounds = array<i64: 512, 256>}, {pipeline_mode = #tpu.pipeline_mode<synchronous>, transform_indices = @transform_6, window_bounds = array<i64: 1, 256>}, {pipeline_mode = #tpu.pipeline_mode<synchronous>, transform_indices = @transform_7, window_bounds = array<i64: 256, 128>}, {pipeline_mode = #tpu.pipeline_mode<synchronous>, transform_indices = @transform_8, window_bounds = array<i64: 1, 128>}, {transform_indices = @transform_9, window_bounds = array<i64: 16, 128>}]} {
    %c0 = arith.constant 0 : index
    %c0_0 = arith.constant 0 : index
    %0 = vector.load %arg1[%c0, %c0_0] : memref<16x1000xf32, #tpu.memory_space<vmem>>, vector<16x1000xf32>
    %1 = arith.truncf %0 : vector<16x1000xf32> to vector<16x1000xbf16>
    %c0_1 = arith.constant 0 : index
    %c0_2 = arith.constant 0 : index
    %2 = vector.load %arg2[%c0_1, %c0_2] : memref<1000x512xbf16, #tpu.memory_space<vmem>>, vector<1000x512xbf16>
    %cst = arith.constant dense<0.000000e+00> : vector<16x512xf32>
    %3 = tpu.matmul %1, %2, %cst {dimension_numbers = #tpu.dot_dimension_numbers<[1], [0], [0], [1], [0, 0, 1, 1], [], []>} : vector<16x1000xbf16>, vector<1000x512xbf16>, vector<16x512xf32> -> vector<16x512xf32>
    %c0_3 = arith.constant 0 : index
    %c0_4 = arith.constant 0 : index
    %4 = vector.load %arg3[%c0_3, %c0_4] : memref<1x512xf32, #tpu.memory_space<vmem>>, vector<1x512xf32>
    %5 = vector.broadcast %4 : vector<1x512xf32> to vector<16x512xf32>
    %6 = arith.addf %3, %5 : vector<16x512xf32>
    %cst_5 = arith.constant 0.000000e+00 : f32
    %7 = vector.broadcast %cst_5 : f32 to vector<16x512xf32>
    %8 = arith.cmpf ogt, %6, %7 : vector<16x512xf32>
    %cst_6 = arith.constant 0.00999999977 : f32
    %9 = vector.broadcast %cst_6 : f32 to vector<16x512xf32>
    %10 = arith.mulf %9, %6 : vector<16x512xf32>
    %11 = arith.select %8, %6, %10 : vector<16x512xi1>, vector<16x512xf32>
    %12 = arith.truncf %11 : vector<16x512xf32> to vector<16x512xbf16>
    %c0_7 = arith.constant 0 : index
    %c0_8 = arith.constant 0 : index
    %13 = vector.load %arg4[%c0_7, %c0_8] : memref<512x512xbf16, #tpu.memory_space<vmem>>, vector<512x512xbf16>
    %cst_9 = arith.constant dense<0.000000e+00> : vector<16x512xf32>
    %14 = tpu.matmul %12, %13, %cst_9 {dimension_numbers = #tpu.dot_dimension_numbers<[1], [0], [0], [1], [0, 0, 1, 1], [], []>} : vector<16x512xbf16>, vector<512x512xbf16>, vector<16x512xf32> -> vector<16x512xf32>
    %c0_10 = arith.constant 0 : index
    %c0_11 = arith.constant 0 : index
    %15 = vector.load %arg5[%c0_10, %c0_11] : memref<1x512xf32, #tpu.memory_space<vmem>>, vector<1x512xf32>
    %16 = vector.broadcast %15 : vector<1x512xf32> to vector<16x512xf32>
    %17 = arith.addf %14, %16 : vector<16x512xf32>
    %cst_12 = arith.constant 0.000000e+00 : f32
    %18 = vector.broadcast %cst_12 : f32 to vector<16x512xf32>
    %19 = arith.cmpf ogt, %17, %18 : vector<16x512xf32>
    %cst_13 = arith.constant 0.00999999977 : f32
    %20 = vector.broadcast %cst_13 : f32 to vector<16x512xf32>
    %21 = arith.mulf %20, %17 : vector<16x512xf32>
    %22 = arith.select %19, %17, %21 : vector<16x512xi1>, vector<16x512xf32>
    %23 = arith.truncf %22 : vector<16x512xf32> to vector<16x512xbf16>
    %c0_14 = arith.constant 0 : index
    %c0_15 = arith.constant 0 : index
    %24 = vector.load %arg6[%c0_14, %c0_15] : memref<512x256xbf16, #tpu.memory_space<vmem>>, vector<512x256xbf16>
    %cst_16 = arith.constant dense<0.000000e+00> : vector<16x256xf32>
    %25 = tpu.matmul %23, %24, %cst_16 {dimension_numbers = #tpu.dot_dimension_numbers<[1], [0], [0], [1], [0, 0, 1, 1], [], []>} : vector<16x512xbf16>, vector<512x256xbf16>, vector<16x256xf32> -> vector<16x256xf32>
    %c0_17 = arith.constant 0 : index
    %c0_18 = arith.constant 0 : index
    %26 = vector.load %arg7[%c0_17, %c0_18] : memref<1x256xf32, #tpu.memory_space<vmem>>, vector<1x256xf32>
    %27 = vector.broadcast %26 : vector<1x256xf32> to vector<16x256xf32>
    %28 = arith.addf %25, %27 : vector<16x256xf32>
    %cst_19 = arith.constant 0.000000e+00 : f32
    %29 = vector.broadcast %cst_19 : f32 to vector<16x256xf32>
    %30 = arith.cmpf ogt, %28, %29 : vector<16x256xf32>
    %cst_20 = arith.constant 0.00999999977 : f32
    %31 = vector.broadcast %cst_20 : f32 to vector<16x256xf32>
    %32 = arith.mulf %31, %28 : vector<16x256xf32>
    %33 = arith.select %30, %28, %32 : vector<16x256xi1>, vector<16x256xf32>
    %34 = arith.truncf %33 : vector<16x256xf32> to vector<16x256xbf16>
    %c0_21 = arith.constant 0 : index
    %c0_22 = arith.constant 0 : index
    %35 = vector.load %arg8[%c0_21, %c0_22] : memref<256x128xbf16, #tpu.memory_space<vmem>>, vector<256x128xbf16>
    %cst_23 = arith.constant dense<0.000000e+00> : vector<16x128xf32>
    %36 = tpu.matmul %34, %35, %cst_23 {dimension_numbers = #tpu.dot_dimension_numbers<[1], [0], [0], [1], [0, 0, 1, 1], [], []>} : vector<16x256xbf16>, vector<256x128xbf16>, vector<16x128xf32> -> vector<16x128xf32>
    %c0_24 = arith.constant 0 : index
    %c0_25 = arith.constant 0 : index
    %37 = vector.load %arg9[%c0_24, %c0_25] : memref<1x128xf32, #tpu.memory_space<vmem>>, vector<1x128xf32>
    %38 = vector.broadcast %37 : vector<1x128xf32> to vector<16x128xf32>
    %39 = arith.addf %36, %38 : vector<16x128xf32>
    %40 = arith.truncf %39 : vector<16x128xf32> to vector<16x128xbf16>
    %c0_26 = arith.constant 0 : index
    %c0_27 = arith.constant 0 : index
    %41 = vector.load %arg10[%c0_26, %c0_27] : memref<16x128xbf16, #tpu.memory_space<vmem>>, vector<16x128xbf16>
    tpu.vector_store %arg10[%c0_26, %c0_27], %40 {strides = array<i32>} : memref<16x128xbf16, #tpu.memory_space<vmem>>, vector<16x128xbf16>,
    return
  }
  func.func @transform_0(%arg0: i32) -> (i32, i32) {
    %c0_i32 = arith.constant 0 : i32
    %c0_i32_0 = arith.constant 0 : i32
    return %arg0, %c0_i32 : i32, i32
  }
  func.func @transform_1(%arg0: i32) -> (i32, i32) {
    %c0_i32 = arith.constant 0 : i32
    %c0_i32_0 = arith.constant 0 : i32
    %c0_i32_1 = arith.constant 0 : i32
    return %c0_i32, %c0_i32_0 : i32, i32
  }
  func.func @transform_2(%arg0: i32) -> (i32, i32) {
    %c0_i32 = arith.constant 0 : i32
    %c0_i32_0 = arith.constant 0 : i32
    %c0_i32_1 = arith.constant 0 : i32
    return %c0_i32, %c0_i32_0 : i32, i32
  }
  func.func @transform_3(%arg0: i32) -> (i32, i32) {
    %c0_i32 = arith.constant 0 : i32
    %c0_i32_0 = arith.constant 0 : i32
    %c0_i32_1 = arith.constant 0 : i32
    return %c0_i32, %c0_i32_0 : i32, i32
  }
  func.func @transform_4(%arg0: i32) -> (i32, i32) {
    %c0_i32 = arith.constant 0 : i32
    %c0_i32_0 = arith.constant 0 : i32
    %c0_i32_1 = arith.constant 0 : i32
    return %c0_i32, %c0_i32_0 : i32, i32
  }
  func.func @transform_5(%arg0: i32) -> (i32, i32) {
    %c0_i32 = arith.constant 0 : i32
    %c0_i32_0 = arith.constant 0 : i32
    %c0_i32_1 = arith.constant 0 : i32
    return %c0_i32, %c0_i32_0 : i32, i32
  }
  func.func @transform_6(%arg0: i32) -> (i32, i32) {
    %c0_i32 = arith.constant 0 : i32
    %c0_i32_0 = arith.constant 0 : i32
    %c0_i32_1 = arith.constant 0 : i32
    return %c0_i32, %c0_i32_0 : i32, i32
  }
  func.func @transform_7(%arg0: i32) -> (i32, i32) {
    %c0_i32 = arith.constant 0 : i32
    %c0_i32_0 = arith.constant 0 : i32
    %c0_i32_1 = arith.constant 0 : i32
    return %c0_i32, %c0_i32_0 : i32, i32
  }
  func.func @transform_8(%arg0: i32) -> (i32, i32) {
    %c0_i32 = arith.constant 0 : i32
    %c0_i32_0 = arith.constant 0 : i32
    %c0_i32_1 = arith.constant 0 : i32
    return %c0_i32, %c0_i32_0 : i32, i32
  }
  func.func @transform_9(%arg0: i32) -> (i32, i32) {
    %c0_i32 = arith.constant 0 : i32
    %c0_i32_0 = arith.constant 0 : i32
    return %arg0, %c0_i32 : i32, i32
  }
}

module attributes {stable_mosaic.version = 11 : i64} {
  func.func @mlp_head_kernel(%arg0: i32, %arg1: memref<16x1000xf32, #tpu.memory_space<vmem>>, %arg2: memref<1000x512xbf16, #tpu.memory_space<vmem>>, %arg3: memref<1x512xf32, #tpu.memory_space<vmem>>, %arg4: memref<512x512xbf16, #tpu.memory_space<vmem>>, %arg5: memref<1x512xf32, #tpu.memory_space<vmem>>, %arg6: memref<512x256xbf16, #tpu.memory_space<vmem>>, %arg7: memref<1x256xf32, #tpu.memory_space<vmem>>, %arg8: memref<256x128xbf16, #tpu.memory_space<vmem>>, %arg9: memref<1x128xf32, #tpu.memory_space<vmem>>, %arg10: memref<16x128xbf16, #tpu.memory_space<vmem>>) attributes {dimension_semantics = [#tpu.dimension_semantics<parallel>], iteration_bounds = array<i64: 1>, scalar_prefetch = 0 : i64, scratch_operands = 0 : i64, tpu.core_type = #tpu.core_type<tc>, window_params = [{transform_indices = @transform_0, window_bounds = array<i64: 16, 1000>}, {pipeline_mode = #tpu.pipeline_mode<synchronous>, transform_indices = @transform_1, window_bounds = array<i64: 1000, 512>}, {pipeline_mode = #tpu.pipeline_mode<synchronous>, transform_indices = @transform_2, window_bounds = array<i64: 1, 512>}, {pipeline_mode = #tpu.pipeline_mode<synchronous>, transform_indices = @transform_3, window_bounds = array<i64: 512, 512>}, {pipeline_mode = #tpu.pipeline_mode<synchronous>, transform_indices = @transform_4, window_bounds = array<i64: 1, 512>}, {pipeline_mode = #tpu.pipeline_mode<synchronous>, transform_indices = @transform_5, window_bounds = array<i64: 512, 256>}, {pipeline_mode = #tpu.pipeline_mode<synchronous>, transform_indices = @transform_6, window_bounds = array<i64: 1, 256>}, {pipeline_mode = #tpu.pipeline_mode<synchronous>, transform_indices = @transform_7, window_bounds = array<i64: 256, 128>}, {pipeline_mode = #tpu.pipeline_mode<synchronous>, transform_indices = @transform_8, window_bounds = array<i64: 1, 128>}, {transform_indices = @transform_9, window_bounds = array<i64: 16, 128>}]} {
    %c0 = arith.constant 0 : index
    %c0_0 = arith.constant 0 : index
    %0 = vector.load %arg1[%c0, %c0_0] : memref<16x1000xf32, #tpu.memory_space<vmem>>, vector<16x1000xf32>
    %1 = arith.truncf %0 : vector<16x1000xf32> to vector<16x1000xbf16>
    %c0_1 = arith.constant 0 : index
    %c0_2 = arith.constant 0 : index
    %2 = vector.load %arg2[%c0_1, %c0_2] : memref<1000x512xbf16, #tpu.memory_space<vmem>>, vector<1000x512xbf16>
    %cst = arith.constant dense<0.000000e+00> : vector<16x512xf32>
    %3 = tpu.matmul %1, %2, %cst {dimension_numbers = #tpu.dot_dimension_numbers<[1], [0], [0], [1], [0, 0, 1, 1], [], []>} : vector<16x1000xbf16>, vector<1000x512xbf16>, vector<16x512xf32> -> vector<16x512xf32>
    %c0_3 = arith.constant 0 : index
    %c0_4 = arith.constant 0 : index
    %4 = vector.load %arg3[%c0_3, %c0_4] : memref<1x512xf32, #tpu.memory_space<vmem>>, vector<1x512xf32>
    %5 = vector.broadcast %4 : vector<1x512xf32> to vector<16x512xf32>
    %6 = arith.addf %3, %5 : vector<16x512xf32>
    %cst_5 = arith.constant 0.000000e+00 : f32
    %7 = vector.broadcast %cst_5 : f32 to vector<16x512xf32>
    %8 = arith.cmpf ogt, %6, %7 : vector<16x512xf32>
    %cst_6 = arith.constant 0.00999999977 : f32
    %9 = vector.broadcast %cst_6 : f32 to vector<16x512xf32>
    %10 = arith.mulf %9, %6 : vector<16x512xf32>
    %11 = arith.select %8, %6, %10 : vector<16x512xi1>, vector<16x512xf32>
    %12 = arith.truncf %11 : vector<16x512xf32> to vector<16x512xbf16>
    %c0_7 = arith.constant 0 : index
    %c0_8 = arith.constant 0 : index
    %13 = vector.load %arg4[%c0_7, %c0_8] : memref<512x512xbf16, #tpu.memory_space<vmem>>, vector<512x512xbf16>
    %cst_9 = arith.constant dense<0.000000e+00> : vector<16x512xf32>
    %14 = tpu.matmul %12, %13, %cst_9 {dimension_numbers = #tpu.dot_dimension_numbers<[1], [0], [0], [1], [0, 0, 1, 1], [], []>} : vector<16x512xbf16>, vector<512x512xbf16>, vector<16x512xf32> -> vector<16x512xf32>
    %c0_10 = arith.constant 0 : index
    %c0_11 = arith.constant 0 : index
    %15 = vector.load %arg5[%c0_10, %c0_11] : memref<1x512xf32, #tpu.memory_space<vmem>>, vector<1x512xf32>
    %16 = vector.broadcast %15 : vector<1x512xf32> to vector<16x512xf32>
    %17 = arith.addf %14, %16 : vector<16x512xf32>
    %cst_12 = arith.constant 0.000000e+00 : f32
    %18 = vector.broadcast %cst_12 : f32 to vector<16x512xf32>
    %19 = arith.cmpf ogt, %17, %18 : vector<16x512xf32>
    %cst_13 = arith.constant 0.00999999977 : f32
    %20 = vector.broadcast %cst_13 : f32 to vector<16x512xf32>
    %21 = arith.mulf %20, %17 : vector<16x512xf32>
    %22 = arith.select %19, %17, %21 : vector<16x512xi1>, vector<16x512xf32>
    %23 = arith.truncf %22 : vector<16x512xf32> to vector<16x512xbf16>
    %c0_14 = arith.constant 0 : index
    %c0_15 = arith.constant 0 : index
    %24 = vector.load %arg6[%c0_14, %c0_15] : memref<512x256xbf16, #tpu.memory_space<vmem>>, vector<512x256xbf16>
    %cst_16 = arith.constant dense<0.000000e+00> : vector<16x256xf32>
    %25 = tpu.matmul %23, %24, %cst_16 {dimension_numbers = #tpu.dot_dimension_numbers<[1], [0], [0], [1], [0, 0, 1, 1], [], []>} : vector<16x512xbf16>, vector<512x256xbf16>, vector<16x256xf32> -> vector<16x256xf32>
    %c0_17 = arith.constant 0 : index
    %c0_18 = arith.constant 0 : index
    %26 = vector.load %arg7[%c0_17, %c0_18] : memref<1x256xf32, #tpu.memory_space<vmem>>, vector<1x256xf32>
    %27 = vector.broadcast %26 : vector<1x256xf32> to vector<16x256xf32>
    %28 = arith.addf %25, %27 : vector<16x256xf32>
    %cst_19 = arith.constant 0.000000e+00 : f32
    %29 = vector.broadcast %cst_19 : f32 to vector<16x256xf32>
    %30 = arith.cmpf ogt, %28, %29 : vector<16x256xf32>
    %cst_20 = arith.constant 0.00999999977 : f32
    %31 = vector.broadcast %cst_20 : f32 to vector<16x256xf32>
    %32 = arith.mulf %31, %28 : vector<16x256xf32>
    %33 = arith.select %30, %28, %32 : vector<16x256xi1>, vector<16x256xf32>
    %34 = arith.truncf %33 : vector<16x256xf32> to vector<16x256xbf16>
    %c0_21 = arith.constant 0 : index
    %c0_22 = arith.constant 0 : index
    %35 = vector.load %arg8[%c0_21, %c0_22] : memref<256x128xbf16, #tpu.memory_space<vmem>>, vector<256x128xbf16>
    %cst_23 = arith.constant dense<0.000000e+00> : vector<16x128xf32>
    %36 = tpu.matmul %34, %35, %cst_23 {dimension_numbers = #tpu.dot_dimension_numbers<[1], [0], [0], [1], [0, 0, 1, 1], [], []>} : vector<16x256xbf16>, vector<256x128xbf16>, vector<16x128xf32> -> vector<16x128xf32>
    %c0_24 = arith.constant 0 : index
    %c0_25 = arith.constant 0 : index
    %37 = vector.load %arg9[%c0_24, %c0_25] : memref<1x128xf32, #tpu.memory_space<vmem>>, vector<1x128xf32>
    %38 = vector.broadcast %37 : vector<1x128xf32> to vector<16x128xf32>
    %39 = arith.addf %36, %38 : vector<16x128xf32>
    %40 = arith.truncf %39 : vector<16x128xf32> to vector<16x128xbf16>
    %c0_26 = arith.constant 0 : index
    %c0_27 = arith.constant 0 : index
    %41 = vector.load %arg10[%c0_26, %c0_27] : memref<16x128xbf16, #tpu.memory_space<vmem>>, vector<16x128xbf16>
    tpu.vector_store %arg10[%c0_26, %c0_27], %40 {strides = array<i32>} : memref<16x128xbf16, #tpu.memory_space<vmem>>, vector<16x128xbf16>,
    return
  }
  func.func @transform_0(%arg0: i32) -> (i32, i32) {
    %c0_i32 = arith.constant 0 : i32
    %c0_i32_0 = arith.constant 0 : i32
    return %arg0, %c0_i32 : i32, i32
  }
  func.func @transform_1(%arg0: i32) -> (i32, i32) {
    %c0_i32 = arith.constant 0 : i32
    %c0_i32_0 = arith.constant 0 : i32
    %c0_i32_1 = arith.constant 0 : i32
    return %c0_i32, %c0_i32_0 : i32, i32
  }
  func.func @transform_2(%arg0: i32) -> (i32, i32) {
    %c0_i32 = arith.constant 0 : i32
    %c0_i32_0 = arith.constant 0 : i32
    %c0_i32_1 = arith.constant 0 : i32
    return %c0_i32, %c0_i32_0 : i32, i32
  }
  func.func @transform_3(%arg0: i32) -> (i32, i32) {
    %c0_i32 = arith.constant 0 : i32
    %c0_i32_0 = arith.constant 0 : i32
    %c0_i32_1 = arith.constant 0 : i32
    return %c0_i32, %c0_i32_0 : i32, i32
  }
  func.func @transform_4(%arg0: i32) -> (i32, i32) {
    %c0_i32 = arith.constant 0 : i32
    %c0_i32_0 = arith.constant 0 : i32
    %c0_i32_1 = arith.constant 0 : i32
    return %c0_i32, %c0_i32_0 : i32, i32
  }
  func.func @transform_5(%arg0: i32) -> (i32, i32) {
    %c0_i32 = arith.constant 0 : i32
    %c0_i32_0 = arith.constant 0 : i32
    %c0_i32_1 = arith.constant 0 : i32
    return %c0_i32, %c0_i32_0 : i32, i32
  }
  func.func @transform_6(%arg0: i32) -> (i32, i32) {
    %c0_i32 = arith.constant 0 : i32
    %c0_i32_0 = arith.constant 0 : i32
    %c0_i32_1 = arith.constant 0 : i32
    return %c0_i32, %c0_i32_0 : i32, i32
  }
  func.func @transform_7(%arg0: i32) -> (i32, i32) {
    %c0_i32 = arith.constant 0 : i32
    %c0_i32_0 = arith.constant 0 : i32
    %c0_i32_1 = arith.constant 0 : i32
    return %c0_i32, %c0_i32_0 : i32, i32
  }
  func.func @transform_8(%arg0: i32) -> (i32, i32) {
    %c0_i32 = arith.constant 0 : i32
    %c0_i32_0 = arith.constant 0 : i32
    %c0_i32_1 = arith.constant 0 : i32
    return %c0_i32, %c0_i32_0 : i32, i32
  }
  func.func @transform_9(%arg0: i32) -> (i32, i32) {
    %c0_i32 = arith.constant 0 : i32
    %c0_i32_0 = arith.constant 0 : i32
    return %arg0, %c0_i32 : i32, i32
  }
}

</mosaic_0001>

<bundles_post_ra>
// kernel: tpu_custom_call.1
= control target key start
LH: loop header
LB: loop body
LE: loop exit
PB: predicated region body
PF: predicated region fallthrough
CT: control target
= control target key end

     0   :  { %14 = vsyncpa [#allocation3], 0  ;;  %s5258_s0 = inlined_call_operand.hbm [shape: f32[16,1000], index: 0, kind: input, shape index: {}]   ;;  %s5259_s1 = inlined_call_operand.hbm [shape: bf16[1000,512], index: 1, kind: input, shape index: {}]   ;;  %s5260_s2 = inlined_call_operand.hbm [shape: f32[1,512], index: 2, kind: input, shape index: {}]   ;;  %s5261_s3 = inlined_call_operand.hbm [shape: bf16[512,512], index: 3, kind: input, shape index: {}]   ;;  %s5262_s4 = inlined_call_operand.vmem [shape: f32[1,512], index: 4, kind: input, shape index: {}]   ;;  %s5263_s5 = inlined_call_operand.hbm [shape: bf16[512,256], index: 5, kind: input, shape index: {}]   ;;  %s5264_s6 = inlined_call_operand.vmem [shape: f32[1,256], index: 6, kind: input, shape index: {}]   ;;  %s5265_s7 = inlined_call_operand.hbm [shape: bf16[256,128], index: 7, kind: input, shape index: {}]   ;;  %s5266_s8 = inlined_call_operand.vmem [shape: f32[1,128], index: 8, kind: input, shape index: {}]   ;;  %s5267_s9 = inlined_call_operand.hbm [shape: bf16[16,128], index: 9, kind: output, shape index: {}]  }
   0x1   :  { %15 = vsyncpa [#allocation6], 0 }
   0x2   :  { %16 = vsyncpa [#allocation9], 0 }
   0x3   :  { %17 = vsyncpa [#allocation12], 0 }
   0x4   :  { %18 = vsyncpa [#allocation4], 0  ;;  %s5081_s30 = smov [#allocation5]  }
   0x5   :  { %s36_s10 = sshll.u32 %s5081_s30, 4  ;;  %s37_s10 = int_to_ptr.vmem [resolvable:$true] %s36_s10 }
   0x6   :  { %s4939_s11 = scalar_lea.vmem %s37_s10, 32000  ;;  %p4944_p1 = scmp.lt.s32.totalorder %s37_s10, %s37_s10 }
   0x7   :  { %p4940_p0 = scmp.ne.s32.totalorder %s37_s10, %s4939_s11  ;;  %p4945_p2 = scmp.lt.s32.totalorder %s4939_s11, %s4939_s11 }
   0x9   :  { %p4946_p3 = por %p4945_p2, %p4944_p1 }
   0xb   :  { %p4947_p4 = pnand %p4946_p3, %p4940_p0 }
   0xd   :  { %4950 = shalt.err (!%p4947_p4)
}
   0xe   :  { %s5082_s12 = smov 256   ;;  %s5083_s13 = smov 16  }
   0xf   :  { %42 = dma.hbm_to_vmem [thread:$0]  %s5259_s1, 32000, %s37_s10, [#allocation6], %s5082_s12, %s5082_s12, %s5083_s13  }
  0x10   :  { %s5084_s16 = smov [#allocation8]   ;;  %s5085_s18 = smov [#allocation2]  }
  0x11   :  { %s58_s17 = sshll.u32 %s5084_s16, 4  ;;  %s24_s19 = sshll.u32 %s5085_s18, 4  ;;  %s59_s17 = int_to_ptr.vmem [resolvable:$true] %s58_s17  ;;  %s25_s19 = int_to_ptr.vmem [resolvable:$true] %s24_s19 }
  0x12   :  { %s4959_s20 = scalar_lea.vmem %s59_s17, 16384  ;;  %p4964_p6 = scmp.lt.s32.totalorder %s59_s17, %s59_s17 }
  0x13   :  { %p4960_p5 = scmp.ne.s32.totalorder %s59_s17, %s4959_s20  ;;  %p4965_p7 = scmp.lt.s32.totalorder %s4959_s20, %s4959_s20 }
  0x15   :  { %p4966_p8 = por %p4965_p7, %p4964_p6 }
  0x17   :  { %p4967_p9 = pnand %p4966_p8, %p4960_p5 }
  0x19   :  { %4970 = shalt.err (!%p4967_p9)
}
  0x1a   :  { %64 = dma.hbm_to_vmem [thread:$0]  %s5261_s3, 16384, %s59_s17, [#allocation9], %s5082_s12, %s5082_s12, %s5083_s13  }
  0x1b   :  { %s4979_s23 = scalar_lea.vmem %s25_s19, 2048  ;;  %p4984_p11 = scmp.lt.s32.totalorder %s25_s19, %s25_s19 }
  0x1c   :  { %p4980_p10 = scmp.ne.s32.totalorder %s25_s19, %s4979_s23  ;;  %p4985_p12 = scmp.lt.s32.totalorder %s4979_s23, %s4979_s23 }
  0x1e   :  { %p4986_p13 = por %p4985_p12, %p4984_p11 }
  0x20   :  { %p4987_p0 = pnand %p4986_p13, %p4980_p10 }
  0x22   :  { %4990 = shalt.err (!%p4987_p0)
}
  0x23   :  { %s5086_s1 = smov 1024   ;;  %s5087_s24 = smov 64  }
  0x24   :  { %30 = dma.hbm_to_vmem [thread:$0]  %s5258_s0, 2048, %s25_s19, [#allocation3], %s5086_s1, %s5086_s1, %s5087_s24  }
  0x25   :  { %s5088_s27 = smov [#allocation7]   ;;  %s5089_s29 = smov [#allocation10]  }
  0x26   :  { %s49_s28 = sshll.u32 %s5088_s27, 4  ;;  %s72_s3 = sshll.u32 %s5089_s29, 4  ;;  %s50_s28 = int_to_ptr.vmem [resolvable:$true] %s49_s28  ;;  %s73_s3 = int_to_ptr.vmem [resolvable:$true] %s72_s3 }
  0x27   :  { %s4999_s30 = scalar_lea.vmem %s50_s28, 64  ;;  %p5004_p2 = scmp.lt.s32.totalorder %s50_s28, %s50_s28 }
  0x28   :  { %p5000_p1 = scmp.ne.s32.totalorder %s50_s28, %s4999_s30  ;;  %p5005_p3 = scmp.lt.s32.totalorder %s4999_s30, %s4999_s30 }
  0x2a   :  { %p5006_p4 = por %p5005_p3, %p5004_p2 }
  0x2c   :  { %p5007_p5 = pnand %p5006_p4, %p5000_p1 }
  0x2e   :  { %5010 = shalt.err (!%p5007_p5)
}
  0x2f   :  { %52 = dma.hbm_to_vmem [thread:$0]  %s5260_s2, 64, %s50_s28, [#allocation6]  }
  0x30   :  { %s5019_s12 = scalar_lea.vmem %s73_s3, 8192  ;;  %p5024_p7 = scmp.lt.s32.totalorder %s73_s3, %s73_s3 }
  0x31   :  { %p5020_p6 = scmp.ne.s32.totalorder %s73_s3, %s5019_s12  ;;  %p5025_p8 = scmp.lt.s32.totalorder %s5019_s12, %s5019_s12 }
  0x33   :  { %p5026_p9 = por %p5025_p8, %p5024_p7 }
  0x35   :  { %p5027_p10 = pnand %p5026_p9, %p5020_p6 }
  0x37   :  { %5030 = shalt.err (!%p5027_p10)
}
  0x38   :  { %s5090_s0 = smov 128   ;;  %s5091_s13 = smov 8  }
  0x39   :  { %78 = dma.hbm_to_vmem [thread:$0]  %s5263_s5, 8192, %s73_s3, [#allocation9], %s5090_s0, %s5090_s0, %s5091_s13  }
  0x3a   :  { %s5092_s16 = smov [#allocation11]  }
  0x3b   :  { %s86_s17 = sshll.u32 %s5092_s16, 4  ;;  %s87_s17 = int_to_ptr.vmem [resolvable:$true] %s86_s17 }
  0x3c   :  { %s5039_s18 = scalar_lea.vmem %s87_s17, 2048  ;;  %p5044_p12 = scmp.lt.s32.totalorder %s87_s17, %s87_s17 }
  0x3d   :  { %p5040_p11 = scmp.ne.s32.totalorder %s87_s17, %s5039_s18  ;;  %p5045_p13 = scmp.lt.s32.totalorder %s5039_s18, %s5039_s18 }
  0x3f   :  { %p5046_p0 = por %p5045_p13, %p5044_p12 }
  0x41   :  { %p5047_p1 = pnand %p5046_p0, %p5040_p11 }
  0x43   :  { %5050 = shalt.err (!%p5047_p1)
}
  0x44   :  { %s5093_s2 = smov 4  }
  0x45   :  { %92 = dma.hbm_to_vmem [thread:$0]  %s5265_s7, 2048, %s87_s17, [#allocation12], %s5087_s24, %s5087_s24, %s5093_s2  }
  0x46   :  { %5071 = dma.done.wait [#allocation3], 2048  }
  0x47   :  { %5072 = vsyncadd [#allocation3], 4294965248 }
  0x48   :  { %5073 = dma.done.wait [#allocation6], 32064  }
  0x49   :  { %5074 = vsyncadd [#allocation6], 4294935232 }
  0x4a   :  { %5075 = dma.done.wait [#allocation9], 24576  }
  0x4b   :  { %5076 = vsyncadd [#allocation9], 4294942720 }
  0x4c   :  { %5077 = dma.done.wait [#allocation12], 2048  }
  0x4d   :  { %5078 = vsyncadd [#allocation12], 4294965248  ;;  %v4251_v0 = vld [vmem:[#allocation5 + $0xe4] ss:$16 sps:$4 sm:$0xff]   ;;  %v4255_v2 = vld [vmem:[#allocation5 + $0xe0] ss:$16 sps:$4 sm:$0xff]  }
  0x4e   :  { %v4253_v1 = vld [vmem:[#allocation5 + $0x2e4] ss:$16 sps:$4 sm:$0xff]   ;;  %1677 = vmatprep.subr.bf16.mxu0 %v4251_v0  ;;  %v4256_v3 = vld [vmem:[#allocation5 + $0x2e0] ss:$16 sps:$4 sm:$0xff]   ;;  %v115_v46 = vld [vmem:[#allocation2 + $0x8] sm:$0xff]  ;;  %vm1660_vm0 = vcmask 850944  }
  0x4f   :  { %1720 = vmatprep.subr.bf16.mxu1 %v4253_v1  ;;  %v4257_v4 = vld [vmem:[#allocation5 + $0xc4] ss:$16 sps:$4 sm:$0xff]   ;;  %1678 = vmatpush1.bf16.msra.mxu0 %v4255_v2  ;;  %v4261_v6 = vld [vmem:[#allocation5 + $0xc0] ss:$16 sps:$4 sm:$0xff]   ;;  %v123_v47 = vld [vmem:[#allocation2 + $0x48] sm:$0xff]  ;;  %vm1664_vm1 = vcmask 1043456  }
  0x50   :  { %1721 = vmatpush1.bf16.msra.mxu1 %v4256_v3  ;;  %v4259_v5 = vld [vmem:[#allocation5 + $0x2c4] ss:$16 sps:$4 sm:$0xff]   ;;  %1679 = vmatprep.subr.bf16.mxu0 %v4257_v4  ;;  %v4262_v7 = vld [vmem:[#allocation5 + $0x2c0] ss:$16 sps:$4 sm:$0xff]   ;;  %v117_v48 = vld [vmem:[#allocation2 + $0x18] sm:$0xff]  ;;  %v5167_v53 = vpack.c.bf16 %v123_v47, %v115_v46  ;;  %s5094_s23 = smov [#allocation13]  }
  0x51   :  { %1722 = vmatprep.subr.bf16.mxu1 %v4259_v5  ;;  %v4263_v8 = vld [vmem:[#allocation5 + $0xa4] ss:$16 sps:$4 sm:$0xff]   ;;  %v4267_v10 = vld [vmem:[#allocation5 + $0xa0] ss:$16 sps:$4 sm:$0xff]   ;;  %v125_v49 = vld [vmem:[#allocation2 + $0x58] sm:$0xff]  ;;  %s3726_s1 = sshll.u32 %s5094_s23, 4  ;;  %s3727_s1 = int_to_ptr.vmem [resolvable:$true] %s3726_s1 }
  0x52   :  { %v4265_v9 = vld [vmem:[#allocation5 + $0x2a4] ss:$16 sps:$4 sm:$0xff]   ;;  %v4268_v11 = vld [vmem:[#allocation5 + $0x2a0] ss:$16 sps:$4 sm:$0xff]   ;;  %v5169_v54 = vpack.c.bf16 %v125_v49, %v117_v48  ;;  %1709 = vmatprep.mubr.bf16.mxu0 %v5167_v53  ;;  %s5051_s25 = scalar_lea.vmem %s3727_s1, 128  ;;  %p5056_p3 = scmp.lt.s32.totalorder %s3727_s1, %s3727_s1 }
  0x53   :  { %1680 = vmatpush1.bf16.msra.mxu0 %v4261_v6  ;;  %v4269_v12 = vld [vmem:[#allocation5 + $0x84] ss:$16 sps:$4 sm:$0xff]   ;;  %v4273_v14 = vld [vmem:[#allocation5 + $0x80] ss:$16 sps:$4 sm:$0xff]   ;;  %p5052_p2 = scmp.ne.s32.totalorder %s3727_s1, %s5051_s25  ;;  %p5057_p4 = scmp.lt.s32.totalorder %s5051_s25, %s5051_s25 }
  0x54   :  { %1723 = vmatpush1.bf16.msra.mxu1 %v4262_v7  ;;  %1681 = vmatprep.subr.bf16.mxu0 %v4263_v8  ;;  %v4271_v13 = vld [vmem:[#allocation5 + $0x284] ss:$16 sps:$4 sm:$0xff]   ;;  %v4274_v15 = vld [vmem:[#allocation5 + $0x280] ss:$16 sps:$4 sm:$0xff]  }
  0x55   :  { %1724 = vmatprep.subr.bf16.mxu1 %v4265_v9  ;;  %v4275_v16 = vld [vmem:[#allocation5 + $0x64] ss:$16 sps:$4 sm:$0xff]   ;;  %v4279_v18 = vld [vmem:[#allocation5 + $0x60] ss:$16 sps:$4 sm:$0xff]   ;;  %1752 = vmatprep.mubr.bf16.mxu1 %v5169_v54  ;;  %p5058_p5 = por %p5057_p4, %p5056_p3 }
  0x56   :  { %v4277_v17 = vld [vmem:[#allocation5 + $0x264] ss:$16 sps:$4 sm:$0xff]   ;;  %v4280_v19 = vld [vmem:[#allocation5 + $0x260] ss:$16 sps:$4 sm:$0xff]  }
  0x57   :  { %1682 = vmatpush1.bf16.msra.mxu0 %v4267_v10  ;;  %v4281_v20 = vld [vmem:[#allocation5 + $0x44] ss:$16 sps:$4 sm:$0xff]   ;;  %v4285_v22 = vld [vmem:[#allocation5 + $0x40] ss:$16 sps:$4 sm:$0xff]   ;;  %p5059_p6 = pnand %p5058_p5, %p5052_p2 }
  0x58   :  { %1725 = vmatpush1.bf16.msra.mxu1 %v4268_v11  ;;  %1683 = vmatprep.subr.bf16.mxu0 %v4269_v12  ;;  %v4283_v21 = vld [vmem:[#allocation5 + $0x244] ss:$16 sps:$4 sm:$0xff]   ;;  %v4286_v23 = vld [vmem:[#allocation5 + $0x240] ss:$16 sps:$4 sm:$0xff]  }
  0x59   :  { %1726 = vmatprep.subr.bf16.mxu1 %v4271_v13  ;;  %v4287_v24 = vld [vmem:[#allocation5 + $0x24] ss:$16 sps:$4 sm:$0xff]   ;;  %v4291_v26 = vld [vmem:[#allocation5 + $0x20] ss:$16 sps:$4 sm:$0xff]  }
  0x5a   :  { %v4289_v25 = vld [vmem:[#allocation5 + $0x224] ss:$16 sps:$4 sm:$0xff]   ;;  %v4292_v27 = vld [vmem:[#allocation5 + $0x220] ss:$16 sps:$4 sm:$0xff]  }
  0x5b   :  { %1684 = vmatpush1.bf16.msra.mxu0 %v4273_v14  ;;  %v4293_v28 = vld [vmem:[#allocation5 + $0x4] ss:$16 sps:$4 sm:$0xff]   ;;  %v4297_v30 = vld [vmem:[#allocation5] ss:$16 sps:$4 sm:$0xff]  }
  0x5c   :  { %1727 = vmatpush1.bf16.msra.mxu1 %v4274_v15  ;;  %1685 = vmatprep.subr.bf16.mxu0 %v4275_v16  ;;  %v4295_v29 = vld [vmem:[#allocation5 + $0x204] ss:$16 sps:$4 sm:$0xff]   ;;  %v4298_v31 = vld [vmem:[#allocation5 + $0x200] ss:$16 sps:$4 sm:$0xff]  }
  0x5d   :  { %1728 = vmatprep.subr.bf16.mxu1 %v4277_v17  ;;  %v4299_v32 = vld [vmem:[#allocation5 + $0x1e4] ss:$16 sps:$4 sm:$0xff]   ;;  %v4303_v34 = vld [vmem:[#allocation5 + $0x1e0] ss:$16 sps:$4 sm:$0xff]  }
  0x5e   :  { %v4301_v33 = vld [vmem:[#allocation5 + $0x3e4] ss:$16 sps:$4 sm:$0xff]   ;;  %v4304_v35 = vld [vmem:[#allocation5 + $0x3e0] ss:$16 sps:$4 sm:$0xff]  }
  0x5f   :  { %1686 = vmatpush1.bf16.msra.mxu0 %v4279_v18  ;;  %v4305_v36 = vld [vmem:[#allocation5 + $0x1c4] ss:$16 sps:$4 sm:$0xff]   ;;  %v4309_v38 = vld [vmem:[#allocation5 + $0x1c0] ss:$16 sps:$4 sm:$0xff]  }
  0x60   :  { %1729 = vmatpush1.bf16.msra.mxu1 %v4280_v19  ;;  %1687 = vmatprep.subr.bf16.mxu0 %v4281_v20  ;;  %v4307_v37 = vld [vmem:[#allocation5 + $0x3c4] ss:$16 sps:$4 sm:$0xff]   ;;  %v4310_v39 = vld [vmem:[#allocation5 + $0x3c0] ss:$16 sps:$4 sm:$0xff]  }
  0x61   :  { %1730 = vmatprep.subr.bf16.mxu1 %v4283_v21  ;;  %v4311_v40 = vld [vmem:[#allocation5 + $0x1a4] ss:$16 sps:$4 sm:$0xff]   ;;  %v4315_v42 = vld [vmem:[#allocation5 + $0x1a0] ss:$16 sps:$4 sm:$0xff]  }
  0x62   :  { %v4313_v41 = vld [vmem:[#allocation5 + $0x3a4] ss:$16 sps:$4 sm:$0xff]   ;;  %v4316_v43 = vld [vmem:[#allocation5 + $0x3a0] ss:$16 sps:$4 sm:$0xff]  }
  0x63   :  { %1688 = vmatpush1.bf16.msra.mxu0 %v4285_v22  ;;  %v4317_v44 = vld [vmem:[#allocation5 + $0x184] ss:$16 sps:$4 sm:$0xff]   ;;  %v4321_v50 = vld [vmem:[#allocation5 + $0x180] ss:$16 sps:$4 sm:$0xff]  }
  0x64   :  { %1731 = vmatpush1.bf16.msra.mxu1 %v4286_v23  ;;  %1689 = vmatprep.subr.bf16.mxu0 %v4287_v24  ;;  %v4319_v45 = vld [vmem:[#allocation5 + $0x384] ss:$16 sps:$4 sm:$0xff]   ;;  %v4322_v51 = vld [vmem:[#allocation5 + $0x380] ss:$16 sps:$4 sm:$0xff]  }
  0x65   :  { %1732 = vmatprep.subr.bf16.mxu1 %v4289_v25  ;;  %v4323_v52 = vld [vmem:[#allocation5 + $0x164] ss:$16 sps:$4 sm:$0xff]   ;;  %v4327_v56 = vld [vmem:[#allocation5 + $0x160] ss:$16 sps:$4 sm:$0xff]  }
  0x66   :  { %v4325_v55 = vld [vmem:[#allocation5 + $0x364] ss:$16 sps:$4 sm:$0xff]   ;;  %v4328_v57 = vld [vmem:[#allocation5 + $0x360] ss:$16 sps:$4 sm:$0xff]  }
  0x67   :  { %1690 = vmatpush1.bf16.msra.mxu0 %v4291_v26  ;;  %v4329_v58 = vld [vmem:[#allocation5 + $0x144] ss:$16 sps:$4 sm:$0xff]   ;;  %v4333_v60 = vld [vmem:[#allocation5 + $0x140] ss:$16 sps:$4 sm:$0xff]  }
  0x68   :  { %1733 = vmatpush1.bf16.msra.mxu1 %v4292_v27  ;;  %1691 = vmatprep.subr.bf16.mxu0 %v4293_v28  ;;  %v4331_v59 = vld [vmem:[#allocation5 + $0x344] ss:$16 sps:$4 sm:$0xff]   ;;  %v4334_v61 = vld [vmem:[#allocation5 + $0x340] ss:$16 sps:$4 sm:$0xff]  }
  0x69   :  { %1734 = vmatprep.subr.bf16.mxu1 %v4295_v29  ;;  %v4335_v62 = vld [vmem:[#allocation5 + $0x124] ss:$16 sps:$4 sm:$0xff]   ;;  %v4339_v0 = vld [vmem:[#allocation5 + $0x120] ss:$16 sps:$4 sm:$0xff]  }
  0x6a   :  { %v4337_v63 = vld [vmem:[#allocation5 + $0x324] ss:$16 sps:$4 sm:$0xff]   ;;  %v4340_v1 = vld [vmem:[#allocation5 + $0x320] ss:$16 sps:$4 sm:$0xff]  }
  0x6b   :  { %1692 = vmatpush1.bf16.msra.mxu0 %v4297_v30  ;;  %v4341_v2 = vld [vmem:[#allocation5 + $0x104] ss:$16 sps:$4 sm:$0xff]   ;;  %v4345_v4 = vld [vmem:[#allocation5 + $0x100] ss:$16 sps:$4 sm:$0xff]  }
  0x6c   :  { %1735 = vmatpush1.bf16.msra.mxu1 %v4298_v31  ;;  %1693 = vmatprep.subr.bf16.mxu0 %v4299_v32  ;;  %v4343_v3 = vld [vmem:[#allocation5 + $0x304] ss:$16 sps:$4 sm:$0xff]   ;;  %v4346_v5 = vld [vmem:[#allocation5 + $0x300] ss:$16 sps:$4 sm:$0xff]  }
  0x6d   :  { %1736 = vmatprep.subr.bf16.mxu1 %v4301_v33  ;;  %v114_v6 = vld [vmem:[#allocation2] sm:$0xff]  ;;  %v116_v8 = vld [vmem:[#allocation2 + $0x10] sm:$0xff] }
  0x6e   :  { %v122_v7 = vld [vmem:[#allocation2 + $0x40] sm:$0xff]  ;;  %v124_v9 = vld [vmem:[#allocation2 + $0x50] sm:$0xff] }
  0x6f   :  { %1694 = vmatpush2.bf16.msra.mxu0 %v4303_v34  ;;  %v4349_v10 = vld [vmem:[#allocation5 + $0x4e4] ss:$16 sps:$4 sm:$0xff]   ;;  %v5173_v12 = vpack.c.bf16 %v122_v7, %v114_v6  ;;  %v5175_v13 = vpack.c.bf16 %v124_v9, %v116_v8  ;;  %v4347_v14 = vld [vmem:[#allocation5 + $0x4e0] ss:$16 sps:$4 sm:$0xff]  }
  0x70   :  { %1737 = vmatpush2.bf16.msra.mxu1 %v4304_v35  ;;  %1695 = vmatprep.subr.bf16.mxu0 %v4305_v36  ;;  %v4352_v11 = vld [vmem:[#allocation5 + $0x6e4] ss:$16 sps:$4 sm:$0xff]   ;;  %v4350_v15 = vld [vmem:[#allocation5 + $0x6e0] ss:$16 sps:$4 sm:$0xff]  }
  0x71   :  { %1738 = vmatprep.subr.bf16.mxu1 %v4307_v37  ;;  %v4355_v16 = vld [vmem:[#allocation5 + $0x4c4] ss:$16 sps:$4 sm:$0xff]   ;;  %v4353_v18 = vld [vmem:[#allocation5 + $0x4c0] ss:$16 sps:$4 sm:$0xff]   ;;  %v121_v37 = vld [vmem:[#allocation2 + $0x38] sm:$0xff] }
  0x72   :  { %v4358_v17 = vld [vmem:[#allocation5 + $0x6c4] ss:$16 sps:$4 sm:$0xff]   ;;  %v4356_v19 = vld [vmem:[#allocation5 + $0x6c0] ss:$16 sps:$4 sm:$0xff]  }
  0x73   :  { %1696 = vmatpush2.bf16.msra.mxu0 %v4309_v38  ;;  %v4361_v20 = vld [vmem:[#allocation5 + $0x4a4] ss:$16 sps:$4 sm:$0xff]   ;;  %v4359_v22 = vld [vmem:[#allocation5 + $0x4a0] ss:$16 sps:$4 sm:$0xff]   ;;  %v129_v38 = vld [vmem:[#allocation2 + $0x78] sm:$0xff] }
  0x74   :  { %1739 = vmatpush2.bf16.msra.mxu1 %v4310_v39  ;;  %1697 = vmatprep.subr.bf16.mxu0 %v4311_v40  ;;  %v4364_v21 = vld [vmem:[#allocation5 + $0x6a4] ss:$16 sps:$4 sm:$0xff]   ;;  %v4362_v23 = vld [vmem:[#allocation5 + $0x6a0] ss:$16 sps:$4 sm:$0xff]   ;;  %v5179_v40 = vpack.c.bf16 %v129_v38, %v121_v37  ;;  %v4451_v37 = vld [vmem:[#allocation5 + $0x2c8] ss:$16 sps:$4 sm:$0xff]  }
  0x75   :  { %1740 = vmatprep.subr.bf16.mxu1 %v4313_v41  ;;  %v4367_v24 = vld [vmem:[#allocation5 + $0x484] ss:$16 sps:$4 sm:$0xff]   ;;  %v4365_v26 = vld [vmem:[#allocation5 + $0x480] ss:$16 sps:$4 sm:$0xff]   ;;  %v4456_v38 = vld [vmem:[#allocation5 + $0x8c] ss:$16 sps:$4 sm:$0xff]  }
  0x76   :  { %v4370_v25 = vld [vmem:[#allocation5 + $0x684] ss:$16 sps:$4 sm:$0xff]   ;;  %v4368_v27 = vld [vmem:[#allocation5 + $0x680] ss:$16 sps:$4 sm:$0xff]  }
  0x77   :  { %1698 = vmatpush2.bf16.msra.mxu0 %v4315_v42  ;;  %v4373_v28 = vld [vmem:[#allocation5 + $0x464] ss:$16 sps:$4 sm:$0xff]   ;;  %v4371_v30 = vld [vmem:[#allocation5 + $0x460] ss:$16 sps:$4 sm:$0xff]  }
  0x78   :  { %1741 = vmatpush2.bf16.msra.mxu1 %v4316_v43  ;;  %1699 = vmatprep.subr.bf16.mxu0 %v4317_v44  ;;  %v4376_v29 = vld [vmem:[#allocation5 + $0x664] ss:$16 sps:$4 sm:$0xff]   ;;  %v4374_v31 = vld [vmem:[#allocation5 + $0x660] ss:$16 sps:$4 sm:$0xff]   ;;  %v119_v43 = vld [vmem:[#allocation2 + $0x28] sm:$0xff] }
  0x79   :  { %1742 = vmatprep.subr.bf16.mxu1 %v4319_v45  ;;  %v4379_v32 = vld [vmem:[#allocation5 + $0x444] ss:$16 sps:$4 sm:$0xff]   ;;  %v4377_v34 = vld [vmem:[#allocation5 + $0x440] ss:$16 sps:$4 sm:$0xff]   ;;  %v127_v44 = vld [vmem:[#allocation2 + $0x68] sm:$0xff] }
  0x7a   :  { %v4382_v33 = vld [vmem:[#allocation5 + $0x644] ss:$16 sps:$4 sm:$0xff]   ;;  %v4380_v35 = vld [vmem:[#allocation5 + $0x640] ss:$16 sps:$4 sm:$0xff]   ;;  %v5183_v47 = vpack.c.bf16 %v127_v44, %v119_v43  ;;  %v4462_v43 = vld [vmem:[#allocation5 + $0x6c] ss:$16 sps:$4 sm:$0xff]  }
  0x7b   :  { %1700 = vmatpush2.bf16.msra.mxu0 %v4321_v50  ;;  %v4385_v36 = vld [vmem:[#allocation5 + $0x424] ss:$16 sps:$4 sm:$0xff]   ;;  %v4383_v41 = vld [vmem:[#allocation5 + $0x420] ss:$16 sps:$4 sm:$0xff]   ;;  %v4460_v44 = vld [vmem:[#allocation5 + $0x68] ss:$16 sps:$4 sm:$0xff]  }
  0x7c   :  { %1743 = vmatpush2.bf16.msra.mxu1 %v4322_v51  ;;  %1701 = vmatprep.subr.bf16.mxu0 %v4323_v52  ;;  %v4388_v39 = vld [vmem:[#allocation5 + $0x624] ss:$16 sps:$4 sm:$0xff]   ;;  %v4386_v42 = vld [vmem:[#allocation5 + $0x620] ss:$16 sps:$4 sm:$0xff]  }
  0x7d   :  { %1744 = vmatprep.subr.bf16.mxu1 %v4325_v55  ;;  %v4391_v45 = vld [vmem:[#allocation5 + $0x404] ss:$16 sps:$4 sm:$0xff]   ;;  %v4389_v49 = vld [vmem:[#allocation5 + $0x400] ss:$16 sps:$4 sm:$0xff]  }
  0x7e   :  { %v4394_v46 = vld [vmem:[#allocation5 + $0x604] ss:$16 sps:$4 sm:$0xff]   ;;  %v4392_v50 = vld [vmem:[#allocation5 + $0x600] ss:$16 sps:$4 sm:$0xff]  }
  0x7f   :  { %1702 = vmatpush2.bf16.msra.mxu0 %v4327_v56  ;;  %v386_v48 = vld [vmem:[#allocation5 + $0x7c0] sm:$0xff] }
  0x80   :  { %1745 = vmatpush2.bf16.msra.mxu1 %v4328_v57  ;;  %1703 = vmatprep.subr.bf16.mxu0 %v4329_v58  ;;  %v4397_v51 = vld [vmem:[#allocation5 + $0x5e4] ss:$16 sps:$4 sm:$0xff]   ;;  %v3990_v52 = vcombine.high %v386_v48, %v386_v48  ;;  %v3989_v55 = vcombine.low %v386_v48, %v386_v48  ;;  %v4395_v56 = vld [vmem:[#allocation5 + $0x5e0] ss:$16 sps:$4 sm:$0xff]   ;;  %v4471_v48 = vld [vmem:[#allocation5 + $0x26c] ss:$16 sps:$4 sm:$0xff]  }
  0x81   :  { %1746 = vmatprep.subr.bf16.mxu1 %v4331_v59  ;;  %v4402_v58 = vld [vmem:[#allocation5 + $0x5c4] ss:$16 sps:$4 sm:$0xff]   ;;  %v4418_v8 = vld [vmem:[#allocation5 + $0x560] ss:$16 sps:$4 sm:$0xff]  }
  0x82   :  { %v1666_v57 = vsel %vm1664_vm1, %v3989_v55, 0  ;;  %v4405_v59 = vld [vmem:[#allocation5 + $0x7a4] ss:$16 sps:$4 sm:$0xff]   ;;  %v4421_v9 = vld [vmem:[#allocation5 + $0x740] ss:$16 sps:$4 sm:$0xff]  }
  0x83   :  { %1704 = vmatpush2.bf16.msra.mxu0 %v4333_v60  ;;  %v4400_v60 = vld [vmem:[#allocation5 + $0x5c0] ss:$16 sps:$4 sm:$0xff]   ;;  %v4420_v6 = vld [vmem:[#allocation5 + $0x564] ss:$16 sps:$4 sm:$0xff]   ;;  %v4475_v55 = vld [vmem:[#allocation5 + $0x248] ss:$16 sps:$4 sm:$0xff]  }
  0x84   :  { %1747 = vmatpush2.bf16.msra.mxu1 %v4334_v61  ;;  %1705 = vmatprep.subr.bf16.mxu0 %v4335_v62  ;;  %v4403_v61 = vld [vmem:[#allocation5 + $0x7a0] ss:$16 sps:$4 sm:$0xff]   ;;  %v4408_v62 = vld [vmem:[#allocation5 + $0x5a4] ss:$16 sps:$4 sm:$0xff]  }
  0x85   :  { %1748 = vmatprep.subr.bf16.mxu1 %v4337_v63  ;;  %v4411_v63 = vld [vmem:[#allocation5 + $0x784] ss:$16 sps:$4 sm:$0xff]  }
  0x86   :  { %v4423_v7 = vld [vmem:[#allocation5 + $0x744] ss:$16 sps:$4 sm:$0xff]  }
  0x87   :  { %1706 = vmatpush2.bf16.msra.mxu0 %v4339_v0  ;;  %v4406_v0 = vld [vmem:[#allocation5 + $0x5a0] ss:$16 sps:$4 sm:$0xff]  }
  0x88   :  { %1749 = vmatpush2.bf16.msra.mxu1 %v4340_v1  ;;  %1707 = vmatprep.subr.bf16.mxu0 %v4341_v2  ;;  %v4409_v1 = vld [vmem:[#allocation5 + $0x780] ss:$16 sps:$4 sm:$0xff]   ;;  %v4414_v2 = vld [vmem:[#allocation5 + $0x584] ss:$16 sps:$4 sm:$0xff]  }
  0x89   :  { %1750 = vmatprep.subr.bf16.mxu1 %v4343_v3  ;;  %v4417_v3 = vld [vmem:[#allocation5 + $0x764] ss:$16 sps:$4 sm:$0xff]  }
  0x8b   :  { %1708 = vmatpush2.bf16.msra.mxu0 %v4345_v4  ;;  %v4412_v4 = vld [vmem:[#allocation5 + $0x580] ss:$16 sps:$4 sm:$0xff]  }
  0x8c   :  { %1751 = vmatpush2.bf16.msra.mxu1 %v4346_v5  ;;  %1763 = vmatprep.subr.bf16.mxu0 %v4349_v10  ;;  %v4415_v5 = vld [vmem:[#allocation5 + $0x760] ss:$16 sps:$4 sm:$0xff]   ;;  %v4426_v10 = vld [vmem:[#allocation5 + $0x544] ss:$16 sps:$4 sm:$0xff]  }
  0x8d   :  { %1806 = vmatprep.subr.bf16.mxu1 %v4352_v11  ;;  %v4429_v11 = vld [vmem:[#allocation5 + $0x724] ss:$16 sps:$4 sm:$0xff]  }
  0x8e   :  { %1710 = vmatmul.mubr.bf16.vlgmr.msra.gmra.mxu0 %v5173_v12 }
  0x8f   :  { %1753 = vmatmul.mubr.bf16.vlgmr.msra.gmra.mxu1 %v5175_v13  ;;  %1764 = vmatpush1.bf16.msra.mxu0 %v4347_v14  ;;  %v4424_v14 = vld [vmem:[#allocation5 + $0x540] ss:$16 sps:$4 sm:$0xff]  }
  0x90   :  { %1807 = vmatpush1.bf16.msra.mxu1 %v4350_v15  ;;  %1765 = vmatprep.subr.bf16.mxu0 %v4355_v16  ;;  %v4427_v15 = vld [vmem:[#allocation5 + $0x720] ss:$16 sps:$4 sm:$0xff]   ;;  %v4432_v16 = vld [vmem:[#allocation5 + $0x524] ss:$16 sps:$4 sm:$0xff]  }
  0x91   :  { %1808 = vmatprep.subr.bf16.mxu1 %v4358_v17  ;;  %3994 = vmatprep.mubr.msk.bf16.mxu1 %vm1660_vm0, %v5179_v40  ;;  %v4435_v17 = vld [vmem:[#allocation5 + $0x704] ss:$16 sps:$4 sm:$0xff]  }
  0x92   :  { %1795 = vmatprep.mubr.bf16.mxu0 %v5183_v47 }
  0x93   :  { %1766 = vmatpush1.bf16.msra.mxu0 %v4353_v18  ;;  %v4430_v18 = vld [vmem:[#allocation5 + $0x520] ss:$16 sps:$4 sm:$0xff]  }
  0x94   :  { %1809 = vmatpush1.bf16.msra.mxu1 %v4356_v19  ;;  %1767 = vmatprep.subr.bf16.mxu0 %v4361_v20  ;;  %v4433_v19 = vld [vmem:[#allocation5 + $0x700] ss:$16 sps:$4 sm:$0xff]  }
  0x95   :  { %1810 = vmatprep.subr.bf16.mxu1 %v4364_v21  ;;  %v120_v20 = vld [vmem:[#allocation2 + $0x30] sm:$0xff] }
  0x96   :  { %v128_v21 = vld [vmem:[#allocation2 + $0x70] sm:$0xff] }
  0x97   :  { %1768 = vmatpush1.bf16.msra.mxu0 %v4359_v22  ;;  %v4438_v22 = vld [vmem:[#allocation5 + $0x504] ss:$16 sps:$4 sm:$0xff]  }
  0x98   :  { %1811 = vmatpush1.bf16.msra.mxu1 %v4362_v23  ;;  %1769 = vmatprep.subr.bf16.mxu0 %v4367_v24  ;;  %v4441_v23 = vld [vmem:[#allocation5 + $0xec] ss:$16 sps:$4 sm:$0xff]   ;;  %v4436_v24 = vld [vmem:[#allocation5 + $0x500] ss:$16 sps:$4 sm:$0xff]  }
  0x99   :  { %1812 = vmatprep.subr.bf16.mxu1 %v4370_v25  ;;  %v4439_v25 = vld [vmem:[#allocation5 + $0xe8] ss:$16 sps:$4 sm:$0xff]  }
  0x9b   :  { %1770 = vmatpush1.bf16.msra.mxu0 %v4365_v26  ;;  %v5188_v26 = vpack.c.bf16 %v128_v21, %v120_v20  ;;  %v4514_v20 = vld [vmem:[#allocation5 + $0x148] ss:$16 sps:$4 sm:$0xff]  }
  0x9c   :  { %1813 = vmatpush1.bf16.msra.mxu1 %v4368_v27  ;;  %1771 = vmatprep.subr.bf16.mxu0 %v4373_v28  ;;  %v118_v27 = vld [vmem:[#allocation2 + $0x20] sm:$0xff]  ;;  %v4517_v21 = vld [vmem:[#allocation5 + $0x368] ss:$16 sps:$4 sm:$0xff]  }
  0x9d   :  { %1814 = vmatprep.subr.bf16.mxu1 %v4376_v29  ;;  %v126_v28 = vld [vmem:[#allocation2 + $0x60] sm:$0xff]  ;;  %v4444_v29 = vld [vmem:[#allocation5 + $0xcc] ss:$16 sps:$4 sm:$0xff]  }
  0x9f   :  { %1772 = vmatpush1.bf16.msra.mxu0 %v4371_v30  ;;  %v4447_v30 = vld [vmem:[#allocation5 + $0x2ec] ss:$16 sps:$4 sm:$0xff]  }
  0xa0   :  { %1815 = vmatpush1.bf16.msra.mxu1 %v4374_v31  ;;  %1773 = vmatprep.subr.bf16.mxu0 %v4379_v32  ;;  %v5191_v31 = vpack.c.bf16 %v126_v28, %v118_v27  ;;  %v4442_v32 = vld [vmem:[#allocation5 + $0xc8] ss:$16 sps:$4 sm:$0xff]   ;;  %v4528_v27 = vld [vmem:[#allocation5 + $0x10c] ss:$16 sps:$4 sm:$0xff]  }
  0xa1   :  { %1816 = vmatprep.subr.bf16.mxu1 %v4382_v33  ;;  %v4445_v33 = vld [vmem:[#allocation5 + $0x2e8] ss:$16 sps:$4 sm:$0xff]   ;;  %v4531_v28 = vld [vmem:[#allocation5 + $0x32c] ss:$16 sps:$4 sm:$0xff]  }
  0xa3   :  { %1774 = vmatpush1.bf16.msra.mxu0 %v4377_v34  ;;  %v4450_v34 = vld [vmem:[#allocation5 + $0xac] ss:$16 sps:$4 sm:$0xff]  }
  0xa4   :  { %1817 = vmatpush1.bf16.msra.mxu1 %v4380_v35  ;;  %1775 = vmatprep.subr.bf16.mxu0 %v4385_v36  ;;  %v4453_v35 = vld [vmem:[#allocation5 + $0x2cc] ss:$16 sps:$4 sm:$0xff]   ;;  %v4448_v36 = vld [vmem:[#allocation5 + $0xa8] ss:$16 sps:$4 sm:$0xff]  }
  0xa5   :  { %1818 = vmatprep.subr.bf16.mxu1 %v4388_v39  ;;  %v4459_v39 = vld [vmem:[#allocation5 + $0x2ac] ss:$16 sps:$4 sm:$0xff]  }
  0xa7   :  { %1776 = vmatpush1.bf16.msra.mxu0 %v4383_v41  ;;  %v4454_v41 = vld [vmem:[#allocation5 + $0x88] ss:$16 sps:$4 sm:$0xff]  }
  0xa8   :  { %1819 = vmatpush1.bf16.msra.mxu1 %v4386_v42  ;;  %1777 = vmatprep.subr.bf16.mxu0 %v4391_v45  ;;  %v4457_v42 = vld [vmem:[#allocation5 + $0x2a8] ss:$16 sps:$4 sm:$0xff]  }
  0xa9   :  { %1820 = vmatprep.subr.bf16.mxu1 %v4394_v46  ;;  %v4463_v45 = vld [vmem:[#allocation5 + $0x288] ss:$16 sps:$4 sm:$0xff]   ;;  %v4468_v46 = vld [vmem:[#allocation5 + $0x4c] ss:$16 sps:$4 sm:$0xff]  }
  0xab   :  { %1778 = vmatpush1.bf16.msra.mxu0 %v4389_v49  ;;  %v4466_v49 = vld [vmem:[#allocation5 + $0x48] ss:$16 sps:$4 sm:$0xff]  }
  0xac   :  { %1821 = vmatpush1.bf16.msra.mxu1 %v4392_v50  ;;  %1779 = vmatprep.subr.bf16.mxu0 %v4397_v51  ;;  %v4474_v50 = vld [vmem:[#allocation5 + $0x2c] ss:$16 sps:$4 sm:$0xff]  }
  0xad   :  { %3993 = vmatprep.subr.msk.bf16.mxu1 %vm1664_vm1, %v3990_v52  ;;  %v4477_v51 = vld [vmem:[#allocation5 + $0x24c] ss:$16 sps:$4 sm:$0xff]   ;;  %v4472_v52 = vld [vmem:[#allocation5 + $0x28] ss:$16 sps:$4 sm:$0xff]  }
  0xaf   :  { %1780 = vmatpush2.bf16.msra.mxu0 %v4395_v56  ;;  %v4480_v56 = vld [vmem:[#allocation5 + $0xc] ss:$16 sps:$4 sm:$0xff]  }
  0xb0   :  { %1825 = vmatpush2.bf16.msra.mxu1 %v1666_v57  ;;  %1781 = vmatprep.subr.bf16.mxu0 %v4402_v58  ;;  %v4483_v57 = vld [vmem:[#allocation5 + $0x22c] ss:$16 sps:$4 sm:$0xff]   ;;  %v4478_v58 = vld [vmem:[#allocation5 + $0x8] ss:$16 sps:$4 sm:$0xff]  }
  0xb1   :  { %1826 = vmatprep.subr.bf16.mxu1 %v4405_v59  ;;  %v4481_v59 = vld [vmem:[#allocation5 + $0x228] ss:$16 sps:$4 sm:$0xff]  }
  0xb3   :  { %1782 = vmatpush2.bf16.msra.mxu0 %v4400_v60  ;;  %v4486_v60 = vld [vmem:[#allocation5 + $0x1ec] ss:$16 sps:$4 sm:$0xff]  }
  0xb4   :  { %1827 = vmatpush2.bf16.msra.mxu1 %v4403_v61  ;;  %1783 = vmatprep.subr.bf16.mxu0 %v4408_v62  ;;  %v4489_v61 = vld [vmem:[#allocation5 + $0x20c] ss:$16 sps:$4 sm:$0xff]   ;;  %v4484_v62 = vld [vmem:[#allocation5 + $0x1e8] ss:$16 sps:$4 sm:$0xff]  }
  0xb5   :  { %1828 = vmatprep.subr.bf16.mxu1 %v4411_v63  ;;  %v4487_v63 = vld [vmem:[#allocation5 + $0x208] ss:$16 sps:$4 sm:$0xff]  }
  0xb7   :  { %1784 = vmatpush2.bf16.msra.mxu0 %v4406_v0  ;;  %v4492_v0 = vld [vmem:[#allocation5 + $0x1cc] ss:$16 sps:$4 sm:$0xff]  }
  0xb8   :  { %1829 = vmatpush2.bf16.msra.mxu1 %v4409_v1  ;;  %1785 = vmatprep.subr.bf16.mxu0 %v4414_v2  ;;  %v4495_v1 = vld [vmem:[#allocation5 + $0x3ec] ss:$16 sps:$4 sm:$0xff]   ;;  %v4490_v2 = vld [vmem:[#allocation5 + $0x1c8] ss:$16 sps:$4 sm:$0xff]  }
  0xb9   :  { %1830 = vmatprep.subr.bf16.mxu1 %v4417_v3  ;;  %v4493_v3 = vld [vmem:[#allocation5 + $0x3e8] ss:$16 sps:$4 sm:$0xff]  }
  0xbb   :  { %1786 = vmatpush2.bf16.msra.mxu0 %v4412_v4  ;;  %v4498_v4 = vld [vmem:[#allocation5 + $0x1ac] ss:$16 sps:$4 sm:$0xff]  }
  0xbc   :  { %1831 = vmatpush2.bf16.msra.mxu1 %v4415_v5  ;;  %1787 = vmatprep.subr.bf16.mxu0 %v4420_v6  ;;  %v4501_v5 = vld [vmem:[#allocation5 + $0x3cc] ss:$16 sps:$4 sm:$0xff]   ;;  %v4496_v6 = vld [vmem:[#allocation5 + $0x1a8] ss:$16 sps:$4 sm:$0xff]  }
  0xbd   :  { %1832 = vmatprep.subr.bf16.mxu1 %v4423_v7  ;;  %v4499_v7 = vld [vmem:[#allocation5 + $0x3c8] ss:$16 sps:$4 sm:$0xff]  }
  0xbf   :  { %1788 = vmatpush2.bf16.msra.mxu0 %v4418_v8  ;;  %v4504_v8 = vld [vmem:[#allocation5 + $0x18c] ss:$16 sps:$4 sm:$0xff]  }
  0xc0   :  { %1833 = vmatpush2.bf16.msra.mxu1 %v4421_v9  ;;  %1789 = vmatprep.subr.bf16.mxu0 %v4426_v10  ;;  %v4507_v9 = vld [vmem:[#allocation5 + $0x3ac] ss:$16 sps:$4 sm:$0xff]   ;;  %v4502_v10 = vld [vmem:[#allocation5 + $0x188] ss:$16 sps:$4 sm:$0xff]  }
  0xc1   :  { %1834 = vmatprep.subr.bf16.mxu1 %v4429_v11  ;;  %v4505_v11 = vld [vmem:[#allocation5 + $0x3a8] ss:$16 sps:$4 sm:$0xff]  }
  0xc3   :  { %1790 = vmatpush2.bf16.msra.mxu0 %v4424_v14  ;;  %v4510_v14 = vld [vmem:[#allocation5 + $0x16c] ss:$16 sps:$4 sm:$0xff]  }
  0xc4   :  { %1835 = vmatpush2.bf16.msra.mxu1 %v4427_v15  ;;  %1791 = vmatprep.subr.bf16.mxu0 %v4432_v16  ;;  %v4513_v15 = vld [vmem:[#allocation5 + $0x38c] ss:$16 sps:$4 sm:$0xff]   ;;  %v4508_v16 = vld [vmem:[#allocation5 + $0x168] ss:$16 sps:$4 sm:$0xff]  }
  0xc5   :  { %1836 = vmatprep.subr.bf16.mxu1 %v4435_v17  ;;  %v4511_v17 = vld [vmem:[#allocation5 + $0x388] ss:$16 sps:$4 sm:$0xff]  }
  0xc7   :  { %1792 = vmatpush2.bf16.msra.mxu0 %v4430_v18  ;;  %v4516_v18 = vld [vmem:[#allocation5 + $0x14c] ss:$16 sps:$4 sm:$0xff]  }
  0xc8   :  { %1837 = vmatpush2.bf16.msra.mxu1 %v4433_v19  ;;  %1793 = vmatprep.subr.bf16.mxu0 %v4438_v22  ;;  %v4519_v19 = vld [vmem:[#allocation5 + $0x36c] ss:$16 sps:$4 sm:$0xff]  }
  0xc9   :  { %1849 = vmatprep.subr.bf16.mxu1 %v4441_v23  ;;  %v4522_v22 = vld [vmem:[#allocation5 + $0x12c] ss:$16 sps:$4 sm:$0xff]  }
  0xca   :  { %v4525_v23 = vld [vmem:[#allocation5 + $0x34c] ss:$16 sps:$4 sm:$0xff]  }
  0xcb   :  { %1839 = vmatmul.mubr.bf16.vlgmr.msra.gmra.mxu1 %v5188_v26  ;;  %1794 = vmatpush2.bf16.msra.mxu0 %v4436_v24  ;;  %v4520_v24 = vld [vmem:[#allocation5 + $0x128] ss:$16 sps:$4 sm:$0xff]  }
  0xcc   :  { %1850 = vmatpush1.bf16.msra.mxu1 %v4439_v25  ;;  %1892 = vmatprep.subr.bf16.mxu0 %v4447_v30  ;;  %v4523_v25 = vld [vmem:[#allocation5 + $0x348] ss:$16 sps:$4 sm:$0xff]  }
  0xcd   :  { %1851 = vmatprep.subr.bf16.mxu1 %v4444_v29  ;;  %1881 = vmatprep.mubr.bf16.mxu1 %v5167_v53  ;;  %v4465_v53 = vld [vmem:[#allocation5 + $0x28c] ss:$16 sps:$4 sm:$0xff]   ;;  %v4526_v29 = vld [vmem:[#allocation5 + $0x108] ss:$16 sps:$4 sm:$0xff]  }
  0xce   :  { %1796 = vmatmul.mubr.bf16.vlgmr.msra.gmra.mxu0 %v5191_v31  ;;  %v4529_v30 = vld [vmem:[#allocation5 + $0x328] ss:$16 sps:$4 sm:$0xff]  }
  0xcf   :  { %1893 = vmatpush1.bf16.msra.mxu0 %v4445_v33  ;;  %1924 = vmatprep.mubr.bf16.mxu0 %v5169_v54  ;;  %v4469_v54 = vld [vmem:[#allocation5 + $0x268] ss:$16 sps:$4 sm:$0xff]   ;;  %v4537_v33 = vld [vmem:[#allocation5 + $0x4ec] ss:$16 sps:$4 sm:$0xff]  }
  0xd0   :  { %1852 = vmatpush1.bf16.msra.mxu1 %v4442_v32  ;;  %1894 = vmatprep.subr.bf16.mxu0 %v4453_v35  ;;  %v4534_v32 = vld [vmem:[#allocation5 + $0x30c] ss:$16 sps:$4 sm:$0xff]   ;;  %v4535_v35 = vld [vmem:[#allocation5 + $0x4e8] ss:$16 sps:$4 sm:$0xff]  }
  0xd1   :  { %1853 = vmatprep.subr.bf16.mxu1 %v4450_v34  ;;  %v4532_v34 = vld [vmem:[#allocation5 + $0x308] ss:$16 sps:$4 sm:$0xff]  }
  0xd3   :  { %1895 = vmatpush1.bf16.msra.mxu0 %v4451_v37  ;;  %v4543_v37 = vld [vmem:[#allocation5 + $0x6ec] ss:$16 sps:$4 sm:$0xff]  }
  0xd4   :  { %1854 = vmatpush1.bf16.msra.mxu1 %v4448_v36  ;;  %1896 = vmatprep.subr.bf16.mxu0 %v4459_v39  ;;  %v4540_v36 = vld [vmem:[#allocation5 + $0x4cc] ss:$16 sps:$4 sm:$0xff]   ;;  %v4541_v39 = vld [vmem:[#allocation5 + $0x6e8] ss:$16 sps:$4 sm:$0xff]  }
  0xd5   :  { %1855 = vmatprep.subr.bf16.mxu1 %v4456_v38  ;;  %v4538_v38 = vld [vmem:[#allocation5 + $0x4c8] ss:$16 sps:$4 sm:$0xff]  }
  0xd7   :  { %1897 = vmatpush1.bf16.msra.mxu0 %v4457_v42  ;;  %v4549_v42 = vld [vmem:[#allocation5 + $0x6cc] ss:$16 sps:$4 sm:$0xff]  }
  0xd8   :  { %1856 = vmatpush1.bf16.msra.mxu1 %v4454_v41  ;;  %1898 = vmatprep.subr.bf16.mxu0 %v4465_v53  ;;  %v4546_v41 = vld [vmem:[#allocation5 + $0x4ac] ss:$16 sps:$4 sm:$0xff]   ;;  %v4547_v53 = vld [vmem:[#allocation5 + $0x6c8] ss:$16 sps:$4 sm:$0xff]  }
  0xd9   :  { %1857 = vmatprep.subr.bf16.mxu1 %v4462_v43  ;;  %v4544_v43 = vld [vmem:[#allocation5 + $0x4a8] ss:$16 sps:$4 sm:$0xff]  }
  0xdb   :  { %1899 = vmatpush1.bf16.msra.mxu0 %v4463_v45  ;;  %v4555_v45 = vld [vmem:[#allocation5 + $0x6ac] ss:$16 sps:$4 sm:$0xff]  }
  0xdc   :  { %1858 = vmatpush1.bf16.msra.mxu1 %v4460_v44  ;;  %1900 = vmatprep.subr.bf16.mxu0 %v4471_v48  ;;  %v4552_v44 = vld [vmem:[#allocation5 + $0x48c] ss:$16 sps:$4 sm:$0xff]  }
  0xdd   :  { %1859 = vmatprep.subr.bf16.mxu1 %v4468_v46  ;;  %v4550_v46 = vld [vmem:[#allocation5 + $0x488] ss:$16 sps:$4 sm:$0xff]   ;;  %v4558_v48 = vld [vmem:[#allocation5 + $0x46c] ss:$16 sps:$4 sm:$0xff]  }
  0xdf   :  { %1901 = vmatpush1.bf16.msra.mxu0 %v4469_v54  ;;  %v4559_v54 = vld [vmem:[#allocation5 + $0x688] ss:$16 sps:$4 sm:$0xff]  }
  0xe0   :  { %1860 = vmatpush1.bf16.msra.mxu1 %v4466_v49  ;;  %1902 = vmatprep.subr.bf16.mxu0 %v4477_v51  ;;  %v4561_v49 = vld [vmem:[#allocation5 + $0x68c] ss:$16 sps:$4 sm:$0xff]   ;;  %v4562_v51 = vld [vmem:[#allocation5 + $0x448] ss:$16 sps:$4 sm:$0xff]  }
  0xe1   :  { %1861 = vmatprep.subr.bf16.mxu1 %v4474_v50  ;;  %v4567_v50 = vld [vmem:[#allocation5 + $0x66c] ss:$16 sps:$4 sm:$0xff]  }
  0xe3   :  { %1903 = vmatpush1.bf16.msra.mxu0 %v4475_v55  ;;  %v4570_v55 = vld [vmem:[#allocation5 + $0x42c] ss:$16 sps:$4 sm:$0xff]  }
  0xe4   :  { %1862 = vmatpush1.bf16.msra.mxu1 %v4472_v52  ;;  %1904 = vmatprep.subr.bf16.mxu0 %v4483_v57  ;;  %v4565_v52 = vld [vmem:[#allocation5 + $0x668] ss:$16 sps:$4 sm:$0xff]  }
  0xe5   :  { %1863 = vmatprep.subr.bf16.mxu1 %v4480_v56  ;;  %v4573_v56 = vld [vmem:[#allocation5 + $0x64c] ss:$16 sps:$4 sm:$0xff]   ;;  %v4571_v57 = vld [vmem:[#allocation5 + $0x648] ss:$16 sps:$4 sm:$0xff]  }
  0xe7   :  { %1905 = vmatpush1.bf16.msra.mxu0 %v4481_v59  ;;  %v4579_v59 = vld [vmem:[#allocation5 + $0x62c] ss:$16 sps:$4 sm:$0xff]  }
  0xe8   :  { %1864 = vmatpush1.bf16.msra.mxu1 %v4478_v58  ;;  %1906 = vmatprep.subr.bf16.mxu0 %v4489_v61  ;;  %v4576_v58 = vld [vmem:[#allocation5 + $0x40c] ss:$16 sps:$4 sm:$0xff]   ;;  %v4577_v61 = vld [vmem:[#allocation5 + $0x628] ss:$16 sps:$4 sm:$0xff]  }
  0xe9   :  { %1865 = vmatprep.subr.bf16.mxu1 %v4486_v60  ;;  %v4574_v60 = vld [vmem:[#allocation5 + $0x408] ss:$16 sps:$4 sm:$0xff]  }
  0xeb   :  { %1907 = vmatpush1.bf16.msra.mxu0 %v4487_v63  ;;  %v4585_v63 = vld [vmem:[#allocation5 + $0x60c] ss:$16 sps:$4 sm:$0xff]  }
  0xec   :  { %1866 = vmatpush2.bf16.msra.mxu1 %v4484_v62  ;;  %1908 = vmatprep.subr.bf16.mxu0 %v4495_v1  ;;  %v4582_v62 = vld [vmem:[#allocation5 + $0x5ec] ss:$16 sps:$4 sm:$0xff]   ;;  %v4583_v1 = vld [vmem:[#allocation5 + $0x608] ss:$16 sps:$4 sm:$0xff]  }
  0xed   :  { %1867 = vmatprep.subr.bf16.mxu1 %v4492_v0  ;;  %v4580_v0 = vld [vmem:[#allocation5 + $0x5e8] ss:$16 sps:$4 sm:$0xff]  }
  0xef   :  { %1909 = vmatpush2.bf16.msra.mxu0 %v4493_v3  ;;  %v4588_v3 = vld [vmem:[#allocation5 + $0x5cc] ss:$16 sps:$4 sm:$0xff]  }
  0xf0   :  { %1868 = vmatpush2.bf16.msra.mxu1 %v4490_v2  ;;  %1910 = vmatprep.subr.bf16.mxu0 %v4501_v5  ;;  %v387_v2 = vld [vmem:[#allocation5 + $0x7c8] sm:$0xff] }
  0xf1   :  { %1869 = vmatprep.subr.bf16.mxu1 %v4498_v4  ;;  %v3992_v4 = vcombine.high %v387_v2, %v387_v2  ;;  %v3991_v5 = vcombine.low %v387_v2, %v387_v2  ;;  %v4657_v2 = vld [vmem:[#allocation8 + $0x1a0] ss:$16 sps:$4 sm:$0xff]  }
  0xf3   :  { %1911 = vmatpush2.bf16.msra.mxu0 %v4499_v7  ;;  %v4593_v7 = vld [vmem:[#allocation5 + $0x5ac] ss:$16 sps:$4 sm:$0xff]  }
  0xf4   :  { %1870 = vmatpush2.bf16.msra.mxu1 %v4496_v6  ;;  %1912 = vmatprep.subr.bf16.mxu0 %v4507_v9  ;;  %v4586_v6 = vld [vmem:[#allocation5 + $0x5c8] ss:$16 sps:$4 sm:$0xff]   ;;  %v1672_v9 = vsel %vm1664_vm1, %v3991_v5, 0 }
  0xf5   :  { %1871 = vmatprep.subr.bf16.mxu1 %v4504_v8  ;;  %v4596_v8 = vld [vmem:[#allocation5 + $0x7ac] ss:$16 sps:$4 sm:$0xff]   ;;  %v4746_v5 = vld [vmem:[#allocation8 + $0x204] ss:$16 sps:$4 sm:$0xff]  }
  0xf7   :  { %1913 = vmatpush2.bf16.msra.mxu0 %v4505_v11  ;;  %v4594_v11 = vld [vmem:[#allocation5 + $0x7a8] ss:$16 sps:$4 sm:$0xff]  }
  0xf8   :  { %1872 = vmatpush2.bf16.msra.mxu1 %v4502_v10  ;;  %1914 = vmatprep.subr.bf16.mxu0 %v4513_v15  ;;  %v4591_v10 = vld [vmem:[#allocation5 + $0x5a8] ss:$16 sps:$4 sm:$0xff]   ;;  %v4602_v15 = vld [vmem:[#allocation5 + $0x78c] ss:$16 sps:$4 sm:$0xff]  }
  0xf9   :  { %1873 = vmatprep.subr.bf16.mxu1 %v4510_v14  ;;  %v4599_v14 = vld [vmem:[#allocation5 + $0x58c] ss:$16 sps:$4 sm:$0xff]  }
  0xfb   :  { %1915 = vmatpush2.bf16.msra.mxu0 %v4511_v17  ;;  %v4600_v17 = vld [vmem:[#allocation5 + $0x788] ss:$16 sps:$4 sm:$0xff]  }
  0xfc   :  { %1874 = vmatpush2.bf16.msra.mxu1 %v4508_v16  ;;  %1916 = vmatprep.subr.bf16.mxu0 %v4519_v19  ;;  %v4597_v16 = vld [vmem:[#allocation5 + $0x588] ss:$16 sps:$4 sm:$0xff]   ;;  %v4608_v19 = vld [vmem:[#allocation5 + $0x76c] ss:$16 sps:$4 sm:$0xff]  }
  0xfd   :  { %1875 = vmatprep.subr.bf16.mxu1 %v4516_v18  ;;  %v4605_v18 = vld [vmem:[#allocation5 + $0x56c] ss:$16 sps:$4 sm:$0xff]  }
  0xff   :  { %1917 = vmatpush2.bf16.msra.mxu0 %v4517_v21  ;;  %v4606_v21 = vld [vmem:[#allocation5 + $0x768] ss:$16 sps:$4 sm:$0xff]  }
 0x100   :  { %1876 = vmatpush2.bf16.msra.mxu1 %v4514_v20  ;;  %1918 = vmatprep.subr.bf16.mxu0 %v4525_v23  ;;  %v4603_v20 = vld [vmem:[#allocation5 + $0x568] ss:$16 sps:$4 sm:$0xff]   ;;  %v4614_v23 = vld [vmem:[#allocation5 + $0x74c] ss:$16 sps:$4 sm:$0xff]  }
 0x101   :  { %1877 = vmatprep.subr.bf16.mxu1 %v4522_v22  ;;  %v4611_v22 = vld [vmem:[#allocation5 + $0x54c] ss:$16 sps:$4 sm:$0xff]  }
 0x103   :  { %1919 = vmatpush2.bf16.msra.mxu0 %v4523_v25  ;;  %v4612_v25 = vld [vmem:[#allocation5 + $0x748] ss:$16 sps:$4 sm:$0xff]  }
 0x104   :  { %1878 = vmatpush2.bf16.msra.mxu1 %v4520_v24  ;;  %1920 = vmatprep.subr.bf16.mxu0 %v4531_v28  ;;  %v4609_v24 = vld [vmem:[#allocation5 + $0x548] ss:$16 sps:$4 sm:$0xff]   ;;  %v4620_v28 = vld [vmem:[#allocation5 + $0x72c] ss:$16 sps:$4 sm:$0xff]  }
 0x105   :  { %1879 = vmatprep.subr.bf16.mxu1 %v4528_v27  ;;  %v4617_v27 = vld [vmem:[#allocation5 + $0x52c] ss:$16 sps:$4 sm:$0xff]  }
 0x107   :  { %1921 = vmatpush2.bf16.msra.mxu0 %v4529_v30  ;;  %v4618_v30 = vld [vmem:[#allocation5 + $0x728] ss:$16 sps:$4 sm:$0xff]  }
 0x108   :  { %1880 = vmatpush2.bf16.msra.mxu1 %v4526_v29  ;;  %1922 = vmatprep.subr.bf16.mxu0 %v4534_v32  ;;  %v4615_v29 = vld [vmem:[#allocation5 + $0x528] ss:$16 sps:$4 sm:$0xff]   ;;  %v4623_v32 = vld [vmem:[#allocation5 + $0x50c] ss:$16 sps:$4 sm:$0xff]  }
 0x109   :  { %1935 = vmatprep.subr.bf16.mxu1 %v4537_v33  ;;  %v4626_v33 = vld [vmem:[#allocation5 + $0x70c] ss:$16 sps:$4 sm:$0xff]  }
 0x10b   :  { %1882 = vmatmul.mubr.bf16.vlgmr.msra.gmra.mxu1 %v5173_v12  ;;  %1923 = vmatpush2.bf16.msra.mxu0 %v4532_v34  ;;  %v4553_v12 = vld [vmem:[#allocation5 + $0x6a8] ss:$16 sps:$4 sm:$0xff]  }
 0x10c   :  { %1936 = vmatpush1.bf16.msra.mxu1 %v4535_v35  ;;  %1978 = vmatprep.subr.bf16.mxu0 %v4543_v37  ;;  %v4621_v34 = vld [vmem:[#allocation5 + $0x508] ss:$16 sps:$4 sm:$0xff]   ;;  %v4627_v37 = vld [vmem:[#allocation8 + $0xe0] ss:$16 sps:$4 sm:$0xff]  }
 0x10d   :  { %1937 = vmatprep.subr.bf16.mxu1 %v4540_v36  ;;  %1967 = vmatprep.mubr.bf16.mxu1 %v5183_v47  ;;  %v4556_v47 = vld [vmem:[#allocation5 + $0x468] ss:$16 sps:$4 sm:$0xff]  }
 0x10e   :  { %1925 = vmatmul.mubr.bf16.vlgmr.msra.gmra.mxu0 %v5175_v13  ;;  %v4564_v13 = vld [vmem:[#allocation5 + $0x44c] ss:$16 sps:$4 sm:$0xff]   ;;  %v4624_v35 = vld [vmem:[#allocation5 + $0x708] ss:$16 sps:$4 sm:$0xff]  }
 0x10f   :  { %1979 = vmatpush1.bf16.msra.mxu0 %v4541_v39  ;;  %3996 = vmatprep.mubr.msk.bf16.mxu0 %vm1660_vm0, %v5179_v40  ;;  %v4568_v40 = vld [vmem:[#allocation5 + $0x428] ss:$16 sps:$4 sm:$0xff]   ;;  %v4630_v39 = vld [vmem:[#allocation8 + $0xc0] ss:$16 sps:$4 sm:$0xff]  }
 0x110   :  { %1938 = vmatpush1.bf16.msra.mxu1 %v4538_v38  ;;  %1980 = vmatprep.subr.bf16.mxu0 %v4549_v42  ;;  %v4629_v36 = vld [vmem:[#allocation8 + $0xe4] ss:$16 sps:$4 sm:$0xff]   ;;  %v4633_v42 = vld [vmem:[#allocation8 + $0xa0] ss:$16 sps:$4 sm:$0xff]  }
 0x111   :  { %1939 = vmatprep.subr.bf16.mxu1 %v4546_v41  ;;  %v4632_v38 = vld [vmem:[#allocation8 + $0xc4] ss:$16 sps:$4 sm:$0xff]  }
 0x112   :  { %v4635_v41 = vld [vmem:[#allocation8 + $0xa4] ss:$16 sps:$4 sm:$0xff]  }
 0x113   :  { %1981 = vmatpush1.bf16.msra.mxu0 %v4547_v53  ;;  %v4636_v53 = vld [vmem:[#allocation8 + $0x80] ss:$16 sps:$4 sm:$0xff]  }
 0x114   :  { %1940 = vmatpush1.bf16.msra.mxu1 %v4544_v43  ;;  %1982 = vmatprep.subr.bf16.mxu0 %v4555_v45  ;;  %v4638_v43 = vld [vmem:[#allocation8 + $0x84] ss:$16 sps:$4 sm:$0xff]   ;;  %v4639_v45 = vld [vmem:[#allocation8 + $0x60] ss:$16 sps:$4 sm:$0xff]  }
 0x115   :  { %1941 = vmatprep.subr.bf16.mxu1 %v4552_v44  ;;  %v4641_v44 = vld [vmem:[#allocation8 + $0x64] ss:$16 sps:$4 sm:$0xff]  }
 0x117   :  { %1983 = vmatpush1.bf16.msra.mxu0 %v4553_v12  ;;  %v4720_v12 = vld [vmem:[#allocation8 + $0x2e0] ss:$16 sps:$4 sm:$0xff]  }
 0x118   :  { %1942 = vmatpush1.bf16.msra.mxu1 %v4550_v46  ;;  %1984 = vmatprep.subr.bf16.mxu0 %v4561_v49  ;;  %v4644_v46 = vld [vmem:[#allocation8 + $0x44] ss:$16 sps:$4 sm:$0xff]   ;;  %v4726_v49 = vld [vmem:[#allocation8 + $0x2c0] ss:$16 sps:$4 sm:$0xff]  }
 0x119   :  { %1943 = vmatprep.subr.bf16.mxu1 %v4558_v48  ;;  %v4647_v48 = vld [vmem:[#allocation8 + $0x24] ss:$16 sps:$4 sm:$0xff]  }
 0x11b   :  { %1985 = vmatpush1.bf16.msra.mxu0 %v4559_v54  ;;  %v4645_v54 = vld [vmem:[#allocation8 + $0x20] ss:$16 sps:$4 sm:$0xff]  }
 0x11c   :  { %1944 = vmatpush1.bf16.msra.mxu1 %v4556_v47  ;;  %1986 = vmatprep.subr.bf16.mxu0 %v4567_v50  ;;  %v4728_v47 = vld [vmem:[#allocation8 + $0x2c4] ss:$16 sps:$4 sm:$0xff]   ;;  %v4729_v50 = vld [vmem:[#allocation8 + $0x2a0] ss:$16 sps:$4 sm:$0xff]  }
 0x11d   :  { %1945 = vmatprep.subr.bf16.mxu1 %v4564_v13  ;;  %v4650_v13 = vld [vmem:[#allocation8 + $0x4] ss:$16 sps:$4 sm:$0xff]  }
 0x11f   :  { %1987 = vmatpush1.bf16.msra.mxu0 %v4565_v52  ;;  %v4734_v52 = vld [vmem:[#allocation8 + $0x284] ss:$16 sps:$4 sm:$0xff]  }
 0x120   :  { %1946 = vmatpush1.bf16.msra.mxu1 %v4562_v51  ;;  %1988 = vmatprep.subr.bf16.mxu0 %v4573_v56  ;;  %v4731_v51 = vld [vmem:[#allocation8 + $0x2a4] ss:$16 sps:$4 sm:$0xff]  }
 0x121   :  { %1947 = vmatprep.subr.bf16.mxu1 %v4570_v55  ;;  %v4648_v55 = vld [vmem:[#allocation8] ss:$16 sps:$4 sm:$0xff]   ;;  %v4653_v56 = vld [vmem:[#allocation8 + $0x1e4] ss:$16 sps:$4 sm:$0xff]  }
 0x123   :  { %1989 = vmatpush1.bf16.msra.mxu0 %v4571_v57  ;;  %v4737_v57 = vld [vmem:[#allocation8 + $0x264] ss:$16 sps:$4 sm:$0xff]  }
 0x124   :  { %1948 = vmatpush1.bf16.msra.mxu1 %v4568_v40  ;;  %1990 = vmatprep.subr.bf16.mxu0 %v4579_v59  ;;  %v4732_v40 = vld [vmem:[#allocation8 + $0x280] ss:$16 sps:$4 sm:$0xff]   ;;  %v4656_v59 = vld [vmem:[#allocation8 + $0x1c4] ss:$16 sps:$4 sm:$0xff]  }
 0x125   :  { %1949 = vmatprep.subr.bf16.mxu1 %v4576_v58  ;;  %v4651_v58 = vld [vmem:[#allocation8 + $0x1e0] ss:$16 sps:$4 sm:$0xff]  }
 0x127   :  { %1991 = vmatpush1.bf16.msra.mxu0 %v4577_v61  ;;  %v4740_v61 = vld [vmem:[#allocation8 + $0x244] ss:$16 sps:$4 sm:$0xff]  }
 0x128   :  { %1950 = vmatpush1.bf16.msra.mxu1 %v4574_v60  ;;  %1992 = vmatprep.subr.bf16.mxu0 %v4585_v63  ;;  %v4735_v60 = vld [vmem:[#allocation8 + $0x260] ss:$16 sps:$4 sm:$0xff]   ;;  %v4659_v63 = vld [vmem:[#allocation8 + $0x1a4] ss:$16 sps:$4 sm:$0xff]  }
 0x129   :  { %1951 = vmatprep.subr.bf16.mxu1 %v4582_v62  ;;  %v4654_v62 = vld [vmem:[#allocation8 + $0x1c0] ss:$16 sps:$4 sm:$0xff]  }
 0x12b   :  { %1993 = vmatpush1.bf16.msra.mxu0 %v4583_v1  ;;  %v4743_v1 = vld [vmem:[#allocation8 + $0x224] ss:$16 sps:$4 sm:$0xff]  }
 0x12c   :  { %1952 = vmatpush2.bf16.msra.mxu1 %v4580_v0  ;;  %3995 = vmatprep.subr.msk.bf16.mxu0 %vm1664_vm1, %v3992_v4  ;;  %v4738_v0 = vld [vmem:[#allocation8 + $0x240] ss:$16 sps:$4 sm:$0xff]  }
 0x12d   :  { %1953 = vmatprep.subr.bf16.mxu1 %v4588_v3  ;;  %v4662_v3 = vld [vmem:[#allocation8 + $0x184] ss:$16 sps:$4 sm:$0xff]   ;;  %v4741_v4 = vld [vmem:[#allocation8 + $0x220] ss:$16 sps:$4 sm:$0xff]  }
 0x12f   :  { %1997 = vmatpush2.bf16.msra.mxu0 %v1672_v9  ;;  %v4749_v9 = vld [vmem:[#allocation8 + $0x3e4] ss:$16 sps:$4 sm:$0xff]  }
 0x130   :  { %1954 = vmatpush2.bf16.msra.mxu1 %v4586_v6  ;;  %1998 = vmatprep.subr.bf16.mxu0 %v4596_v8  ;;  %v4660_v6 = vld [vmem:[#allocation8 + $0x180] ss:$16 sps:$4 sm:$0xff]  }
 0x131   :  { %1955 = vmatprep.subr.bf16.mxu1 %v4593_v7  ;;  %v4665_v7 = vld [vmem:[#allocation8 + $0x164] ss:$16 sps:$4 sm:$0xff]   ;;  %v4744_v8 = vld [vmem:[#allocation8 + $0x200] ss:$16 sps:$4 sm:$0xff]  }
 0x133   :  { %1999 = vmatpush2.bf16.msra.mxu0 %v4594_v11  ;;  %v4668_v11 = vld [vmem:[#allocation8 + $0x144] ss:$16 sps:$4 sm:$0xff]  }
 0x134   :  { %1956 = vmatpush2.bf16.msra.mxu1 %v4591_v10  ;;  %2000 = vmatprep.subr.bf16.mxu0 %v4602_v15  ;;  %v4663_v10 = vld [vmem:[#allocation8 + $0x160] ss:$16 sps:$4 sm:$0xff]   ;;  %v4752_v15 = vld [vmem:[#allocation8 + $0x3c4] ss:$16 sps:$4 sm:$0xff]  }
 0x135   :  { %1957 = vmatprep.subr.bf16.mxu1 %v4599_v14  ;;  %v4747_v14 = vld [vmem:[#allocation8 + $0x3e0] ss:$16 sps:$4 sm:$0xff]  }
 0x137   :  { %2001 = vmatpush2.bf16.msra.mxu0 %v4600_v17  ;;  %v4666_v17 = vld [vmem:[#allocation8 + $0x140] ss:$16 sps:$4 sm:$0xff]  }
 0x138   :  { %1958 = vmatpush2.bf16.msra.mxu1 %v4597_v16  ;;  %2002 = vmatprep.subr.bf16.mxu0 %v4608_v19  ;;  %v390_v16 = vlaneseq  ;;  %v4750_v19 = vld [vmem:[#allocation8 + $0x3c0] ss:$16 sps:$4 sm:$0xff]  }
 0x139   :  { %1959 = vmatprep.subr.bf16.mxu1 %v4605_v18  ;;  %v4671_v18 = vld [vmem:[#allocation8 + $0x124] ss:$16 sps:$4 sm:$0xff]  }
 0x13b   :  { %2003 = vmatpush2.bf16.msra.mxu0 %v4606_v21  ;;  %v4755_v21 = vld [vmem:[#allocation8 + $0x3a4] ss:$16 sps:$4 sm:$0xff]  }
 0x13c   :  { %1960 = vmatpush2.bf16.msra.mxu1 %v4603_v20  ;;  %2004 = vmatprep.subr.bf16.mxu0 %v4614_v23  ;;  %v4669_v23 = vld [vmem:[#allocation8 + $0x120] ss:$16 sps:$4 sm:$0xff]  }
 0x13d   :  { %1961 = vmatprep.subr.bf16.mxu1 %v4611_v22  ;;  %v5205_v22 = vshrl.u32 %v390_v16, 7 }
 0x13f   :  { %2005 = vmatpush2.bf16.msra.mxu0 %v4612_v25  ;;  %v4674_v25 = vld [vmem:[#allocation8 + $0x104] ss:$16 sps:$4 sm:$0xff]  }
 0x140   :  { %1962 = vmatpush2.bf16.msra.mxu1 %v4609_v24  ;;  %2006 = vmatprep.subr.bf16.mxu0 %v4620_v28 }
 0x141   :  { %1963 = vmatprep.subr.bf16.mxu1 %v4617_v27  ;;  %v4753_v27 = vld [vmem:[#allocation8 + $0x3a0] ss:$16 sps:$4 sm:$0xff]  }
 0x143   :  { %2007 = vmatpush2.bf16.msra.mxu0 %v4618_v30  ;;  %v5208_v30 = vsub.s32 0, %v5205_v22 }
 0x144   :  { %1964 = vmatpush2.bf16.msra.mxu1 %v4615_v29  ;;  %2008 = vmatprep.subr.bf16.mxu0 %v4626_v33  ;;  %v4758_v29 = vld [vmem:[#allocation8 + $0x384] ss:$16 sps:$4 sm:$0xff]   ;;  %v4672_v33 = vld [vmem:[#allocation8 + $0x100] ss:$16 sps:$4 sm:$0xff]  }
 0x145   :  { %1965 = vmatprep.subr.bf16.mxu1 %v4623_v32  ;;  %v5211_v32 = vsub.s32 1, %v5205_v22 }
 0x147   :  { %2009 = vmatpush2.bf16.msra.mxu0 %v4624_v35 }
 0x148   :  { %1966 = vmatpush2.bf16.msra.mxu1 %v4621_v34  ;;  %2839 = vmatprep.subr.bf16.mxu0 %v4629_v36  ;;  %v5213_v34 = vld [vmem:[#allocation7] sm:$0xf] }
 0x149   :  { %v4677_v36 = vld [vmem:[#allocation8 + $0xec] ss:$16 sps:$4 sm:$0xff]  }
 0x14a   :  { %2011 = vmatmul.mubr.bf16.vlgmr.msra.gmra.mxu0 %v5188_v26  ;;  %v4642_v26 = vld [vmem:[#allocation8 + $0x40] ss:$16 sps:$4 sm:$0xff]  }
 0x14b   :  { %1968 = vmatmul.mubr.bf16.vlgmr.msra.gmra.mxu1 %v5191_v31  ;;  %2840 = vmatpush1.bf16.msra.mxu0 %v4627_v37  ;;  %v4722_v31 = vld [vmem:[#allocation8 + $0x2e4] ss:$16 sps:$4 sm:$0xff]   ;;  %v4756_v37 = vld [vmem:[#allocation8 + $0x380] ss:$16 sps:$4 sm:$0xff]  }
 0x14c   :  { %2841 = vmatprep.subr.bf16.mxu0 %v4632_v38  ;;  %2882 = vmatprep.subr.bf16.mxu1 %v4722_v31 }
 0x14d   :  { %2883 = vmatpush1.bf16.msra.mxu1 %v4720_v12  ;;  %v4759_v12 = vld [vmem:[#allocation8 + $0x360] ss:$16 sps:$4 sm:$0xff]  }
 0x14e   :  { %2884 = vmatprep.subr.bf16.mxu1 %v4728_v47  ;;  %v1711_v24 = vpop.f32.mrf.mxu0 }
 0x14f   :  { %2842 = vmatpush1.bf16.msra.mxu0 %v4630_v39  ;;  %v1754_v20 = vpop.f32.mrf.mxu1  ;;  %v393_v39 = vrot.slane %v5213_v34, %v5208_v30 }
 0x150   :  { %2843 = vmatprep.subr.bf16.mxu0 %v4635_v41  ;;  %v1713_v35 = vpop.f32.mrf.mxu0  ;;  %v397_v41 = vrot.slane %v5213_v34, %v5211_v32 }
 0x151   :  { %2885 = vmatpush1.bf16.msra.mxu1 %v4726_v49  ;;  %v1756_v28 = vpop.f32.mrf.mxu1  ;;  %v4764_v49 = vld [vmem:[#allocation8 + $0x344] ss:$16 sps:$4 sm:$0xff]  }
 0x152   :  { %2886 = vmatprep.subr.bf16.mxu1 %v4731_v51 }
 0x153   :  { %2844 = vmatpush1.bf16.msra.mxu0 %v4633_v42  ;;  %v1758_v38 = vpop.f32.mrf.mxu1  ;;  %v1715_v42 = vpop.f32.mrf.mxu0 }
 0x154   :  { %2845 = vmatprep.subr.bf16.mxu0 %v4638_v43 }
 0x155   :  { %2887 = vmatpush1.bf16.msra.mxu1 %v4729_v50  ;;  %v1760_v43 = vpop.f32.mrf.mxu1  ;;  %v1717_v31 = vpop.f32.mrf.mxu0  ;;  %v4762_v50 = vld [vmem:[#allocation8 + $0x340] ss:$16 sps:$4 sm:$0xff]  }
 0x156   :  { %2888 = vmatprep.subr.bf16.mxu1 %v4734_v52  ;;  %v1718_v51 = vadd.f32 %v1717_v31, %v397_v41  ;;  %v4710_v31 = vld [vmem:[#allocation8 + $0x18c] ss:$16 sps:$4 sm:$0xff]  }
 0x157   :  { %2846 = vmatpush1.bf16.msra.mxu0 %v4636_v53  ;;  %v4761_v53 = vld [vmem:[#allocation8 + $0x364] ss:$16 sps:$4 sm:$0xff]  }
 0x158   :  { %2847 = vmatprep.subr.bf16.mxu0 %v4641_v44  ;;  %v1712_v44 = vadd.f32 %v1711_v24, %v393_v39  ;;  %v4678_v24 = vld [vmem:[#allocation8 + $0xc8] ss:$16 sps:$4 sm:$0xff]  }
 0x159   :  { %2889 = vmatpush1.bf16.msra.mxu1 %v4732_v40 }
 0x15a   :  { %2890 = vmatprep.subr.bf16.mxu1 %v4737_v57  ;;  %v1755_v47 = vadd.f32 %v1754_v20, %v1712_v44  ;;  %v4675_v20 = vld [vmem:[#allocation8 + $0xe8] ss:$16 sps:$4 sm:$0xff]   ;;  %v4704_v44 = vld [vmem:[#allocation8 + $0x1cc] ss:$16 sps:$4 sm:$0xff]  }
 0x15b   :  { %2848 = vmatpush1.bf16.msra.mxu0 %v4639_v45  ;;  %v1714_v45 = vadd.f32 %v1713_v35, %v397_v41  ;;  %v4687_v35 = vld [vmem:[#allocation8 + $0x68] ss:$16 sps:$4 sm:$0xff]   ;;  %v4698_v41 = vld [vmem:[#allocation8 + $0xc] ss:$16 sps:$4 sm:$0xff]  }
 0x15c   :  { %2849 = vmatprep.subr.bf16.mxu0 %v4644_v46 }
 0x15d   :  { %2891 = vmatpush1.bf16.msra.mxu1 %v4735_v60 }
 0x15e   :  { %2892 = vmatprep.subr.bf16.mxu1 %v4740_v61  ;;  %v4765_v61 = vld [vmem:[#allocation8 + $0x320] ss:$16 sps:$4 sm:$0xff]  }
 0x15f   :  { %2850 = vmatpush1.bf16.msra.mxu0 %v4642_v26  ;;  %v1716_v26 = vadd.f32 %v1715_v42, %v393_v39  ;;  %v4693_v39 = vld [vmem:[#allocation8 + $0x28] ss:$16 sps:$4 sm:$0xff]  }
 0x160   :  { %2851 = vmatprep.subr.bf16.mxu0 %v4647_v48  ;;  %v4696_v42 = vld [vmem:[#allocation8 + $0x8] ss:$16 sps:$4 sm:$0xff]  }
 0x161   :  { %2893 = vmatpush1.bf16.msra.mxu1 %v4738_v0 }
 0x162   :  { %2894 = vmatprep.subr.bf16.mxu1 %v4743_v1 }
 0x163   :  { %2852 = vmatpush1.bf16.msra.mxu0 %v4645_v54  ;;  %v1757_v54 = vadd.f32 %v1756_v28, %v1714_v45  ;;  %v4686_v28 = vld [vmem:[#allocation8 + $0x8c] ss:$16 sps:$4 sm:$0xff]   ;;  %v4702_v45 = vld [vmem:[#allocation8 + $0x1c8] ss:$16 sps:$4 sm:$0xff]  }
 0x164   :  { %2853 = vmatprep.subr.bf16.mxu0 %v4650_v13 }
 0x165   :  { %2895 = vmatpush1.bf16.msra.mxu1 %v4741_v4  ;;  %v4768_v4 = vld [vmem:[#allocation8 + $0x300] ss:$16 sps:$4 sm:$0xff]  }
 0x166   :  { %2896 = vmatprep.subr.bf16.mxu1 %v4746_v5  ;;  %v4770_v5 = vld [vmem:[#allocation8 + $0x304] ss:$16 sps:$4 sm:$0xff]  }
 0x167   :  { %2854 = vmatpush1.bf16.msra.mxu0 %v4648_v55  ;;  %v1759_v55 = vadd.f32 %v1758_v38, %v1716_v26  ;;  %v4695_v38 = vld [vmem:[#allocation8 + $0x2c] ss:$16 sps:$4 sm:$0xff]   ;;  %v4708_v26 = vld [vmem:[#allocation8 + $0x188] ss:$16 sps:$4 sm:$0xff]  }
 0x168   :  { %2855 = vmatprep.subr.bf16.mxu0 %v4653_v56 }
 0x169   :  { %2897 = vmatpush1.bf16.msra.mxu1 %v4744_v8 }
 0x16a   :  { %2898 = vmatprep.subr.bf16.mxu1 %v4749_v9 }
 0x16b   :  { %2856 = vmatpush2.bf16.msra.mxu0 %v4651_v58  ;;  %v4767_v58 = vld [vmem:[#allocation8 + $0x324] ss:$16 sps:$4 sm:$0xff]  }
 0x16c   :  { %2857 = vmatprep.subr.bf16.mxu0 %v4656_v59 }
 0x16d   :  { %2899 = vmatpush2.bf16.msra.mxu1 %v4747_v14  ;;  %v4773_v14 = vld [vmem:[#allocation8 + $0x2ec] ss:$16 sps:$4 sm:$0xff]  }
 0x16e   :  { %2900 = vmatprep.subr.bf16.mxu1 %v4752_v15 }
 0x16f   :  { %2858 = vmatpush2.bf16.msra.mxu0 %v4654_v62  ;;  %v1761_v62 = vadd.f32 %v1760_v43, %v1718_v51  ;;  %v4701_v43 = vld [vmem:[#allocation8 + $0x1ec] ss:$16 sps:$4 sm:$0xff]  }
 0x170   :  { %2859 = vmatprep.subr.bf16.mxu0 %v4659_v63  ;;  %v4725_v51 = vld [vmem:[#allocation8 + $0x10c] ss:$16 sps:$4 sm:$0xff]  }
 0x171   :  { %2901 = vmatpush2.bf16.msra.mxu1 %v4750_v19 }
 0x172   :  { %2902 = vmatprep.subr.bf16.mxu1 %v4755_v21 }
 0x173   :  { %2860 = vmatpush2.bf16.msra.mxu0 %v4657_v2 }
 0x174   :  { %2861 = vmatprep.subr.bf16.mxu0 %v4662_v3 }
 0x175   :  { %2903 = vmatpush2.bf16.msra.mxu1 %v4753_v27  ;;  %v4681_v27 = vld [vmem:[#allocation8 + $0xa8] ss:$16 sps:$4 sm:$0xff]  }
 0x176   :  { %2904 = vmatprep.subr.bf16.mxu1 %v4758_v29  ;;  %v4684_v29 = vld [vmem:[#allocation8 + $0x88] ss:$16 sps:$4 sm:$0xff]  }
 0x177   :  { %2862 = vmatpush2.bf16.msra.mxu0 %v4660_v6 }
 0x178   :  { %2863 = vmatprep.subr.bf16.mxu0 %v4665_v7 }
 0x179   :  { %2905 = vmatpush2.bf16.msra.mxu1 %v4756_v37  ;;  %v4690_v37 = vld [vmem:[#allocation8 + $0x48] ss:$16 sps:$4 sm:$0xff]  }
 0x17a   :  { %2906 = vmatprep.subr.bf16.mxu1 %v4761_v53  ;;  %v4699_v53 = vld [vmem:[#allocation8 + $0x1e8] ss:$16 sps:$4 sm:$0xff]  }
 0x17b   :  { %2864 = vmatpush2.bf16.msra.mxu0 %v4663_v10 }
 0x17c   :  { %2865 = vmatprep.subr.bf16.mxu0 %v4668_v11 }
 0x17d   :  { %2907 = vmatpush2.bf16.msra.mxu1 %v4759_v12  ;;  %v4705_v12 = vld [vmem:[#allocation8 + $0x1a8] ss:$16 sps:$4 sm:$0xff]  }
 0x17e   :  { %2908 = vmatprep.subr.bf16.mxu1 %v4764_v49  ;;  %v4711_v49 = vld [vmem:[#allocation8 + $0x168] ss:$16 sps:$4 sm:$0xff]  }
 0x17f   :  { %2866 = vmatpush2.bf16.msra.mxu0 %v4666_v17 }
 0x180   :  { %2867 = vmatprep.subr.bf16.mxu0 %v4671_v18 }
 0x181   :  { %2909 = vmatpush2.bf16.msra.mxu1 %v4762_v50  ;;  %v4717_v50 = vld [vmem:[#allocation8 + $0x128] ss:$16 sps:$4 sm:$0xff]  }
 0x182   :  { %2910 = vmatprep.subr.bf16.mxu1 %v4767_v58 }
 0x183   :  { %2868 = vmatpush2.bf16.msra.mxu0 %v4669_v23  ;;  %v4680_v23 = vld [vmem:[#allocation8 + $0xcc] ss:$16 sps:$4 sm:$0xff]  }
 0x184   :  { %2869 = vmatprep.subr.bf16.mxu0 %v4674_v25  ;;  %v4683_v25 = vld [vmem:[#allocation8 + $0xac] ss:$16 sps:$4 sm:$0xff]  }
 0x185   :  { %2911 = vmatpush2.bf16.msra.mxu1 %v4765_v61 }
 0x186   :  { %2912 = vmatprep.subr.bf16.mxu1 %v4770_v5 }
 0x187   :  { %2870 = vmatpush2.bf16.msra.mxu0 %v4672_v33  ;;  %v4689_v33 = vld [vmem:[#allocation8 + $0x6c] ss:$16 sps:$4 sm:$0xff]  }
 0x188   :  { %2925 = vmatprep.subr.bf16.mxu0 %v4677_v36  ;;  %v4692_v36 = vld [vmem:[#allocation8 + $0x4c] ss:$16 sps:$4 sm:$0xff]  }
 0x189   :  { %2913 = vmatpush2.bf16.msra.mxu1 %v4768_v4 }
 0x18a   :  { %2968 = vmatprep.subr.bf16.mxu1 %v4773_v14 }
 0x18b   :  { %v1840_v46 = vpop.f32.mrf.mxu1 }
 0x18d   :  { %v1842_v13 = vpop.f32.mrf.mxu1 }
 0x18e   :  { %v1797_v48 = vpop.f32.mrf.mxu0 }
 0x18f   :  { %v1798_v56 = vadd.f32 %v1797_v48, %v1755_v47  ;;  %v1844_v59 = vpop.f32.mrf.mxu1  ;;  %v4713_v48 = vld [vmem:[#allocation8 + $0x16c] ss:$16 sps:$4 sm:$0xff]  }
 0x190   :  { %v1799_v52 = vpop.f32.mrf.mxu0  ;;  %v4716_v47 = vld [vmem:[#allocation8 + $0x14c] ss:$16 sps:$4 sm:$0xff]  }
 0x191   :  { %v1800_v40 = vadd.f32 %v1799_v52, %v1757_v54  ;;  %v1841_v1 = vadd.f32 %v1840_v46, %v1798_v56  ;;  %v1846_v6 = vpop.f32.mrf.mxu1  ;;  %v4707_v46 = vld [vmem:[#allocation8 + $0x1ac] ss:$16 sps:$4 sm:$0xff]   ;;  %v4714_v54 = vld [vmem:[#allocation8 + $0x148] ss:$16 sps:$4 sm:$0xff]  }
 0x192   :  { %v1801_v57 = vpop.f32.mrf.mxu0  ;;  %v4723_v52 = vld [vmem:[#allocation8 + $0x108] ss:$16 sps:$4 sm:$0xff]  }
 0x193   :  { %v1802_v60 = vadd.f32 %v1801_v57, %v1759_v55  ;;  %v1843_v63 = vadd.f32 %v1842_v13, %v1800_v40  ;;  %v2029_v10 = vmul.f32 0.01, %v1841_v1  ;;  %vm2021_vm4 = vcmp.gt.f32.partialorder %v1841_v1, 0.0  ;;  %v4719_v13 = vld [vmem:[#allocation8 + $0x12c] ss:$16 sps:$4 sm:$0xff]  }
 0x194   :  { %v1803_v0 = vpop.f32.mrf.mxu0  ;;  %v400_v40 = vsub.s32 2, %v5205_v22 }
 0x195   :  { %v1845_v2 = vadd.f32 %v1844_v59, %v1802_v60  ;;  %v1804_v3 = vadd.f32 %v1803_v0, %v1761_v62  ;;  %v2030_v8 = vmul.f32 0.01, %v1843_v63  ;;  %vm2022_vm3 = vcmp.gt.f32.partialorder %v1843_v63, 0.0 }
 0x196   :  { %v2037_v18 = vsel %vm2021_vm4, %v1841_v1, %v2029_v10  ;;  %v404_v59 = vsub.s32 3, %v5205_v22  ;;  %v401_v60 = vrot.slane %v5213_v34, %v400_v40 }
 0x197   :  { %v2033_v7 = vmul.f32 0.01, %v1845_v2  ;;  %vm2025_vm2 = vcmp.gt.f32.partialorder %v1845_v2, 0.0  ;;  %v1847_v9 = vadd.f32 %v1846_v6, %v1804_v3  ;;  %v2038_v16 = vsel %vm2022_vm3, %v1843_v63, %v2030_v8 }
 0x198   :  { %v405_v63 = vrot.slane %v5213_v34, %v404_v59 }
 0x199   :  { %vm2026_vm5 = vcmp.gt.f32.partialorder %v1847_v9, 0.0  ;;  %v2034_v11 = vmul.f32 0.01, %v1847_v9  ;;  %v2041_v15 = vsel %vm2025_vm2, %v1845_v2, %v2033_v7 }
 0x19a   :  { %v5219_v21 = vpack.c.bf16 %v2041_v15, %v2037_v18 }
 0x19b   :  { %v2042_v17 = vsel %vm2026_vm5, %v1847_v9, %v2034_v11 }
 0x19c   :  { %v2046_v19 = vpack.c.bf16 %v2042_v17, %v2038_v16 }
 0x19e   :  { %2871 = vmatprep.mubr.bf16.mxu0 %v2046_v19 }
 0x19f   :  { %2872 = vmatmul.mubr.bf16.vlgmr.msra.gmra.mxu0 %v5219_v21 }
 0x1a0   :  { %2926 = vmatpush1.bf16.msra.mxu0 %v4675_v20  ;;  %2957 = vmatprep.mubr.bf16.mxu0 %v2046_v19 }
 0x1a1   :  { %2927 = vmatprep.subr.bf16.mxu0 %v4680_v23 }
 0x1a4   :  { %2928 = vmatpush1.bf16.msra.mxu0 %v4678_v24 }
 0x1a5   :  { %2929 = vmatprep.subr.bf16.mxu0 %v4683_v25 }
 0x1a8   :  { %2930 = vmatpush1.bf16.msra.mxu0 %v4681_v27 }
 0x1a9   :  { %2931 = vmatprep.subr.bf16.mxu0 %v4686_v28 }
 0x1ac   :  { %2932 = vmatpush1.bf16.msra.mxu0 %v4684_v29 }
 0x1ad   :  { %2933 = vmatprep.subr.bf16.mxu0 %v4689_v33 }
 0x1b0   :  { %2934 = vmatpush1.bf16.msra.mxu0 %v4687_v35 }
 0x1b1   :  { %2935 = vmatprep.subr.bf16.mxu0 %v4692_v36 }
 0x1b4   :  { %2936 = vmatpush1.bf16.msra.mxu0 %v4690_v37 }
 0x1b5   :  { %2937 = vmatprep.subr.bf16.mxu0 %v4695_v38 }
 0x1b8   :  { %2938 = vmatpush1.bf16.msra.mxu0 %v4693_v39 }
 0x1b9   :  { %2939 = vmatprep.subr.bf16.mxu0 %v4698_v41 }
 0x1bc   :  { %2940 = vmatpush1.bf16.msra.mxu0 %v4696_v42 }
 0x1bd   :  { %2941 = vmatprep.subr.bf16.mxu0 %v4701_v43  ;;  %v4771_v43 = vld [vmem:[#allocation8 + $0x2e8] ss:$16 sps:$4 sm:$0xff]  }
 0x1c0   :  { %2942 = vmatpush2.bf16.msra.mxu0 %v4699_v53 }
 0x1c1   :  { %2943 = vmatprep.subr.bf16.mxu0 %v4704_v44  ;;  %v4776_v44 = vld [vmem:[#allocation8 + $0x2cc] ss:$16 sps:$4 sm:$0xff]  }
 0x1c4   :  { %2944 = vmatpush2.bf16.msra.mxu0 %v4702_v45  ;;  %v4774_v45 = vld [vmem:[#allocation8 + $0x2c8] ss:$16 sps:$4 sm:$0xff]  }
 0x1c5   :  { %2945 = vmatprep.subr.bf16.mxu0 %v4707_v46  ;;  %v4779_v46 = vld [vmem:[#allocation8 + $0x2ac] ss:$16 sps:$4 sm:$0xff]  }
 0x1c8   :  { %2946 = vmatpush2.bf16.msra.mxu0 %v4705_v12  ;;  %v4777_v12 = vld [vmem:[#allocation8 + $0x2a8] ss:$16 sps:$4 sm:$0xff]  }
 0x1c9   :  { %2947 = vmatprep.subr.bf16.mxu0 %v4710_v31  ;;  %v4782_v31 = vld [vmem:[#allocation8 + $0x28c] ss:$16 sps:$4 sm:$0xff]  }
 0x1cb   :  { %v1883_v55 = vpop.f32.mrf.mxu1 }
 0x1cc   :  { %2948 = vmatpush2.bf16.msra.mxu0 %v4708_v26  ;;  %v1884_v0 = vadd.f32 %v1883_v55, %v401_v60  ;;  %v4780_v26 = vld [vmem:[#allocation8 + $0x288] ss:$16 sps:$4 sm:$0xff]  }
 0x1cd   :  { %2949 = vmatprep.subr.bf16.mxu0 %v4713_v48  ;;  %v1885_v57 = vpop.f32.mrf.mxu1  ;;  %v4785_v48 = vld [vmem:[#allocation8 + $0x26c] ss:$16 sps:$4 sm:$0xff]   ;;  %v4786_v55 = vld [vmem:[#allocation8 + $0x248] ss:$16 sps:$4 sm:$0xff]  }
 0x1ce   :  { %v1926_v56 = vpop.f32.mrf.mxu0  ;;  %v1886_v3 = vadd.f32 %v1885_v57, %v405_v63  ;;  %v4825_v57 = vld [vmem:[#allocation10 + $0x50] ss:$8 sps:$4 sm:$0xff]  }
 0x1cf   :  { %v1887_v61 = vpop.f32.mrf.mxu1  ;;  %v1927_v7 = vadd.f32 %v1926_v56, %v1884_v0  ;;  %v4791_v56 = vld [vmem:[#allocation8 + $0x22c] ss:$16 sps:$4 sm:$0xff]   ;;  %v4792_v0 = vld [vmem:[#allocation8 + $0x208] ss:$16 sps:$4 sm:$0xff]  }
 0x1d0   :  { %2950 = vmatpush2.bf16.msra.mxu0 %v4711_v49  ;;  %v1928_v58 = vpop.f32.mrf.mxu0  ;;  %v1888_v6 = vadd.f32 %v1887_v61, %v401_v60  ;;  %v4819_v49 = vld [vmem:[#allocation10 + $0x70] ss:$8 sps:$4 sm:$0xff]   ;;  %v4794_v61 = vld [vmem:[#allocation8 + $0x20c] ss:$16 sps:$4 sm:$0xff]  }
 0x1d1   :  { %2951 = vmatprep.subr.bf16.mxu0 %v4716_v47  ;;  %v1889_v1 = vpop.f32.mrf.mxu1  ;;  %v1929_v8 = vadd.f32 %v1928_v58, %v1886_v3  ;;  %v4821_v47 = vld [vmem:[#allocation10 + $0x74] ss:$8 sps:$4 sm:$0xff]   ;;  %v4830_v58 = vld [vmem:[#allocation10 + $0x44] ss:$8 sps:$4 sm:$0xff]   ;;  %v4789_v60 = vld [vmem:[#allocation8 + $0x228] ss:$16 sps:$4 sm:$0xff]  }
 0x1d2   :  { %v1930_v62 = vpop.f32.mrf.mxu0  ;;  %v1890_v16 = vadd.f32 %v1889_v1, %v405_v63  ;;  %v4833_v63 = vld [vmem:[#allocation10 + $0x34] ss:$8 sps:$4 sm:$0xff]   ;;  %v4836_v3 = vld [vmem:[#allocation10 + $0x24] ss:$8 sps:$4 sm:$0xff]  }
 0x1d3   :  { %v1931_v11 = vadd.f32 %v1930_v62, %v1888_v6  ;;  %v4828_v62 = vld [vmem:[#allocation10 + $0x40] ss:$8 sps:$4 sm:$0xff]   ;;  %v4797_v1 = vld [vmem:[#allocation8 + $0x3ec] ss:$16 sps:$4 sm:$0xff]  }
 0x1d4   :  { %2952 = vmatpush2.bf16.msra.mxu0 %v4714_v54  ;;  %v1932_v2 = vpop.f32.mrf.mxu0  ;;  %v4824_v54 = vld [vmem:[#allocation10 + $0x64] ss:$8 sps:$4 sm:$0xff]   ;;  %v4834_v6 = vld [vmem:[#allocation10 + $0x20] ss:$8 sps:$4 sm:$0xff]  }
 0x1d5   :  { %2953 = vmatprep.subr.bf16.mxu0 %v4719_v13  ;;  %v1933_v20 = vadd.f32 %v1932_v2, %v1890_v16  ;;  %v4783_v13 = vld [vmem:[#allocation8 + $0x268] ss:$16 sps:$4 sm:$0xff]  }
 0x1d6   :  { %v4831_v2 = vld [vmem:[#allocation10 + $0x30] ss:$8 sps:$4 sm:$0xff]   ;;  %v4840_v16 = vld [vmem:[#allocation10] ss:$8 sps:$4 sm:$0xff]  }
 0x1d8   :  { %2954 = vmatpush2.bf16.msra.mxu0 %v4717_v50  ;;  %v4788_v50 = vld [vmem:[#allocation8 + $0x24c] ss:$16 sps:$4 sm:$0xff]  }
 0x1d9   :  { %2955 = vmatprep.subr.bf16.mxu0 %v4725_v51  ;;  %v4822_v51 = vld [vmem:[#allocation10 + $0x60] ss:$8 sps:$4 sm:$0xff]  }
 0x1dc   :  { %2956 = vmatpush2.bf16.msra.mxu0 %v4723_v52  ;;  %v4827_v52 = vld [vmem:[#allocation10 + $0x54] ss:$8 sps:$4 sm:$0xff]  }
 0x1dd   :  { %3435 = vmatprep.subr.bf16.mxu0 %v4821_v47  ;;  %v4873_v47 = vld [vmem:[#allocation10 + $0x150] ss:$8 sps:$4 sm:$0xff]  }
 0x1df   :  { %2958 = vmatmul.mubr.bf16.vlgmr.msra.gmra.mxu0 %v5219_v21 }
 0x1e0   :  { %3436 = vmatpush1.bf16.msra.mxu0 %v4819_v49  ;;  %v4870_v49 = vld [vmem:[#allocation10 + $0x160] ss:$8 sps:$4 sm:$0xff]  }
 0x1e1   :  { %3437 = vmatprep.subr.bf16.mxu0 %v4824_v54  ;;  %v4878_v54 = vld [vmem:[#allocation10 + $0x144] ss:$8 sps:$4 sm:$0xff]  }
 0x1e4   :  { %3438 = vmatpush1.bf16.msra.mxu0 %v4822_v51  ;;  %v4879_v51 = vld [vmem:[#allocation10 + $0x130] ss:$8 sps:$4 sm:$0xff]  }
 0x1e5   :  { %3439 = vmatprep.subr.bf16.mxu0 %v4827_v52  ;;  %v4884_v52 = vld [vmem:[#allocation10 + $0x124] ss:$8 sps:$4 sm:$0xff]  }
 0x1e8   :  { %3440 = vmatpush1.bf16.msra.mxu0 %v4825_v57  ;;  %v4885_v57 = vld [vmem:[#allocation10 + $0x110] ss:$8 sps:$4 sm:$0xff]  }
 0x1e9   :  { %3441 = vmatprep.subr.bf16.mxu0 %v4830_v58  ;;  %v4890_v58 = vld [vmem:[#allocation10 + $0x104] ss:$8 sps:$4 sm:$0xff]  }
 0x1ec   :  { %3442 = vmatpush1.bf16.msra.mxu0 %v4828_v62  ;;  %v4891_v62 = vld [vmem:[#allocation10 + $0x1f0] ss:$8 sps:$4 sm:$0xff]  }
 0x1ed   :  { %3443 = vmatprep.subr.bf16.mxu0 %v4833_v63  ;;  %v4896_v63 = vld [vmem:[#allocation10 + $0x1e4] ss:$8 sps:$4 sm:$0xff]  }
 0x1f0   :  { %3444 = vmatpush1.bf16.msra.mxu0 %v4831_v2  ;;  %v4897_v2 = vld [vmem:[#allocation10 + $0x1d0] ss:$8 sps:$4 sm:$0xff]  }
 0x1f1   :  { %3445 = vmatprep.subr.bf16.mxu0 %v4836_v3  ;;  %v4902_v3 = vld [vmem:[#allocation10 + $0x1c4] ss:$8 sps:$4 sm:$0xff]  }
 0x1f4   :  { %3446 = vmatpush1.bf16.msra.mxu0 %v4834_v6  ;;  %v4903_v6 = vld [vmem:[#allocation10 + $0x1b0] ss:$8 sps:$4 sm:$0xff]  }
 0x20a   :  { %v2012_v5 = vpop.f32.mrf.mxu0 }
 0x20b   :  { %v1969_v4 = vpop.f32.mrf.mxu1 }
 0x20c   :  { %v2014_v10 = vpop.f32.mrf.mxu0  ;;  %v1970_v14 = vadd.f32 %v1969_v4, %v1927_v7  ;;  %v4795_v4 = vld [vmem:[#allocation8 + $0x3e8] ss:$16 sps:$4 sm:$0xff]   ;;  %v4839_v7 = vld [vmem:[#allocation10 + $0x14] ss:$8 sps:$4 sm:$0xff]  }
 0x20d   :  { %v1971_v9 = vpop.f32.mrf.mxu1  ;;  %3447 = vmatprep.subr.bf16.mxu0 %v4839_v7  ;;  %v4908_v7 = vld [vmem:[#allocation10 + $0x1a4] ss:$8 sps:$4 sm:$0xff]  }
 0x20e   :  { %v1972_v15 = vadd.f32 %v1971_v9, %v1929_v8  ;;  %v2016_v19 = vpop.f32.mrf.mxu0  ;;  %v2013_v23 = vadd.f32 %v2012_v5, %v1970_v14  ;;  %v4800_v5 = vld [vmem:[#allocation8 + $0x3cc] ss:$16 sps:$4 sm:$0xff]   ;;  %v4798_v8 = vld [vmem:[#allocation8 + $0x3c8] ss:$16 sps:$4 sm:$0xff]  }
 0x20f   :  { %v1973_v17 = vpop.f32.mrf.mxu1  ;;  %v4803_v9 = vld [vmem:[#allocation8 + $0x3ac] ss:$16 sps:$4 sm:$0xff]   ;;  %v4801_v14 = vld [vmem:[#allocation8 + $0x3a8] ss:$16 sps:$4 sm:$0xff]  }
 0x210   :  { %v1974_v18 = vadd.f32 %v1973_v17, %v1931_v11  ;;  %v2015_v34 = vadd.f32 %v2014_v10, %v1972_v15  ;;  %v2018_v28 = vpop.f32.mrf.mxu0  ;;  %v2031_v35 = vmul.f32 0.01, %v2013_v23  ;;  %vm2023_vm8 = vcmp.gt.f32.partialorder %v2013_v23, 0.0  ;;  %v4837_v10 = vld [vmem:[#allocation10 + $0x10] ss:$8 sps:$4 sm:$0xff]  }
 0x211   :  { %v1975_v21 = vpop.f32.mrf.mxu1  ;;  %v4842_v11 = vld [vmem:[#allocation10 + $0x4] ss:$8 sps:$4 sm:$0xff]   ;;  %3448 = vmatpush1.bf16.msra.mxu0 %v4837_v10  ;;  %v4845_v17 = vld [vmem:[#allocation10 + $0xf4] ss:$8 sps:$4 sm:$0xff]   ;;  %v4909_v10 = vld [vmem:[#allocation10 + $0x190] ss:$8 sps:$4 sm:$0xff]  }
 0x212   :  { %v2017_v24 = vadd.f32 %v2016_v19, %v1974_v18  ;;  %v1976_v25 = vadd.f32 %v1975_v21, %v1933_v20  ;;  %v2032_v29 = vmul.f32 0.01, %v2015_v34  ;;  %vm2024_vm7 = vcmp.gt.f32.partialorder %v2015_v34, 0.0  ;;  %v4806_v15 = vld [vmem:[#allocation8 + $0x38c] ss:$16 sps:$4 sm:$0xff]   ;;  %3449 = vmatprep.subr.bf16.mxu0 %v4842_v11 }
 0x213   :  { %v2039_v41 = vsel %vm2023_vm8, %v2013_v23, %v2031_v35  ;;  %v4804_v18 = vld [vmem:[#allocation8 + $0x388] ss:$16 sps:$4 sm:$0xff]   ;;  %v4809_v19 = vld [vmem:[#allocation8 + $0x36c] ss:$16 sps:$4 sm:$0xff]  }
 0x214   :  { %v2035_v27 = vmul.f32 0.01, %v2017_v24  ;;  %vm2027_vm6 = vcmp.gt.f32.partialorder %v2017_v24, 0.0  ;;  %v2019_v33 = vadd.f32 %v2018_v28, %v1976_v25  ;;  %v2040_v38 = vsel %vm2024_vm7, %v2015_v34, %v2032_v29  ;;  %v4843_v20 = vld [vmem:[#allocation10 + $0xf0] ss:$8 sps:$4 sm:$0xff]  }
 0x215   :  { %3450 = vmatpush1.bf16.msra.mxu0 %v4840_v16  ;;  %v4848_v34 = vld [vmem:[#allocation10 + $0xe4] ss:$8 sps:$4 sm:$0xff]   ;;  %v4807_v21 = vld [vmem:[#allocation8 + $0x368] ss:$16 sps:$4 sm:$0xff]   ;;  %v4851_v25 = vld [vmem:[#allocation10 + $0xd4] ss:$8 sps:$4 sm:$0xff]  }
 0x216   :  { %vm2028_vm9 = vcmp.gt.f32.partialorder %v2019_v33, 0.0  ;;  %v2036_v36 = vmul.f32 0.01, %v2019_v33  ;;  %v2043_v37 = vsel %vm2027_vm6, %v2017_v24, %v2035_v27  ;;  %3451 = vmatprep.subr.bf16.mxu0 %v4845_v17  ;;  %v4812_v23 = vld [vmem:[#allocation8 + $0x34c] ss:$16 sps:$4 sm:$0xff]  }
 0x217   :  { %v5231_v53 = vpack.c.bf16 %v2043_v37, %v2039_v41  ;;  %v4846_v24 = vld [vmem:[#allocation10 + $0xe0] ss:$8 sps:$4 sm:$0xff]   ;;  %v4815_v28 = vld [vmem:[#allocation8 + $0x32c] ss:$16 sps:$4 sm:$0xff]   ;;  %v4849_v29 = vld [vmem:[#allocation10 + $0xd0] ss:$8 sps:$4 sm:$0xff]  }
 0x218   :  { %v2044_v39 = vsel %vm2028_vm9, %v2019_v33, %v2036_v36  ;;  %v4810_v27 = vld [vmem:[#allocation8 + $0x348] ss:$16 sps:$4 sm:$0xff]   ;;  %v4854_v33 = vld [vmem:[#allocation10 + $0xc4] ss:$8 sps:$4 sm:$0xff]  }
 0x219   :  { %v2048_v42 = vpack.c.bf16 %v2044_v39, %v2040_v38  ;;  %3452 = vmatpush2.bf16.msra.mxu0 %v4843_v20  ;;  %v4813_v35 = vld [vmem:[#allocation8 + $0x328] ss:$16 sps:$4 sm:$0xff]   ;;  %v4818_v36 = vld [vmem:[#allocation8 + $0x30c] ss:$16 sps:$4 sm:$0xff]  }
 0x21a   :  { %3453 = vmatprep.subr.bf16.mxu0 %v4848_v34  ;;  %v4852_v37 = vld [vmem:[#allocation10 + $0xc0] ss:$8 sps:$4 sm:$0xff]   ;;  %v4857_v38 = vld [vmem:[#allocation10 + $0xb4] ss:$8 sps:$4 sm:$0xff]   ;;  %v4855_v41 = vld [vmem:[#allocation10 + $0xb0] ss:$8 sps:$4 sm:$0xff]  }
 0x21b   :  { %2914 = vmatprep.mubr.bf16.mxu1 %v2048_v42  ;;  %v4816_v39 = vld [vmem:[#allocation8 + $0x308] ss:$16 sps:$4 sm:$0xff]   ;;  %v4914_v11 = vld [vmem:[#allocation10 + $0x184] ss:$8 sps:$4 sm:$0xff]  }
 0x21c   :  { %2915 = vmatmul.mubr.bf16.vlgmr.msra.gmra.mxu1 %v5231_v53  ;;  %v2177_v17 = vld [vmem:[%s5262_s4] sm:$0xf] }
 0x21d   :  { %2969 = vmatpush1.bf16.msra.mxu1 %v4771_v43  ;;  %3000 = vmatprep.mubr.bf16.mxu1 %v2048_v42  ;;  %v4860_v42 = vld [vmem:[#allocation10 + $0xa4] ss:$8 sps:$4 sm:$0xff]   ;;  %v4858_v43 = vld [vmem:[#allocation10 + $0xa0] ss:$8 sps:$4 sm:$0xff]  }
 0x21e   :  { %2970 = vmatprep.subr.bf16.mxu1 %v4776_v44  ;;  %3454 = vmatpush2.bf16.msra.mxu0 %v4846_v24  ;;  %v4863_v44 = vld [vmem:[#allocation10 + $0x94] ss:$8 sps:$4 sm:$0xff]  }
 0x21f   :  { %3455 = vmatprep.subr.bf16.mxu0 %v4851_v25 }
 0x221   :  { %2971 = vmatpush1.bf16.msra.mxu1 %v4774_v45  ;;  %v4861_v45 = vld [vmem:[#allocation10 + $0x90] ss:$8 sps:$4 sm:$0xff]  }
 0x222   :  { %2972 = vmatprep.subr.bf16.mxu1 %v4779_v46  ;;  %3456 = vmatpush2.bf16.msra.mxu0 %v4849_v29  ;;  %v4864_v46 = vld [vmem:[#allocation10 + $0x80] ss:$8 sps:$4 sm:$0xff]  }
 0x223   :  { %3457 = vmatprep.subr.bf16.mxu0 %v4854_v33 }
 0x225   :  { %2973 = vmatpush1.bf16.msra.mxu1 %v4777_v12  ;;  %v4866_v12 = vld [vmem:[#allocation10 + $0x84] ss:$8 sps:$4 sm:$0xff]  }
 0x226   :  { %2974 = vmatprep.subr.bf16.mxu1 %v4782_v31  ;;  %3458 = vmatpush2.bf16.msra.mxu0 %v4852_v37  ;;  %v4869_v31 = vld [vmem:[#allocation10 + $0x174] ss:$8 sps:$4 sm:$0xff]  }
 0x227   :  { %3459 = vmatprep.subr.bf16.mxu0 %v4857_v38 }
 0x229   :  { %2975 = vmatpush1.bf16.msra.mxu1 %v4780_v26  ;;  %v4867_v26 = vld [vmem:[#allocation10 + $0x170] ss:$8 sps:$4 sm:$0xff]  }
 0x22a   :  { %2976 = vmatprep.subr.bf16.mxu1 %v4785_v48  ;;  %3460 = vmatpush2.bf16.msra.mxu0 %v4855_v41  ;;  %v4872_v48 = vld [vmem:[#allocation10 + $0x164] ss:$8 sps:$4 sm:$0xff]  }
 0x22b   :  { %3461 = vmatprep.subr.bf16.mxu0 %v4860_v42 }
 0x22d   :  { %2977 = vmatpush1.bf16.msra.mxu1 %v4783_v13  ;;  %v4876_v13 = vld [vmem:[#allocation10 + $0x140] ss:$8 sps:$4 sm:$0xff]  }
 0x22e   :  { %2978 = vmatprep.subr.bf16.mxu1 %v4788_v50  ;;  %3462 = vmatpush2.bf16.msra.mxu0 %v4858_v43  ;;  %v4881_v50 = vld [vmem:[#allocation10 + $0x134] ss:$8 sps:$4 sm:$0xff]  }
 0x22f   :  { %3463 = vmatprep.subr.bf16.mxu0 %v4863_v44 }
 0x231   :  { %2979 = vmatpush1.bf16.msra.mxu1 %v4786_v55  ;;  %v4882_v55 = vld [vmem:[#allocation10 + $0x120] ss:$8 sps:$4 sm:$0xff]  }
 0x232   :  { %2980 = vmatprep.subr.bf16.mxu1 %v4791_v56  ;;  %3464 = vmatpush2.bf16.msra.mxu0 %v4861_v45  ;;  %v4887_v56 = vld [vmem:[#allocation10 + $0x114] ss:$8 sps:$4 sm:$0xff]  }
 0x233   :  { %3465 = vmatprep.subr.bf16.mxu0 %v4866_v12 }
 0x235   :  { %2981 = vmatpush1.bf16.msra.mxu1 %v4789_v60  ;;  %v4888_v60 = vld [vmem:[#allocation10 + $0x100] ss:$8 sps:$4 sm:$0xff]  }
 0x236   :  { %2982 = vmatprep.subr.bf16.mxu1 %v4794_v61  ;;  %3466 = vmatpush2.bf16.msra.mxu0 %v4864_v46  ;;  %v4893_v61 = vld [vmem:[#allocation10 + $0x1f4] ss:$8 sps:$4 sm:$0xff]  }
 0x239   :  { %2983 = vmatpush1.bf16.msra.mxu1 %v4792_v0  ;;  %v4894_v0 = vld [vmem:[#allocation10 + $0x1e0] ss:$8 sps:$4 sm:$0xff]  }
 0x23a   :  { %2984 = vmatprep.subr.bf16.mxu1 %v4797_v1  ;;  %v4899_v1 = vld [vmem:[#allocation10 + $0x1d4] ss:$8 sps:$4 sm:$0xff]  }
 0x23d   :  { %2985 = vmatpush2.bf16.msra.mxu1 %v4795_v4  ;;  %v4900_v4 = vld [vmem:[#allocation10 + $0x1c0] ss:$8 sps:$4 sm:$0xff]  }
 0x23e   :  { %2986 = vmatprep.subr.bf16.mxu1 %v4800_v5  ;;  %v4905_v5 = vld [vmem:[#allocation10 + $0x1b4] ss:$8 sps:$4 sm:$0xff]  }
 0x241   :  { %2987 = vmatpush2.bf16.msra.mxu1 %v4798_v8  ;;  %v4906_v8 = vld [vmem:[#allocation10 + $0x1a0] ss:$8 sps:$4 sm:$0xff]  }
 0x242   :  { %2988 = vmatprep.subr.bf16.mxu1 %v4803_v9  ;;  %v4911_v9 = vld [vmem:[#allocation10 + $0x194] ss:$8 sps:$4 sm:$0xff]  }
 0x245   :  { %2989 = vmatpush2.bf16.msra.mxu1 %v4801_v14  ;;  %v4912_v14 = vld [vmem:[#allocation10 + $0x180] ss:$8 sps:$4 sm:$0xff]  }
 0x246   :  { %2990 = vmatprep.subr.bf16.mxu1 %v4806_v15 }
 0x249   :  { %2991 = vmatpush2.bf16.msra.mxu1 %v4804_v18  ;;  %v2186_v18 = vrot.slane %v2177_v17, %v5211_v32 }
 0x24a   :  { %2992 = vmatprep.subr.bf16.mxu1 %v4809_v19  ;;  %v2182_v19 = vrot.slane %v2177_v17, %v5208_v30 }
 0x24d   :  { %2993 = vmatpush2.bf16.msra.mxu1 %v4807_v21 }
 0x24e   :  { %2994 = vmatprep.subr.bf16.mxu1 %v4812_v23 }
 0x251   :  { %2995 = vmatpush2.bf16.msra.mxu1 %v4810_v27 }
 0x252   :  { %2996 = vmatprep.subr.bf16.mxu1 %v4815_v28 }
 0x255   :  { %2997 = vmatpush2.bf16.msra.mxu1 %v4813_v35 }
 0x256   :  { %2998 = vmatprep.subr.bf16.mxu1 %v4818_v36 }
 0x259   :  { %2999 = vmatpush2.bf16.msra.mxu1 %v4816_v39 }
 0x25a   :  { %3478 = vmatprep.subr.bf16.mxu1 %v4869_v31 }
 0x25c   :  { %3001 = vmatmul.mubr.bf16.vlgmr.msra.gmra.mxu1 %v5231_v53  ;;  %v4875_v53 = vld [vmem:[#allocation10 + $0x154] ss:$8 sps:$4 sm:$0xff]  }
 0x25d   :  { %3479 = vmatpush1.bf16.msra.mxu1 %v4867_v26 }
 0x25e   :  { %3480 = vmatprep.subr.bf16.mxu1 %v4872_v48 }
 0x25f   :  { %v2873_v15 = vpop.f32.mrf.mxu0 }
 0x260   :  { %v2874_v23 = vadd.f32 %v2873_v15, %v2182_v19  ;;  %v4920_v15 = vld [vmem:[#allocation11 + $0x28] sm:$0xff]  }
 0x261   :  { %3481 = vmatpush1.bf16.msra.mxu1 %v4870_v49  ;;  %v2875_v16 = vpop.f32.mrf.mxu0 }
 0x262   :  { %3482 = vmatprep.subr.bf16.mxu1 %v4875_v53  ;;  %v2876_v21 = vadd.f32 %v2875_v16, %v2186_v18  ;;  %v2194_v53 = vrot.slane %v2177_v17, %v404_v59  ;;  %v4921_v16 = vld [vmem:[#allocation11 + $0x60] sm:$0xff]  }
 0x263   :  { %v2877_v20 = vpop.f32.mrf.mxu0 }
 0x264   :  { %v2878_v27 = vadd.f32 %v2877_v20, %v2182_v19  ;;  %v4924_v19 = vld [vmem:[#allocation11 + $0x18] sm:$0xff]   ;;  %v4925_v20 = vld [vmem:[#allocation11 + $0x50] sm:$0xff]  }
 0x265   :  { %3483 = vmatpush1.bf16.msra.mxu1 %v4873_v47  ;;  %v2879_v24 = vpop.f32.mrf.mxu0  ;;  %v2190_v47 = vrot.slane %v2177_v17, %v400_v40  ;;  %v4922_v17 = vld [vmem:[#allocation11 + $0x20] sm:$0xff]  }
 0x266   :  { %3484 = vmatprep.subr.bf16.mxu1 %v4878_v54  ;;  %v2880_v35 = vadd.f32 %v2879_v24, %v2186_v18  ;;  %v4923_v18 = vld [vmem:[#allocation11 + $0x58] sm:$0xff]   ;;  %v4929_v24 = vld [vmem:[#allocation11 + $0x40] sm:$0xff]  }
 0x269   :  { %3485 = vmatpush1.bf16.msra.mxu1 %v4876_v13 }
 0x26a   :  { %3486 = vmatprep.subr.bf16.mxu1 %v4881_v50 }
 0x26d   :  { %3487 = vmatpush1.bf16.msra.mxu1 %v4879_v51 }
 0x26e   :  { %3488 = vmatprep.subr.bf16.mxu1 %v4884_v52 }
 0x271   :  { %3489 = vmatpush1.bf16.msra.mxu1 %v4882_v55 }
 0x272   :  { %3490 = vmatprep.subr.bf16.mxu1 %v4887_v56 }
 0x275   :  { %3491 = vmatpush1.bf16.msra.mxu1 %v4885_v57 }
 0x276   :  { %3492 = vmatprep.subr.bf16.mxu1 %v4890_v58 }
 0x279   :  { %3493 = vmatpush1.bf16.msra.mxu1 %v4888_v60 }
 0x27a   :  { %3494 = vmatprep.subr.bf16.mxu1 %v4893_v61 }
 0x27d   :  { %3495 = vmatpush2.bf16.msra.mxu1 %v4891_v62 }
 0x27e   :  { %3496 = vmatprep.subr.bf16.mxu1 %v4896_v63 }
 0x281   :  { %3497 = vmatpush2.bf16.msra.mxu1 %v4894_v0 }
 0x282   :  { %3498 = vmatprep.subr.bf16.mxu1 %v4899_v1 }
 0x285   :  { %3499 = vmatpush2.bf16.msra.mxu1 %v4897_v2 }
 0x286   :  { %3500 = vmatprep.subr.bf16.mxu1 %v4902_v3 }
 0x289   :  { %3501 = vmatpush2.bf16.msra.mxu1 %v4900_v4 }
 0x28a   :  { %3502 = vmatprep.subr.bf16.mxu1 %v4905_v5 }
 0x28d   :  { %3503 = vmatpush2.bf16.msra.mxu1 %v4903_v6 }
 0x28e   :  { %3504 = vmatprep.subr.bf16.mxu1 %v4908_v7 }
 0x291   :  { %3505 = vmatpush2.bf16.msra.mxu1 %v4906_v8  ;;  %v4915_v8 = vld [vmem:[#allocation11 + $0x78] sm:$0xff]  }
 0x292   :  { %3506 = vmatprep.subr.bf16.mxu1 %v4911_v9  ;;  %v4916_v9 = vld [vmem:[#allocation11 + $0x38] sm:$0xff]   ;;  %4215 = vmatprep.subr.bf16.mxu0 %v4915_v8 }
 0x295   :  { %3507 = vmatpush2.bf16.msra.mxu1 %v4909_v10  ;;  %v4917_v10 = vld [vmem:[#allocation11 + $0x70] sm:$0xff]  }
 0x296   :  { %3508 = vmatprep.subr.bf16.mxu1 %v4914_v11  ;;  %v4918_v11 = vld [vmem:[#allocation11 + $0x30] sm:$0xff]  }
 0x299   :  { %3509 = vmatpush2.bf16.msra.mxu1 %v4912_v14  ;;  %v4919_v14 = vld [vmem:[#allocation11 + $0x68] sm:$0xff]  }
 0x29f   :  { %v2959_v48 = vpop.f32.mrf.mxu0 }
 0x2a0   :  { %v2960_v51 = vadd.f32 %v2959_v48, %v2190_v47 }
 0x2a1   :  { %v2961_v49 = vpop.f32.mrf.mxu0 }
 0x2a2   :  { %v2962_v50 = vadd.f32 %v2961_v49, %v2194_v53 }
 0x2a3   :  { %v2963_v54 = vpop.f32.mrf.mxu0 }
 0x2a4   :  { %v2964_v56 = vadd.f32 %v2963_v54, %v2190_v47 }
 0x2a5   :  { %v2965_v52 = vpop.f32.mrf.mxu0 }
 0x2a6   :  { %v2966_v61 = vadd.f32 %v2965_v52, %v2194_v53 }
 0x2dc   :  { %v2916_v34 = vpop.f32.mrf.mxu1 }
 0x2dd   :  { %v2917_v29 = vadd.f32 %v2916_v34, %v2874_v23  ;;  %v4926_v34 = vld [vmem:[#allocation11 + $0x10] sm:$0xff]   ;;  %v4928_v23 = vld [vmem:[#allocation11 + $0x8] sm:$0xff]  }
 0x2de   :  { %v2918_v25 = vpop.f32.mrf.mxu1 }
 0x2df   :  { %v2919_v28 = vadd.f32 %v2918_v25, %v2876_v21  ;;  %v3019_v42 = vmul.f32 0.01, %v2917_v29  ;;  %vm3011_vm12 = vcmp.gt.f32.partialorder %v2917_v29, 0.0  ;;  %v4927_v21 = vld [vmem:[#allocation11 + $0x48] sm:$0xff]   ;;  %v4930_v25 = vld [vmem:[#allocation11] sm:$0xff]  }
 0x2e0   :  { %v2920_v33 = vpop.f32.mrf.mxu1 }
 0x2e1   :  { %v2921_v36 = vadd.f32 %v2920_v33, %v2878_v27  ;;  %v3020_v38 = vmul.f32 0.01, %v2919_v28  ;;  %vm3012_vm11 = vcmp.gt.f32.partialorder %v2919_v28, 0.0  ;;  %v3027_v12 = vsel %vm3011_vm12, %v2917_v29, %v3019_v42  ;;  %v3103_v29 = vld [vmem:[%s5264_s6] sm:$0x3] }
 0x2e2   :  { %v2922_v37 = vpop.f32.mrf.mxu1  ;;  %v3112_v33 = vrot.slane %v3103_v29, %v5211_v32 }
 0x2e3   :  { %vm3015_vm10 = vcmp.gt.f32.partialorder %v2921_v36, 0.0  ;;  %v3023_v39 = vmul.f32 0.01, %v2921_v36  ;;  %v2923_v41 = vadd.f32 %v2922_v37, %v2880_v35  ;;  %v3028_v45 = vsel %vm3012_vm11, %v2919_v28, %v3020_v38 }
 0x2e4   :  { %v3108_v35 = vrot.slane %v3103_v29, %v5208_v30 }
 0x2e5   :  { %vm3016_vm13 = vcmp.gt.f32.partialorder %v2923_v41, 0.0  ;;  %v3024_v43 = vmul.f32 0.01, %v2923_v41  ;;  %v3031_v44 = vsel %vm3015_vm10, %v2921_v36, %v3023_v39 }
 0x2e6   :  { %v3035_v26 = vpack.c.bf16 %v3031_v44, %v3027_v12 }
 0x2e7   :  { %v3032_v46 = vsel %vm3016_vm13, %v2923_v41, %v3024_v43 }
 0x2e8   :  { %v3036_v31 = vpack.c.bf16 %v3032_v46, %v3028_v45 }
 0x2ea   :  { %3467 = vmatprep.mubr.bf16.mxu0 %v3036_v31 }
 0x2eb   :  { %3468 = vmatmul.mubr.bf16.vlgmr.msra.gmra.mxu0 %v3035_v26 }
 0x2ec   :  { %4216 = vmatpush3.bf16.msra.mxu0 %v4916_v9 }
 0x2ed   :  { %4217 = vmatprep.subr.bf16.mxu0 %v4917_v10 }
 0x2f0   :  { %4218 = vmatpush3.bf16.msra.mxu0 %v4918_v11 }
 0x2f1   :  { %4219 = vmatprep.subr.bf16.mxu0 %v4919_v14 }
 0x2f4   :  { %4220 = vmatpush3.bf16.msra.mxu0 %v4920_v15 }
 0x2f5   :  { %4221 = vmatprep.subr.bf16.mxu0 %v4921_v16 }
 0x2f8   :  { %4222 = vmatpush3.bf16.msra.mxu0 %v4922_v17 }
 0x2f9   :  { %4223 = vmatprep.subr.bf16.mxu0 %v4923_v18 }
 0x2fc   :  { %4224 = vmatpush3.bf16.msra.mxu0 %v4924_v19 }
 0x2fd   :  { %4225 = vmatprep.subr.bf16.mxu0 %v4925_v20 }
 0x300   :  { %4226 = vmatpush3.bf16.msra.mxu0 %v4926_v34 }
 0x301   :  { %4227 = vmatprep.subr.bf16.mxu0 %v4927_v21 }
 0x304   :  { %4228 = vmatpush3.bf16.msra.mxu0 %v4928_v23 }
 0x305   :  { %4229 = vmatprep.subr.bf16.mxu0 %v4929_v24 }
 0x308   :  { %4230 = vmatpush3.bf16.msra.mxu0 %v4930_v25 }
 0x31c   :  { %v3002_v13 = vpop.f32.mrf.mxu1 }
 0x31d   :  { %v3003_v58 = vadd.f32 %v3002_v13, %v2960_v51 }
 0x31e   :  { %v3004_v55 = vpop.f32.mrf.mxu1 }
 0x31f   :  { %v3005_v57 = vadd.f32 %v3004_v55, %v2962_v50  ;;  %v3021_v2 = vmul.f32 0.01, %v3003_v58  ;;  %vm3013_vm0 = vcmp.gt.f32.partialorder %v3003_v58, 0.0 }
 0x320   :  { %v3006_v60 = vpop.f32.mrf.mxu1 }
 0x321   :  { %v3007_v62 = vadd.f32 %v3006_v60, %v2964_v56  ;;  %v3022_v0 = vmul.f32 0.01, %v3005_v57  ;;  %vm3014_vm15 = vcmp.gt.f32.partialorder %v3005_v57, 0.0  ;;  %v3029_v5 = vsel %vm3013_vm0, %v3003_v58, %v3021_v2  ;;  %v4189_v60 = vld [vmem:[%s5266_s8] ss:$0 sm:$0xff] }
 0x322   :  { %v3008_v63 = vpop.f32.mrf.mxu1 }
 0x323   :  { %vm3017_vm14 = vcmp.gt.f32.partialorder %v3007_v62, 0.0  ;;  %v3025_v1 = vmul.f32 0.01, %v3007_v62  ;;  %v3009_v59 = vadd.f32 %v3008_v63, %v2966_v61  ;;  %v3030_v3 = vsel %vm3014_vm15, %v3005_v57, %v3022_v0 }
 0x325   :  { %vm3018_vm1 = vcmp.gt.f32.partialorder %v3009_v59, 0.0  ;;  %v3026_v22 = vmul.f32 0.01, %v3009_v59  ;;  %v3033_v40 = vsel %vm3017_vm14, %v3007_v62, %v3025_v1 }
 0x326   :  { %v3037_v7 = vpack.c.bf16 %v3033_v40, %v3029_v5 }
 0x327   :  { %v3034_v4 = vsel %vm3018_vm1, %v3009_v59, %v3026_v22 }
 0x328   :  { %v3038_v6 = vpack.c.bf16 %v3034_v4, %v3030_v3 }
 0x32a   :  { %3510 = vmatprep.mubr.bf16.mxu1 %v3038_v6 }
 0x32b   :  { %3511 = vmatmul.mubr.bf16.vlgmr.msra.gmra.mxu1 %v3037_v7 }
 0x3ab   :  { %v3469_v27 = vpop.f32.mrf.mxu0 }
 0x3ac   :  { %v3470_v39 = vadd.f32 %v3469_v27, %v3108_v35 }
 0x3ad   :  { %v3471_v28 = vpop.f32.mrf.mxu0 }
 0x3ae   :  { %v3472_v38 = vadd.f32 %v3471_v28, %v3112_v33 }
 0x3af   :  { %v3473_v36 = vpop.f32.mrf.mxu0 }
 0x3b0   :  { %v3474_v43 = vadd.f32 %v3473_v36, %v3108_v35 }
 0x3b1   :  { %v3475_v41 = vpop.f32.mrf.mxu0 }
 0x3b2   :  { %v3476_v12 = vadd.f32 %v3475_v41, %v3112_v33 }
 0x3eb   :  { %v3512_v37 = vpop.f32.mrf.mxu1 }
 0x3ec   :  { %v3513_v45 = vadd.f32 %v3512_v37, %v3470_v39 }
 0x3ed   :  { %v3514_v42 = vpop.f32.mrf.mxu1 }
 0x3ee   :  { %v3515_v44 = vadd.f32 %v3514_v42, %v3472_v38  ;;  %v3525_v32 = vmul.f32 0.01, %v3513_v45  ;;  %vm3521_vm4 = vcmp.gt.f32.partialorder %v3513_v45, 0.0 }
 0x3ef   :  { %v3516_v46 = vpop.f32.mrf.mxu1 }
 0x3f0   :  { %v3517_v31 = vadd.f32 %v3516_v46, %v3474_v43  ;;  %v3526_v48 = vmul.f32 0.01, %v3515_v44  ;;  %vm3522_vm3 = vcmp.gt.f32.partialorder %v3515_v44, 0.0  ;;  %v3529_v50 = vsel %vm3521_vm4, %v3513_v45, %v3525_v32 }
 0x3f1   :  { %v3518_v26 = vpop.f32.mrf.mxu1 }
 0x3f2   :  { %vm3523_vm2 = vcmp.gt.f32.partialorder %v3517_v31, 0.0  ;;  %v3527_v49 = vmul.f32 0.01, %v3517_v31  ;;  %v3519_v53 = vadd.f32 %v3518_v26, %v3476_v12  ;;  %v3530_v54 = vsel %vm3522_vm3, %v3515_v44, %v3526_v48 }
 0x3f4   :  { %vm3524_vm5 = vcmp.gt.f32.partialorder %v3519_v53, 0.0  ;;  %v3528_v30 = vmul.f32 0.01, %v3519_v53  ;;  %v3531_v47 = vsel %vm3523_vm2, %v3517_v31, %v3527_v49 }
 0x3f5   :  { %v3533_v52 = vpack.c.bf16 %v3531_v47, %v3529_v50 }
 0x3f6   :  { %v3532_v13 = vsel %vm3524_vm5, %v3519_v53, %v3528_v30 }
 0x3f7   :  { %v3534_v51 = vpack.c.bf16 %v3532_v13, %v3530_v54 }
 0x3f9   :  { %3702 = vmatprep.mubr.bf16.mxu0 %v3534_v51 }
 0x3fa   :  { %3703 = vmatmul.mubr.bf16.vlgmr.msra.gmra.mxu0 %v3533_v52 }
 0x4ba   :  { %v4231_v55 = vpop.f32.mrf.mxu0 }
 0x4bc   :  { %v4232_v56 = vpop.f32.mrf.mxu0 }
 0x4bd   :  { %v4233_v58 = vadd.f32 %v4232_v56, %v4231_v55 }
 0x4be   :  { %v4234_v57 = vpop.f32.mrf.mxu0 }
 0x4bf   :  { %v3705_v63 = vadd.f32 %v4233_v58, %v4189_v60 }
 0x4c0   :  { %v4235_v61 = vpop.f32.mrf.mxu0 }
 0x4c1   :  { %v4236_v62 = vadd.f32 %v4235_v61, %v4234_v57 }
 0x4c3   :  { %v3708_v0 = vadd.f32 %v4236_v62, %v4189_v60 }
 0x4c5   :  { %v4213_v1 = vpack.c.bf16 %v3708_v0, %v3705_v63 }
 0x4c7   :  { %4214 = vst [vmem:[#allocation13] sm:$0xff] %v4213_v1  }
 0x4c8   :  { %5062 = shalt.err (!%p5059_p6)
}
 0x4c9   :  { %3732 = dma.vmem_to_hbm [thread:$0]  %s3727_s1, 128, %s5267_s9, [#allocation4], %s5087_s24, %s5087_s24, %s5093_s2  }
 0x4ca   :  { %5079 = dma.done.wait [#allocation4], 128  }
 0x4cb   :  { %5080 = vsyncadd [#allocation4], 4294967168 }
 0x4cc   :  { %3736 = vsyncpa [#allocation3], 1 }
 0x4cd   :  { %3737 = vsyncpa [#allocation6], 1 }
 0x4ce   :  { %3738 = vsyncpa [#allocation9], 1 }
 0x4cf   :  { %3739 = vsyncpa [#allocation12], 1 }
 0x4d0   :  { %3740 = vsyncpa [#allocation4], 1 }

// kernel: tpu_custom_call.1
= control target key start
LH: loop header
LB: loop body
LE: loop exit
PB: predicated region body
PF: predicated region fallthrough
CT: control target
= control target key end

     0   :  { %14 = vsyncpa [#allocation3], 0  ;;  %s5258_s0 = inlined_call_operand.hbm [shape: f32[16,1000], index: 0, kind: input, shape index: {}]   ;;  %s5259_s1 = inlined_call_operand.hbm [shape: bf16[1000,512], index: 1, kind: input, shape index: {}]   ;;  %s5260_s2 = inlined_call_operand.hbm [shape: f32[1,512], index: 2, kind: input, shape index: {}]   ;;  %s5261_s3 = inlined_call_operand.hbm [shape: bf16[512,512], index: 3, kind: input, shape index: {}]   ;;  %s5262_s4 = inlined_call_operand.vmem [shape: f32[1,512], index: 4, kind: input, shape index: {}]   ;;  %s5263_s5 = inlined_call_operand.hbm [shape: bf16[512,256], index: 5, kind: input, shape index: {}]   ;;  %s5264_s6 = inlined_call_operand.vmem [shape: f32[1,256], index: 6, kind: input, shape index: {}]   ;;  %s5265_s7 = inlined_call_operand.hbm [shape: bf16[256,128], index: 7, kind: input, shape index: {}]   ;;  %s5266_s8 = inlined_call_operand.vmem [shape: f32[1,128], index: 8, kind: input, shape index: {}]   ;;  %s5267_s9 = inlined_call_operand.hbm [shape: bf16[16,128], index: 9, kind: output, shape index: {}]  }
   0x1   :  { %15 = vsyncpa [#allocation6], 0 }
   0x2   :  { %16 = vsyncpa [#allocation9], 0 }
   0x3   :  { %17 = vsyncpa [#allocation12], 0 }
   0x4   :  { %18 = vsyncpa [#allocation4], 0  ;;  %s5081_s30 = smov [#allocation5]  }
   0x5   :  { %s36_s10 = sshll.u32 %s5081_s30, 4  ;;  %s37_s10 = int_to_ptr.vmem [resolvable:$true] %s36_s10 }
   0x6   :  { %s4939_s11 = scalar_lea.vmem %s37_s10, 32000  ;;  %p4944_p1 = scmp.lt.s32.totalorder %s37_s10, %s37_s10 }
   0x7   :  { %p4940_p0 = scmp.ne.s32.totalorder %s37_s10, %s4939_s11  ;;  %p4945_p2 = scmp.lt.s32.totalorder %s4939_s11, %s4939_s11 }
   0x9   :  { %p4946_p3 = por %p4945_p2, %p4944_p1 }
   0xb   :  { %p4947_p4 = pnand %p4946_p3, %p4940_p0 }
   0xd   :  { %4950 = shalt.err (!%p4947_p4)
}
   0xe   :  { %s5082_s12 = smov 256   ;;  %s5083_s13 = smov 16  }
   0xf   :  { %42 = dma.hbm_to_vmem [thread:$0]  %s5259_s1, 32000, %s37_s10, [#allocation6], %s5082_s12, %s5082_s12, %s5083_s13  }
  0x10   :  { %s5084_s16 = smov [#allocation8]   ;;  %s5085_s18 = smov [#allocation2]  }
  0x11   :  { %s58_s17 = sshll.u32 %s5084_s16, 4  ;;  %s24_s19 = sshll.u32 %s5085_s18, 4  ;;  %s59_s17 = int_to_ptr.vmem [resolvable:$true] %s58_s17  ;;  %s25_s19 = int_to_ptr.vmem [resolvable:$true] %s24_s19 }
  0x12   :  { %s4959_s20 = scalar_lea.vmem %s59_s17, 16384  ;;  %p4964_p6 = scmp.lt.s32.totalorder %s59_s17, %s59_s17 }
  0x13   :  { %p4960_p5 = scmp.ne.s32.totalorder %s59_s17, %s4959_s20  ;;  %p4965_p7 = scmp.lt.s32.totalorder %s4959_s20, %s4959_s20 }
  0x15   :  { %p4966_p8 = por %p4965_p7, %p4964_p6 }
  0x17   :  { %p4967_p9 = pnand %p4966_p8, %p4960_p5 }
  0x19   :  { %4970 = shalt.err (!%p4967_p9)
}
  0x1a   :  { %64 = dma.hbm_to_vmem [thread:$0]  %s5261_s3, 16384, %s59_s17, [#allocation9], %s5082_s12, %s5082_s12, %s5083_s13  }
  0x1b   :  { %s4979_s23 = scalar_lea.vmem %s25_s19, 2048  ;;  %p4984_p11 = scmp.lt.s32.totalorder %s25_s19, %s25_s19 }
  0x1c   :  { %p4980_p10 = scmp.ne.s32.totalorder %s25_s19, %s4979_s23  ;;  %p4985_p12 = scmp.lt.s32.totalorder %s4979_s23, %s4979_s23 }
  0x1e   :  { %p4986_p13 = por %p4985_p12, %p4984_p11 }
  0x20   :  { %p4987_p0 = pnand %p4986_p13, %p4980_p10 }
  0x22   :  { %4990 = shalt.err (!%p4987_p0)
}
  0x23   :  { %s5086_s1 = smov 1024   ;;  %s5087_s24 = smov 64  }
  0x24   :  { %30 = dma.hbm_to_vmem [thread:$0]  %s5258_s0, 2048, %s25_s19, [#allocation3], %s5086_s1, %s5086_s1, %s5087_s24  }
  0x25   :  { %s5088_s27 = smov [#allocation7]   ;;  %s5089_s29 = smov [#allocation10]  }
  0x26   :  { %s49_s28 = sshll.u32 %s5088_s27, 4  ;;  %s72_s3 = sshll.u32 %s5089_s29, 4  ;;  %s50_s28 = int_to_ptr.vmem [resolvable:$true] %s49_s28  ;;  %s73_s3 = int_to_ptr.vmem [resolvable:$true] %s72_s3 }
  0x27   :  { %s4999_s30 = scalar_lea.vmem %s50_s28, 64  ;;  %p5004_p2 = scmp.lt.s32.totalorder %s50_s28, %s50_s28 }
  0x28   :  { %p5000_p1 = scmp.ne.s32.totalorder %s50_s28, %s4999_s30  ;;  %p5005_p3 = scmp.lt.s32.totalorder %s4999_s30, %s4999_s30 }
  0x2a   :  { %p5006_p4 = por %p5005_p3, %p5004_p2 }
  0x2c   :  { %p5007_p5 = pnand %p5006_p4, %p5000_p1 }
  0x2e   :  { %5010 = shalt.err (!%p5007_p5)
}
  0x2f   :  { %52 = dma.hbm_to_vmem [thread:$0]  %s5260_s2, 64, %s50_s28, [#allocation6]  }
  0x30   :  { %s5019_s12 = scalar_lea.vmem %s73_s3, 8192  ;;  %p5024_p7 = scmp.lt.s32.totalorder %s73_s3, %s73_s3 }
  0x31   :  { %p5020_p6 = scmp.ne.s32.totalorder %s73_s3, %s5019_s12  ;;  %p5025_p8 = scmp.lt.s32.totalorder %s5019_s12, %s5019_s12 }
  0x33   :  { %p5026_p9 = por %p5025_p8, %p5024_p7 }
  0x35   :  { %p5027_p10 = pnand %p5026_p9, %p5020_p6 }
  0x37   :  { %5030 = shalt.err (!%p5027_p10)
}
  0x38   :  { %s5090_s0 = smov 128   ;;  %s5091_s13 = smov 8  }
  0x39   :  { %78 = dma.hbm_to_vmem [thread:$0]  %s5263_s5, 8192, %s73_s3, [#allocation9], %s5090_s0, %s5090_s0, %s5091_s13  }
  0x3a   :  { %s5092_s16 = smov [#allocation11]  }
  0x3b   :  { %s86_s17 = sshll.u32 %s5092_s16, 4  ;;  %s87_s17 = int_to_ptr.vmem [resolvable:$true] %s86_s17 }
  0x3c   :  { %s5039_s18 = scalar_lea.vmem %s87_s17, 2048  ;;  %p5044_p12 = scmp.lt.s32.totalorder %s87_s17, %s87_s17 }
  0x3d   :  { %p5040_p11 = scmp.ne.s32.totalorder %s87_s17, %s5039_s18  ;;  %p5045_p13 = scmp.lt.s32.totalorder %s5039_s18, %s5039_s18 }
  0x3f   :  { %p5046_p0 = por %p5045_p13, %p5044_p12 }
  0x41   :  { %p5047_p1 = pnand %p5046_p0, %p5040_p11 }
  0x43   :  { %5050 = shalt.err (!%p5047_p1)
}
  0x44   :  { %s5093_s2 = smov 4  }
  0x45   :  { %92 = dma.hbm_to_vmem [thread:$0]  %s5265_s7, 2048, %s87_s17, [#allocation12], %s5087_s24, %s5087_s24, %s5093_s2  }
  0x46   :  { %5071 = dma.done.wait [#allocation3], 2048  }
  0x47   :  { %5072 = vsyncadd [#allocation3], 4294965248 }
  0x48   :  { %5073 = dma.done.wait [#allocation6], 32064  }
  0x49   :  { %5074 = vsyncadd [#allocation6], 4294935232 }
  0x4a   :  { %5075 = dma.done.wait [#allocation9], 24576  }
  0x4b   :  { %5076 = vsyncadd [#allocation9], 4294942720 }
  0x4c   :  { %5077 = dma.done.wait [#allocation12], 2048  }
  0x4d   :  { %5078 = vsyncadd [#allocation12], 4294965248  ;;  %v4251_v0 = vld [vmem:[#allocation5 + $0xe4] ss:$16 sps:$4 sm:$0xff]   ;;  %v4255_v2 = vld [vmem:[#allocation5 + $0xe0] ss:$16 sps:$4 sm:$0xff]  }
  0x4e   :  { %v4253_v1 = vld [vmem:[#allocation5 + $0x2e4] ss:$16 sps:$4 sm:$0xff]   ;;  %1677 = vmatprep.subr.bf16.mxu0 %v4251_v0  ;;  %v4256_v3 = vld [vmem:[#allocation5 + $0x2e0] ss:$16 sps:$4 sm:$0xff]   ;;  %v115_v46 = vld [vmem:[#allocation2 + $0x8] sm:$0xff]  ;;  %vm1660_vm0 = vcmask 850944  }
  0x4f   :  { %1720 = vmatprep.subr.bf16.mxu1 %v4253_v1  ;;  %v4257_v4 = vld [vmem:[#allocation5 + $0xc4] ss:$16 sps:$4 sm:$0xff]   ;;  %1678 = vmatpush1.bf16.msra.mxu0 %v4255_v2  ;;  %v4261_v6 = vld [vmem:[#allocation5 + $0xc0] ss:$16 sps:$4 sm:$0xff]   ;;  %v123_v47 = vld [vmem:[#allocation2 + $0x48] sm:$0xff]  ;;  %vm1664_vm1 = vcmask 1043456  }
  0x50   :  { %1721 = vmatpush1.bf16.msra.mxu1 %v4256_v3  ;;  %v4259_v5 = vld [vmem:[#allocation5 + $0x2c4] ss:$16 sps:$4 sm:$0xff]   ;;  %1679 = vmatprep.subr.bf16.mxu0 %v4257_v4  ;;  %v4262_v7 = vld [vmem:[#allocation5 + $0x2c0] ss:$16 sps:$4 sm:$0xff]   ;;  %v117_v48 = vld [vmem:[#allocation2 + $0x18] sm:$0xff]  ;;  %v5167_v53 = vpack.c.bf16 %v123_v47, %v115_v46  ;;  %s5094_s23 = smov [#allocation13]  }
  0x51   :  { %1722 = vmatprep.subr.bf16.mxu1 %v4259_v5  ;;  %v4263_v8 = vld [vmem:[#allocation5 + $0xa4] ss:$16 sps:$4 sm:$0xff]   ;;  %v4267_v10 = vld [vmem:[#allocation5 + $0xa0] ss:$16 sps:$4 sm:$0xff]   ;;  %v125_v49 = vld [vmem:[#allocation2 + $0x58] sm:$0xff]  ;;  %s3726_s1 = sshll.u32 %s5094_s23, 4  ;;  %s3727_s1 = int_to_ptr.vmem [resolvable:$true] %s3726_s1 }
  0x52   :  { %v4265_v9 = vld [vmem:[#allocation5 + $0x2a4] ss:$16 sps:$4 sm:$0xff]   ;;  %v4268_v11 = vld [vmem:[#allocation5 + $0x2a0] ss:$16 sps:$4 sm:$0xff]   ;;  %v5169_v54 = vpack.c.bf16 %v125_v49, %v117_v48  ;;  %1709 = vmatprep.mubr.bf16.mxu0 %v5167_v53  ;;  %s5051_s25 = scalar_lea.vmem %s3727_s1, 128  ;;  %p5056_p3 = scmp.lt.s32.totalorder %s3727_s1, %s3727_s1 }
  0x53   :  { %1680 = vmatpush1.bf16.msra.mxu0 %v4261_v6  ;;  %v4269_v12 = vld [vmem:[#allocation5 + $0x84] ss:$16 sps:$4 sm:$0xff]   ;;  %v4273_v14 = vld [vmem:[#allocation5 + $0x80] ss:$16 sps:$4 sm:$0xff]   ;;  %p5052_p2 = scmp.ne.s32.totalorder %s3727_s1, %s5051_s25  ;;  %p5057_p4 = scmp.lt.s32.totalorder %s5051_s25, %s5051_s25 }
  0x54   :  { %1723 = vmatpush1.bf16.msra.mxu1 %v4262_v7  ;;  %1681 = vmatprep.subr.bf16.mxu0 %v4263_v8  ;;  %v4271_v13 = vld [vmem:[#allocation5 + $0x284] ss:$16 sps:$4 sm:$0xff]   ;;  %v4274_v15 = vld [vmem:[#allocation5 + $0x280] ss:$16 sps:$4 sm:$0xff]  }
  0x55   :  { %1724 = vmatprep.subr.bf16.mxu1 %v4265_v9  ;;  %v4275_v16 = vld [vmem:[#allocation5 + $0x64] ss:$16 sps:$4 sm:$0xff]   ;;  %v4279_v18 = vld [vmem:[#allocation5 + $0x60] ss:$16 sps:$4 sm:$0xff]   ;;  %1752 = vmatprep.mubr.bf16.mxu1 %v5169_v54  ;;  %p5058_p5 = por %p5057_p4, %p5056_p3 }
  0x56   :  { %v4277_v17 = vld [vmem:[#allocation5 + $0x264] ss:$16 sps:$4 sm:$0xff]   ;;  %v4280_v19 = vld [vmem:[#allocation5 + $0x260] ss:$16 sps:$4 sm:$0xff]  }
  0x57   :  { %1682 = vmatpush1.bf16.msra.mxu0 %v4267_v10  ;;  %v4281_v20 = vld [vmem:[#allocation5 + $0x44] ss:$16 sps:$4 sm:$0xff]   ;;  %v4285_v22 = vld [vmem:[#allocation5 + $0x40] ss:$16 sps:$4 sm:$0xff]   ;;  %p5059_p6 = pnand %p5058_p5, %p5052_p2 }
  0x58   :  { %1725 = vmatpush1.bf16.msra.mxu1 %v4268_v11  ;;  %1683 = vmatprep.subr.bf16.mxu0 %v4269_v12  ;;  %v4283_v21 = vld [vmem:[#allocation5 + $0x244] ss:$16 sps:$4 sm:$0xff]   ;;  %v4286_v23 = vld [vmem:[#allocation5 + $0x240] ss:$16 sps:$4 sm:$0xff]  }
  0x59   :  { %1726 = vmatprep.subr.bf16.mxu1 %v4271_v13  ;;  %v4287_v24 = vld [vmem:[#allocation5 + $0x24] ss:$16 sps:$4 sm:$0xff]   ;;  %v4291_v26 = vld [vmem:[#allocation5 + $0x20] ss:$16 sps:$4 sm:$0xff]  }
  0x5a   :  { %v4289_v25 = vld [vmem:[#allocation5 + $0x224] ss:$16 sps:$4 sm:$0xff]   ;;  %v4292_v27 = vld [vmem:[#allocation5 + $0x220] ss:$16 sps:$4 sm:$0xff]  }
  0x5b   :  { %1684 = vmatpush1.bf16.msra.mxu0 %v4273_v14  ;;  %v4293_v28 = vld [vmem:[#allocation5 + $0x4] ss:$16 sps:$4 sm:$0xff]   ;;  %v4297_v30 = vld [vmem:[#allocation5] ss:$16 sps:$4 sm:$0xff]  }
  0x5c   :  { %1727 = vmatpush1.bf16.msra.mxu1 %v4274_v15  ;;  %1685 = vmatprep.subr.bf16.mxu0 %v4275_v16  ;;  %v4295_v29 = vld [vmem:[#allocation5 + $0x204] ss:$16 sps:$4 sm:$0xff]   ;;  %v4298_v31 = vld [vmem:[#allocation5 + $0x200] ss:$16 sps:$4 sm:$0xff]  }
  0x5d   :  { %1728 = vmatprep.subr.bf16.mxu1 %v4277_v17  ;;  %v4299_v32 = vld [vmem:[#allocation5 + $0x1e4] ss:$16 sps:$4 sm:$0xff]   ;;  %v4303_v34 = vld [vmem:[#allocation5 + $0x1e0] ss:$16 sps:$4 sm:$0xff]  }
  0x5e   :  { %v4301_v33 = vld [vmem:[#allocation5 + $0x3e4] ss:$16 sps:$4 sm:$0xff]   ;;  %v4304_v35 = vld [vmem:[#allocation5 + $0x3e0] ss:$16 sps:$4 sm:$0xff]  }
  0x5f   :  { %1686 = vmatpush1.bf16.msra.mxu0 %v4279_v18  ;;  %v4305_v36 = vld [vmem:[#allocation5 + $0x1c4] ss:$16 sps:$4 sm:$0xff]   ;;  %v4309_v38 = vld [vmem:[#allocation5 + $0x1c0] ss:$16 sps:$4 sm:$0xff]  }
  0x60   :  { %1729 = vmatpush1.bf16.msra.mxu1 %v4280_v19  ;;  %1687 = vmatprep.subr.bf16.mxu0 %v4281_v20  ;;  %v4307_v37 = vld [vmem:[#allocation5 + $0x3c4] ss:$16 sps:$4 sm:$0xff]   ;;  %v4310_v39 = vld [vmem:[#allocation5 + $0x3c0] ss:$16 sps:$4 sm:$0xff]  }
  0x61   :  { %1730 = vmatprep.subr.bf16.mxu1 %v4283_v21  ;;  %v4311_v40 = vld [vmem:[#allocation5 + $0x1a4] ss:$16 sps:$4 sm:$0xff]   ;;  %v4315_v42 = vld [vmem:[#allocation5 + $0x1a0] ss:$16 sps:$4 sm:$0xff]  }
  0x62   :  { %v4313_v41 = vld [vmem:[#allocation5 + $0x3a4] ss:$16 sps:$4 sm:$0xff]   ;;  %v4316_v43 = vld [vmem:[#allocation5 + $0x3a0] ss:$16 sps:$4 sm:$0xff]  }
  0x63   :  { %1688 = vmatpush1.bf16.msra.mxu0 %v4285_v22  ;;  %v4317_v44 = vld [vmem:[#allocation5 + $0x184] ss:$16 sps:$4 sm:$0xff]   ;;  %v4321_v50 = vld [vmem:[#allocation5 + $0x180] ss:$16 sps:$4 sm:$0xff]  }
  0x64   :  { %1731 = vmatpush1.bf16.msra.mxu1 %v4286_v23  ;;  %1689 = vmatprep.subr.bf16.mxu0 %v4287_v24  ;;  %v4319_v45 = vld [vmem:[#allocation5 + $0x384] ss:$16 sps:$4 sm:$0xff]   ;;  %v4322_v51 = vld [vmem:[#allocation5 + $0x380] ss:$16 sps:$4 sm:$0xff]  }
  0x65   :  { %1732 = vmatprep.subr.bf16.mxu1 %v4289_v25  ;;  %v4323_v52 = vld [vmem:[#allocation5 + $0x164] ss:$16 sps:$4 sm:$0xff]   ;;  %v4327_v56 = vld [vmem:[#allocation5 + $0x160] ss:$16 sps:$4 sm:$0xff]  }
  0x66   :  { %v4325_v55 = vld [vmem:[#allocation5 + $0x364] ss:$16 sps:$4 sm:$0xff]   ;;  %v4328_v57 = vld [vmem:[#allocation5 + $0x360] ss:$16 sps:$4 sm:$0xff]  }
  0x67   :  { %1690 = vmatpush1.bf16.msra.mxu0 %v4291_v26  ;;  %v4329_v58 = vld [vmem:[#allocation5 + $0x144] ss:$16 sps:$4 sm:$0xff]   ;;  %v4333_v60 = vld [vmem:[#allocation5 + $0x140] ss:$16 sps:$4 sm:$0xff]  }
  0x68   :  { %1733 = vmatpush1.bf16.msra.mxu1 %v4292_v27  ;;  %1691 = vmatprep.subr.bf16.mxu0 %v4293_v28  ;;  %v4331_v59 = vld [vmem:[#allocation5 + $0x344] ss:$16 sps:$4 sm:$0xff]   ;;  %v4334_v61 = vld [vmem:[#allocation5 + $0x340] ss:$16 sps:$4 sm:$0xff]  }
  0x69   :  { %1734 = vmatprep.subr.bf16.mxu1 %v4295_v29  ;;  %v4335_v62 = vld [vmem:[#allocation5 + $0x124] ss:$16 sps:$4 sm:$0xff]   ;;  %v4339_v0 = vld [vmem:[#allocation5 + $0x120] ss:$16 sps:$4 sm:$0xff]  }
  0x6a   :  { %v4337_v63 = vld [vmem:[#allocation5 + $0x324] ss:$16 sps:$4 sm:$0xff]   ;;  %v4340_v1 = vld [vmem:[#allocation5 + $0x320] ss:$16 sps:$4 sm:$0xff]  }
  0x6b   :  { %1692 = vmatpush1.bf16.msra.mxu0 %v4297_v30  ;;  %v4341_v2 = vld [vmem:[#allocation5 + $0x104] ss:$16 sps:$4 sm:$0xff]   ;;  %v4345_v4 = vld [vmem:[#allocation5 + $0x100] ss:$16 sps:$4 sm:$0xff]  }
  0x6c   :  { %1735 = vmatpush1.bf16.msra.mxu1 %v4298_v31  ;;  %1693 = vmatprep.subr.bf16.mxu0 %v4299_v32  ;;  %v4343_v3 = vld [vmem:[#allocation5 + $0x304] ss:$16 sps:$4 sm:$0xff]   ;;  %v4346_v5 = vld [vmem:[#allocation5 + $0x300] ss:$16 sps:$4 sm:$0xff]  }
  0x6d   :  { %1736 = vmatprep.subr.bf16.mxu1 %v4301_v33  ;;  %v114_v6 = vld [vmem:[#allocation2] sm:$0xff]  ;;  %v116_v8 = vld [vmem:[#allocation2 + $0x10] sm:$0xff] }
  0x6e   :  { %v122_v7 = vld [vmem:[#allocation2 + $0x40] sm:$0xff]  ;;  %v124_v9 = vld [vmem:[#allocation2 + $0x50] sm:$0xff] }
  0x6f   :  { %1694 = vmatpush2.bf16.msra.mxu0 %v4303_v34  ;;  %v4349_v10 = vld [vmem:[#allocation5 + $0x4e4] ss:$16 sps:$4 sm:$0xff]   ;;  %v5173_v12 = vpack.c.bf16 %v122_v7, %v114_v6  ;;  %v5175_v13 = vpack.c.bf16 %v124_v9, %v116_v8  ;;  %v4347_v14 = vld [vmem:[#allocation5 + $0x4e0] ss:$16 sps:$4 sm:$0xff]  }
  0x70   :  { %1737 = vmatpush2.bf16.msra.mxu1 %v4304_v35  ;;  %1695 = vmatprep.subr.bf16.mxu0 %v4305_v36  ;;  %v4352_v11 = vld [vmem:[#allocation5 + $0x6e4] ss:$16 sps:$4 sm:$0xff]   ;;  %v4350_v15 = vld [vmem:[#allocation5 + $0x6e0] ss:$16 sps:$4 sm:$0xff]  }
  0x71   :  { %1738 = vmatprep.subr.bf16.mxu1 %v4307_v37  ;;  %v4355_v16 = vld [vmem:[#allocation5 + $0x4c4] ss:$16 sps:$4 sm:$0xff]   ;;  %v4353_v18 = vld [vmem:[#allocation5 + $0x4c0] ss:$16 sps:$4 sm:$0xff]   ;;  %v121_v37 = vld [vmem:[#allocation2 + $0x38] sm:$0xff] }
  0x72   :  { %v4358_v17 = vld [vmem:[#allocation5 + $0x6c4] ss:$16 sps:$4 sm:$0xff]   ;;  %v4356_v19 = vld [vmem:[#allocation5 + $0x6c0] ss:$16 sps:$4 sm:$0xff]  }
  0x73   :  { %1696 = vmatpush2.bf16.msra.mxu0 %v4309_v38  ;;  %v4361_v20 = vld [vmem:[#allocation5 + $0x4a4] ss:$16 sps:$4 sm:$0xff]   ;;  %v4359_v22 = vld [vmem:[#allocation5 + $0x4a0] ss:$16 sps:$4 sm:$0xff]   ;;  %v129_v38 = vld [vmem:[#allocation2 + $0x78] sm:$0xff] }
  0x74   :  { %1739 = vmatpush2.bf16.msra.mxu1 %v4310_v39  ;;  %1697 = vmatprep.subr.bf16.mxu0 %v4311_v40  ;;  %v4364_v21 = vld [vmem:[#allocation5 + $0x6a4] ss:$16 sps:$4 sm:$0xff]   ;;  %v4362_v23 = vld [vmem:[#allocation5 + $0x6a0] ss:$16 sps:$4 sm:$0xff]   ;;  %v5179_v40 = vpack.c.bf16 %v129_v38, %v121_v37  ;;  %v4451_v37 = vld [vmem:[#allocation5 + $0x2c8] ss:$16 sps:$4 sm:$0xff]  }
  0x75   :  { %1740 = vmatprep.subr.bf16.mxu1 %v4313_v41  ;;  %v4367_v24 = vld [vmem:[#allocation5 + $0x484] ss:$16 sps:$4 sm:$0xff]   ;;  %v4365_v26 = vld [vmem:[#allocation5 + $0x480] ss:$16 sps:$4 sm:$0xff]   ;;  %v4456_v38 = vld [vmem:[#allocation5 + $0x8c] ss:$16 sps:$4 sm:$0xff]  }
  0x76   :  { %v4370_v25 = vld [vmem:[#allocation5 + $0x684] ss:$16 sps:$4 sm:$0xff]   ;;  %v4368_v27 = vld [vmem:[#allocation5 + $0x680] ss:$16 sps:$4 sm:$0xff]  }
  0x77   :  { %1698 = vmatpush2.bf16.msra.mxu0 %v4315_v42  ;;  %v4373_v28 = vld [vmem:[#allocation5 + $0x464] ss:$16 sps:$4 sm:$0xff]   ;;  %v4371_v30 = vld [vmem:[#allocation5 + $0x460] ss:$16 sps:$4 sm:$0xff]  }
  0x78   :  { %1741 = vmatpush2.bf16.msra.mxu1 %v4316_v43  ;;  %1699 = vmatprep.subr.bf16.mxu0 %v4317_v44  ;;  %v4376_v29 = vld [vmem:[#allocation5 + $0x664] ss:$16 sps:$4 sm:$0xff]   ;;  %v4374_v31 = vld [vmem:[#allocation5 + $0x660] ss:$16 sps:$4 sm:$0xff]   ;;  %v119_v43 = vld [vmem:[#allocation2 + $0x28] sm:$0xff] }
  0x79   :  { %1742 = vmatprep.subr.bf16.mxu1 %v4319_v45  ;;  %v4379_v32 = vld [vmem:[#allocation5 + $0x444] ss:$16 sps:$4 sm:$0xff]   ;;  %v4377_v34 = vld [vmem:[#allocation5 + $0x440] ss:$16 sps:$4 sm:$0xff]   ;;  %v127_v44 = vld [vmem:[#allocation2 + $0x68] sm:$0xff] }
  0x7a   :  { %v4382_v33 = vld [vmem:[#allocation5 + $0x644] ss:$16 sps:$4 sm:$0xff]   ;;  %v4380_v35 = vld [vmem:[#allocation5 + $0x640] ss:$16 sps:$4 sm:$0xff]   ;;  %v5183_v47 = vpack.c.bf16 %v127_v44, %v119_v43  ;;  %v4462_v43 = vld [vmem:[#allocation5 + $0x6c] ss:$16 sps:$4 sm:$0xff]  }
  0x7b   :  { %1700 = vmatpush2.bf16.msra.mxu0 %v4321_v50  ;;  %v4385_v36 = vld [vmem:[#allocation5 + $0x424] ss:$16 sps:$4 sm:$0xff]   ;;  %v4383_v41 = vld [vmem:[#allocation5 + $0x420] ss:$16 sps:$4 sm:$0xff]   ;;  %v4460_v44 = vld [vmem:[#allocation5 + $0x68] ss:$16 sps:$4 sm:$0xff]  }
  0x7c   :  { %1743 = vmatpush2.bf16.msra.mxu1 %v4322_v51  ;;  %1701 = vmatprep.subr.bf16.mxu0 %v4323_v52  ;;  %v4388_v39 = vld [vmem:[#allocation5 + $0x624] ss:$16 sps:$4 sm:$0xff]   ;;  %v4386_v42 = vld [vmem:[#allocation5 + $0x620] ss:$16 sps:$4 sm:$0xff]  }
  0x7d   :  { %1744 = vmatprep.subr.bf16.mxu1 %v4325_v55  ;;  %v4391_v45 = vld [vmem:[#allocation5 + $0x404] ss:$16 sps:$4 sm:$0xff]   ;;  %v4389_v49 = vld [vmem:[#allocation5 + $0x400] ss:$16 sps:$4 sm:$0xff]  }
  0x7e   :  { %v4394_v46 = vld [vmem:[#allocation5 + $0x604] ss:$16 sps:$4 sm:$0xff]   ;;  %v4392_v50 = vld [vmem:[#allocation5 + $0x600] ss:$16 sps:$4 sm:$0xff]  }
  0x7f   :  { %1702 = vmatpush2.bf16.msra.mxu0 %v4327_v56  ;;  %v386_v48 = vld [vmem:[#allocation5 + $0x7c0] sm:$0xff] }
  0x80   :  { %1745 = vmatpush2.bf16.msra.mxu1 %v4328_v57  ;;  %1703 = vmatprep.subr.bf16.mxu0 %v4329_v58  ;;  %v4397_v51 = vld [vmem:[#allocation5 + $0x5e4] ss:$16 sps:$4 sm:$0xff]   ;;  %v3990_v52 = vcombine.high %v386_v48, %v386_v48  ;;  %v3989_v55 = vcombine.low %v386_v48, %v386_v48  ;;  %v4395_v56 = vld [vmem:[#allocation5 + $0x5e0] ss:$16 sps:$4 sm:$0xff]   ;;  %v4471_v48 = vld [vmem:[#allocation5 + $0x26c] ss:$16 sps:$4 sm:$0xff]  }
  0x81   :  { %1746 = vmatprep.subr.bf16.mxu1 %v4331_v59  ;;  %v4402_v58 = vld [vmem:[#allocation5 + $0x5c4] ss:$16 sps:$4 sm:$0xff]   ;;  %v4418_v8 = vld [vmem:[#allocation5 + $0x560] ss:$16 sps:$4 sm:$0xff]  }
  0x82   :  { %v1666_v57 = vsel %vm1664_vm1, %v3989_v55, 0  ;;  %v4405_v59 = vld [vmem:[#allocation5 + $0x7a4] ss:$16 sps:$4 sm:$0xff]   ;;  %v4421_v9 = vld [vmem:[#allocation5 + $0x740] ss:$16 sps:$4 sm:$0xff]  }
  0x83   :  { %1704 = vmatpush2.bf16.msra.mxu0 %v4333_v60  ;;  %v4400_v60 = vld [vmem:[#allocation5 + $0x5c0] ss:$16 sps:$4 sm:$0xff]   ;;  %v4420_v6 = vld [vmem:[#allocation5 + $0x564] ss:$16 sps:$4 sm:$0xff]   ;;  %v4475_v55 = vld [vmem:[#allocation5 + $0x248] ss:$16 sps:$4 sm:$0xff]  }
  0x84   :  { %1747 = vmatpush2.bf16.msra.mxu1 %v4334_v61  ;;  %1705 = vmatprep.subr.bf16.mxu0 %v4335_v62  ;;  %v4403_v61 = vld [vmem:[#allocation5 + $0x7a0] ss:$16 sps:$4 sm:$0xff]   ;;  %v4408_v62 = vld [vmem:[#allocation5 + $0x5a4] ss:$16 sps:$4 sm:$0xff]  }
  0x85   :  { %1748 = vmatprep.subr.bf16.mxu1 %v4337_v63  ;;  %v4411_v63 = vld [vmem:[#allocation5 + $0x784] ss:$16 sps:$4 sm:$0xff]  }
  0x86   :  { %v4423_v7 = vld [vmem:[#allocation5 + $0x744] ss:$16 sps:$4 sm:$0xff]  }
  0x87   :  { %1706 = vmatpush2.bf16.msra.mxu0 %v4339_v0  ;;  %v4406_v0 = vld [vmem:[#allocation5 + $0x5a0] ss:$16 sps:$4 sm:$0xff]  }
  0x88   :  { %1749 = vmatpush2.bf16.msra.mxu1 %v4340_v1  ;;  %1707 = vmatprep.subr.bf16.mxu0 %v4341_v2  ;;  %v4409_v1 = vld [vmem:[#allocation5 + $0x780] ss:$16 sps:$4 sm:$0xff]   ;;  %v4414_v2 = vld [vmem:[#allocation5 + $0x584] ss:$16 sps:$4 sm:$0xff]  }
  0x89   :  { %1750 = vmatprep.subr.bf16.mxu1 %v4343_v3  ;;  %v4417_v3 = vld [vmem:[#allocation5 + $0x764] ss:$16 sps:$4 sm:$0xff]  }
  0x8b   :  { %1708 = vmatpush2.bf16.msra.mxu0 %v4345_v4  ;;  %v4412_v4 = vld [vmem:[#allocation5 + $0x580] ss:$16 sps:$4 sm:$0xff]  }
  0x8c   :  { %1751 = vmatpush2.bf16.msra.mxu1 %v4346_v5  ;;  %1763 = vmatprep.subr.bf16.mxu0 %v4349_v10  ;;  %v4415_v5 = vld [vmem:[#allocation5 + $0x760] ss:$16 sps:$4 sm:$0xff]   ;;  %v4426_v10 = vld [vmem:[#allocation5 + $0x544] ss:$16 sps:$4 sm:$0xff]  }
  0x8d   :  { %1806 = vmatprep.subr.bf16.mxu1 %v4352_v11  ;;  %v4429_v11 = vld [vmem:[#allocation5 + $0x724] ss:$16 sps:$4 sm:$0xff]  }
  0x8e   :  { %1710 = vmatmul.mubr.bf16.vlgmr.msra.gmra.mxu0 %v5173_v12 }
  0x8f   :  { %1753 = vmatmul.mubr.bf16.vlgmr.msra.gmra.mxu1 %v5175_v13  ;;  %1764 = vmatpush1.bf16.msra.mxu0 %v4347_v14  ;;  %v4424_v14 = vld [vmem:[#allocation5 + $0x540] ss:$16 sps:$4 sm:$0xff]  }
  0x90   :  { %1807 = vmatpush1.bf16.msra.mxu1 %v4350_v15  ;;  %1765 = vmatprep.subr.bf16.mxu0 %v4355_v16  ;;  %v4427_v15 = vld [vmem:[#allocation5 + $0x720] ss:$16 sps:$4 sm:$0xff]   ;;  %v4432_v16 = vld [vmem:[#allocation5 + $0x524] ss:$16 sps:$4 sm:$0xff]  }
  0x91   :  { %1808 = vmatprep.subr.bf16.mxu1 %v4358_v17  ;;  %3994 = vmatprep.mubr.msk.bf16.mxu1 %vm1660_vm0, %v5179_v40  ;;  %v4435_v17 = vld [vmem:[#allocation5 + $0x704] ss:$16 sps:$4 sm:$0xff]  }
  0x92   :  { %1795 = vmatprep.mubr.bf16.mxu0 %v5183_v47 }
  0x93   :  { %1766 = vmatpush1.bf16.msra.mxu0 %v4353_v18  ;;  %v4430_v18 = vld [vmem:[#allocation5 + $0x520] ss:$16 sps:$4 sm:$0xff]  }
  0x94   :  { %1809 = vmatpush1.bf16.msra.mxu1 %v4356_v19  ;;  %1767 = vmatprep.subr.bf16.mxu0 %v4361_v20  ;;  %v4433_v19 = vld [vmem:[#allocation5 + $0x700] ss:$16 sps:$4 sm:$0xff]  }
  0x95   :  { %1810 = vmatprep.subr.bf16.mxu1 %v4364_v21  ;;  %v120_v20 = vld [vmem:[#allocation2 + $0x30] sm:$0xff] }
  0x96   :  { %v128_v21 = vld [vmem:[#allocation2 + $0x70] sm:$0xff] }
  0x97   :  { %1768 = vmatpush1.bf16.msra.mxu0 %v4359_v22  ;;  %v4438_v22 = vld [vmem:[#allocation5 + $0x504] ss:$16 sps:$4 sm:$0xff]  }
  0x98   :  { %1811 = vmatpush1.bf16.msra.mxu1 %v4362_v23  ;;  %1769 = vmatprep.subr.bf16.mxu0 %v4367_v24  ;;  %v4441_v23 = vld [vmem:[#allocation5 + $0xec] ss:$16 sps:$4 sm:$0xff]   ;;  %v4436_v24 = vld [vmem:[#allocation5 + $0x500] ss:$16 sps:$4 sm:$0xff]  }
  0x99   :  { %1812 = vmatprep.subr.bf16.mxu1 %v4370_v25  ;;  %v4439_v25 = vld [vmem:[#allocation5 + $0xe8] ss:$16 sps:$4 sm:$0xff]  }
  0x9b   :  { %1770 = vmatpush1.bf16.msra.mxu0 %v4365_v26  ;;  %v5188_v26 = vpack.c.bf16 %v128_v21, %v120_v20  ;;  %v4514_v20 = vld [vmem:[#allocation5 + $0x148] ss:$16 sps:$4 sm:$0xff]  }
  0x9c   :  { %1813 = vmatpush1.bf16.msra.mxu1 %v4368_v27  ;;  %1771 = vmatprep.subr.bf16.mxu0 %v4373_v28  ;;  %v118_v27 = vld [vmem:[#allocation2 + $0x20] sm:$0xff]  ;;  %v4517_v21 = vld [vmem:[#allocation5 + $0x368] ss:$16 sps:$4 sm:$0xff]  }
  0x9d   :  { %1814 = vmatprep.subr.bf16.mxu1 %v4376_v29  ;;  %v126_v28 = vld [vmem:[#allocation2 + $0x60] sm:$0xff]  ;;  %v4444_v29 = vld [vmem:[#allocation5 + $0xcc] ss:$16 sps:$4 sm:$0xff]  }
  0x9f   :  { %1772 = vmatpush1.bf16.msra.mxu0 %v4371_v30  ;;  %v4447_v30 = vld [vmem:[#allocation5 + $0x2ec] ss:$16 sps:$4 sm:$0xff]  }
  0xa0   :  { %1815 = vmatpush1.bf16.msra.mxu1 %v4374_v31  ;;  %1773 = vmatprep.subr.bf16.mxu0 %v4379_v32  ;;  %v5191_v31 = vpack.c.bf16 %v126_v28, %v118_v27  ;;  %v4442_v32 = vld [vmem:[#allocation5 + $0xc8] ss:$16 sps:$4 sm:$0xff]   ;;  %v4528_v27 = vld [vmem:[#allocation5 + $0x10c] ss:$16 sps:$4 sm:$0xff]  }
  0xa1   :  { %1816 = vmatprep.subr.bf16.mxu1 %v4382_v33  ;;  %v4445_v33 = vld [vmem:[#allocation5 + $0x2e8] ss:$16 sps:$4 sm:$0xff]   ;;  %v4531_v28 = vld [vmem:[#allocation5 + $0x32c] ss:$16 sps:$4 sm:$0xff]  }
  0xa3   :  { %1774 = vmatpush1.bf16.msra.mxu0 %v4377_v34  ;;  %v4450_v34 = vld [vmem:[#allocation5 + $0xac] ss:$16 sps:$4 sm:$0xff]  }
  0xa4   :  { %1817 = vmatpush1.bf16.msra.mxu1 %v4380_v35  ;;  %1775 = vmatprep.subr.bf16.mxu0 %v4385_v36  ;;  %v4453_v35 = vld [vmem:[#allocation5 + $0x2cc] ss:$16 sps:$4 sm:$0xff]   ;;  %v4448_v36 = vld [vmem:[#allocation5 + $0xa8] ss:$16 sps:$4 sm:$0xff]  }
  0xa5   :  { %1818 = vmatprep.subr.bf16.mxu1 %v4388_v39  ;;  %v4459_v39 = vld [vmem:[#allocation5 + $0x2ac] ss:$16 sps:$4 sm:$0xff]  }
  0xa7   :  { %1776 = vmatpush1.bf16.msra.mxu0 %v4383_v41  ;;  %v4454_v41 = vld [vmem:[#allocation5 + $0x88] ss:$16 sps:$4 sm:$0xff]  }
  0xa8   :  { %1819 = vmatpush1.bf16.msra.mxu1 %v4386_v42  ;;  %1777 = vmatprep.subr.bf16.mxu0 %v4391_v45  ;;  %v4457_v42 = vld [vmem:[#allocation5 + $0x2a8] ss:$16 sps:$4 sm:$0xff]  }
  0xa9   :  { %1820 = vmatprep.subr.bf16.mxu1 %v4394_v46  ;;  %v4463_v45 = vld [vmem:[#allocation5 + $0x288] ss:$16 sps:$4 sm:$0xff]   ;;  %v4468_v46 = vld [vmem:[#allocation5 + $0x4c] ss:$16 sps:$4 sm:$0xff]  }
  0xab   :  { %1778 = vmatpush1.bf16.msra.mxu0 %v4389_v49  ;;  %v4466_v49 = vld [vmem:[#allocation5 + $0x48] ss:$16 sps:$4 sm:$0xff]  }
  0xac   :  { %1821 = vmatpush1.bf16.msra.mxu1 %v4392_v50  ;;  %1779 = vmatprep.subr.bf16.mxu0 %v4397_v51  ;;  %v4474_v50 = vld [vmem:[#allocation5 + $0x2c] ss:$16 sps:$4 sm:$0xff]  }
  0xad   :  { %3993 = vmatprep.subr.msk.bf16.mxu1 %vm1664_vm1, %v3990_v52  ;;  %v4477_v51 = vld [vmem:[#allocation5 + $0x24c] ss:$16 sps:$4 sm:$0xff]   ;;  %v4472_v52 = vld [vmem:[#allocation5 + $0x28] ss:$16 sps:$4 sm:$0xff]  }
  0xaf   :  { %1780 = vmatpush2.bf16.msra.mxu0 %v4395_v56  ;;  %v4480_v56 = vld [vmem:[#allocation5 + $0xc] ss:$16 sps:$4 sm:$0xff]  }
  0xb0   :  { %1825 = vmatpush2.bf16.msra.mxu1 %v1666_v57  ;;  %1781 = vmatprep.subr.bf16.mxu0 %v4402_v58  ;;  %v4483_v57 = vld [vmem:[#allocation5 + $0x22c] ss:$16 sps:$4 sm:$0xff]   ;;  %v4478_v58 = vld [vmem:[#allocation5 + $0x8] ss:$16 sps:$4 sm:$0xff]  }
  0xb1   :  { %1826 = vmatprep.subr.bf16.mxu1 %v4405_v59  ;;  %v4481_v59 = vld [vmem:[#allocation5 + $0x228] ss:$16 sps:$4 sm:$0xff]  }
  0xb3   :  { %1782 = vmatpush2.bf16.msra.mxu0 %v4400_v60  ;;  %v4486_v60 = vld [vmem:[#allocation5 + $0x1ec] ss:$16 sps:$4 sm:$0xff]  }
  0xb4   :  { %1827 = vmatpush2.bf16.msra.mxu1 %v4403_v61  ;;  %1783 = vmatprep.subr.bf16.mxu0 %v4408_v62  ;;  %v4489_v61 = vld [vmem:[#allocation5 + $0x20c] ss:$16 sps:$4 sm:$0xff]   ;;  %v4484_v62 = vld [vmem:[#allocation5 + $0x1e8] ss:$16 sps:$4 sm:$0xff]  }
  0xb5   :  { %1828 = vmatprep.subr.bf16.mxu1 %v4411_v63  ;;  %v4487_v63 = vld [vmem:[#allocation5 + $0x208] ss:$16 sps:$4 sm:$0xff]  }
  0xb7   :  { %1784 = vmatpush2.bf16.msra.mxu0 %v4406_v0  ;;  %v4492_v0 = vld [vmem:[#allocation5 + $0x1cc] ss:$16 sps:$4 sm:$0xff]  }
  0xb8   :  { %1829 = vmatpush2.bf16.msra.mxu1 %v4409_v1  ;;  %1785 = vmatprep.subr.bf16.mxu0 %v4414_v2  ;;  %v4495_v1 = vld [vmem:[#allocation5 + $0x3ec] ss:$16 sps:$4 sm:$0xff]   ;;  %v4490_v2 = vld [vmem:[#allocation5 + $0x1c8] ss:$16 sps:$4 sm:$0xff]  }
  0xb9   :  { %1830 = vmatprep.subr.bf16.mxu1 %v4417_v3  ;;  %v4493_v3 = vld [vmem:[#allocation5 + $0x3e8] ss:$16 sps:$4 sm:$0xff]  }
  0xbb   :  { %1786 = vmatpush2.bf16.msra.mxu0 %v4412_v4  ;;  %v4498_v4 = vld [vmem:[#allocation5 + $0x1ac] ss:$16 sps:$4 sm:$0xff]  }
  0xbc   :  { %1831 = vmatpush2.bf16.msra.mxu1 %v4415_v5  ;;  %1787 = vmatprep.subr.bf16.mxu0 %v4420_v6  ;;  %v4501_v5 = vld [vmem:[#allocation5 + $0x3cc] ss:$16 sps:$4 sm:$0xff]   ;;  %v4496_v6 = vld [vmem:[#allocation5 + $0x1a8] ss:$16 sps:$4 sm:$0xff]  }
  0xbd   :  { %1832 = vmatprep.subr.bf16.mxu1 %v4423_v7  ;;  %v4499_v7 = vld [vmem:[#allocation5 + $0x3c8] ss:$16 sps:$4 sm:$0xff]  }
  0xbf   :  { %1788 = vmatpush2.bf16.msra.mxu0 %v4418_v8  ;;  %v4504_v8 = vld [vmem:[#allocation5 + $0x18c] ss:$16 sps:$4 sm:$0xff]  }
  0xc0   :  { %1833 = vmatpush2.bf16.msra.mxu1 %v4421_v9  ;;  %1789 = vmatprep.subr.bf16.mxu0 %v4426_v10  ;;  %v4507_v9 = vld [vmem:[#allocation5 + $0x3ac] ss:$16 sps:$4 sm:$0xff]   ;;  %v4502_v10 = vld [vmem:[#allocation5 + $0x188] ss:$16 sps:$4 sm:$0xff]  }
  0xc1   :  { %1834 = vmatprep.subr.bf16.mxu1 %v4429_v11  ;;  %v4505_v11 = vld [vmem:[#allocation5 + $0x3a8] ss:$16 sps:$4 sm:$0xff]  }
  0xc3   :  { %1790 = vmatpush2.bf16.msra.mxu0 %v4424_v14  ;;  %v4510_v14 = vld [vmem:[#allocation5 + $0x16c] ss:$16 sps:$4 sm:$0xff]  }
  0xc4   :  { %1835 = vmatpush2.bf16.msra.mxu1 %v4427_v15  ;;  %1791 = vmatprep.subr.bf16.mxu0 %v4432_v16  ;;  %v4513_v15 = vld [vmem:[#allocation5 + $0x38c] ss:$16 sps:$4 sm:$0xff]   ;;  %v4508_v16 = vld [vmem:[#allocation5 + $0x168] ss:$16 sps:$4 sm:$0xff]  }
  0xc5   :  { %1836 = vmatprep.subr.bf16.mxu1 %v4435_v17  ;;  %v4511_v17 = vld [vmem:[#allocation5 + $0x388] ss:$16 sps:$4 sm:$0xff]  }
  0xc7   :  { %1792 = vmatpush2.bf16.msra.mxu0 %v4430_v18  ;;  %v4516_v18 = vld [vmem:[#allocation5 + $0x14c] ss:$16 sps:$4 sm:$0xff]  }
  0xc8   :  { %1837 = vmatpush2.bf16.msra.mxu1 %v4433_v19  ;;  %1793 = vmatprep.subr.bf16.mxu0 %v4438_v22  ;;  %v4519_v19 = vld [vmem:[#allocation5 + $0x36c] ss:$16 sps:$4 sm:$0xff]  }
  0xc9   :  { %1849 = vmatprep.subr.bf16.mxu1 %v4441_v23  ;;  %v4522_v22 = vld [vmem:[#allocation5 + $0x12c] ss:$16 sps:$4 sm:$0xff]  }
  0xca   :  { %v4525_v23 = vld [vmem:[#allocation5 + $0x34c] ss:$16 sps:$4 sm:$0xff]  }
  0xcb   :  { %1839 = vmatmul.mubr.bf16.vlgmr.msra.gmra.mxu1 %v5188_v26  ;;  %1794 = vmatpush2.bf16.msra.mxu0 %v4436_v24  ;;  %v4520_v24 = vld [vmem:[#allocation5 + $0x128] ss:$16 sps:$4 sm:$0xff]  }
  0xcc   :  { %1850 = vmatpush1.bf16.msra.mxu1 %v4439_v25  ;;  %1892 = vmatprep.subr.bf16.mxu0 %v4447_v30  ;;  %v4523_v25 = vld [vmem:[#allocation5 + $0x348] ss:$16 sps:$4 sm:$0xff]  }
  0xcd   :  { %1851 = vmatprep.subr.bf16.mxu1 %v4444_v29  ;;  %1881 = vmatprep.mubr.bf16.mxu1 %v5167_v53  ;;  %v4465_v53 = vld [vmem:[#allocation5 + $0x28c] ss:$16 sps:$4 sm:$0xff]   ;;  %v4526_v29 = vld [vmem:[#allocation5 + $0x108] ss:$16 sps:$4 sm:$0xff]  }
  0xce   :  { %1796 = vmatmul.mubr.bf16.vlgmr.msra.gmra.mxu0 %v5191_v31  ;;  %v4529_v30 = vld [vmem:[#allocation5 + $0x328] ss:$16 sps:$4 sm:$0xff]  }
  0xcf   :  { %1893 = vmatpush1.bf16.msra.mxu0 %v4445_v33  ;;  %1924 = vmatprep.mubr.bf16.mxu0 %v5169_v54  ;;  %v4469_v54 = vld [vmem:[#allocation5 + $0x268] ss:$16 sps:$4 sm:$0xff]   ;;  %v4537_v33 = vld [vmem:[#allocation5 + $0x4ec] ss:$16 sps:$4 sm:$0xff]  }
  0xd0   :  { %1852 = vmatpush1.bf16.msra.mxu1 %v4442_v32  ;;  %1894 = vmatprep.subr.bf16.mxu0 %v4453_v35  ;;  %v4534_v32 = vld [vmem:[#allocation5 + $0x30c] ss:$16 sps:$4 sm:$0xff]   ;;  %v4535_v35 = vld [vmem:[#allocation5 + $0x4e8] ss:$16 sps:$4 sm:$0xff]  }
  0xd1   :  { %1853 = vmatprep.subr.bf16.mxu1 %v4450_v34  ;;  %v4532_v34 = vld [vmem:[#allocation5 + $0x308] ss:$16 sps:$4 sm:$0xff]  }
  0xd3   :  { %1895 = vmatpush1.bf16.msra.mxu0 %v4451_v37  ;;  %v4543_v37 = vld [vmem:[#allocation5 + $0x6ec] ss:$16 sps:$4 sm:$0xff]  }
  0xd4   :  { %1854 = vmatpush1.bf16.msra.mxu1 %v4448_v36  ;;  %1896 = vmatprep.subr.bf16.mxu0 %v4459_v39  ;;  %v4540_v36 = vld [vmem:[#allocation5 + $0x4cc] ss:$16 sps:$4 sm:$0xff]   ;;  %v4541_v39 = vld [vmem:[#allocation5 + $0x6e8] ss:$16 sps:$4 sm:$0xff]  }
  0xd5   :  { %1855 = vmatprep.subr.bf16.mxu1 %v4456_v38  ;;  %v4538_v38 = vld [vmem:[#allocation5 + $0x4c8] ss:$16 sps:$4 sm:$0xff]  }
  0xd7   :  { %1897 = vmatpush1.bf16.msra.mxu0 %v4457_v42  ;;  %v4549_v42 = vld [vmem:[#allocation5 + $0x6cc] ss:$16 sps:$4 sm:$0xff]  }
  0xd8   :  { %1856 = vmatpush1.bf16.msra.mxu1 %v4454_v41  ;;  %1898 = vmatprep.subr.bf16.mxu0 %v4465_v53  ;;  %v4546_v41 = vld [vmem:[#allocation5 + $0x4ac] ss:$16 sps:$4 sm:$0xff]   ;;  %v4547_v53 = vld [vmem:[#allocation5 + $0x6c8] ss:$16 sps:$4 sm:$0xff]  }
  0xd9   :  { %1857 = vmatprep.subr.bf16.mxu1 %v4462_v43  ;;  %v4544_v43 = vld [vmem:[#allocation5 + $0x4a8] ss:$16 sps:$4 sm:$0xff]  }
  0xdb   :  { %1899 = vmatpush1.bf16.msra.mxu0 %v4463_v45  ;;  %v4555_v45 = vld [vmem:[#allocation5 + $0x6ac] ss:$16 sps:$4 sm:$0xff]  }
  0xdc   :  { %1858 = vmatpush1.bf16.msra.mxu1 %v4460_v44  ;;  %1900 = vmatprep.subr.bf16.mxu0 %v4471_v48  ;;  %v4552_v44 = vld [vmem:[#allocation5 + $0x48c] ss:$16 sps:$4 sm:$0xff]  }
  0xdd   :  { %1859 = vmatprep.subr.bf16.mxu1 %v4468_v46  ;;  %v4550_v46 = vld [vmem:[#allocation5 + $0x488] ss:$16 sps:$4 sm:$0xff]   ;;  %v4558_v48 = vld [vmem:[#allocation5 + $0x46c] ss:$16 sps:$4 sm:$0xff]  }
  0xdf   :  { %1901 = vmatpush1.bf16.msra.mxu0 %v4469_v54  ;;  %v4559_v54 = vld [vmem:[#allocation5 + $0x688] ss:$16 sps:$4 sm:$0xff]  }
  0xe0   :  { %1860 = vmatpush1.bf16.msra.mxu1 %v4466_v49  ;;  %1902 = vmatprep.subr.bf16.mxu0 %v4477_v51  ;;  %v4561_v49 = vld [vmem:[#allocation5 + $0x68c] ss:$16 sps:$4 sm:$0xff]   ;;  %v4562_v51 = vld [vmem:[#allocation5 + $0x448] ss:$16 sps:$4 sm:$0xff]  }
  0xe1   :  { %1861 = vmatprep.subr.bf16.mxu1 %v4474_v50  ;;  %v4567_v50 = vld [vmem:[#allocation5 + $0x66c] ss:$16 sps:$4 sm:$0xff]  }
  0xe3   :  { %1903 = vmatpush1.bf16.msra.mxu0 %v4475_v55  ;;  %v4570_v55 = vld [vmem:[#allocation5 + $0x42c] ss:$16 sps:$4 sm:$0xff]  }
  0xe4   :  { %1862 = vmatpush1.bf16.msra.mxu1 %v4472_v52  ;;  %1904 = vmatprep.subr.bf16.mxu0 %v4483_v57  ;;  %v4565_v52 = vld [vmem:[#allocation5 + $0x668] ss:$16 sps:$4 sm:$0xff]  }
  0xe5   :  { %1863 = vmatprep.subr.bf16.mxu1 %v4480_v56  ;;  %v4573_v56 = vld [vmem:[#allocation5 + $0x64c] ss:$16 sps:$4 sm:$0xff]   ;;  %v4571_v57 = vld [vmem:[#allocation5 + $0x648] ss:$16 sps:$4 sm:$0xff]  }
  0xe7   :  { %1905 = vmatpush1.bf16.msra.mxu0 %v4481_v59  ;;  %v4579_v59 = vld [vmem:[#allocation5 + $0x62c] ss:$16 sps:$4 sm:$0xff]  }
  0xe8   :  { %1864 = vmatpush1.bf16.msra.mxu1 %v4478_v58  ;;  %1906 = vmatprep.subr.bf16.mxu0 %v4489_v61  ;;  %v4576_v58 = vld [vmem:[#allocation5 + $0x40c] ss:$16 sps:$4 sm:$0xff]   ;;  %v4577_v61 = vld [vmem:[#allocation5 + $0x628] ss:$16 sps:$4 sm:$0xff]  }
  0xe9   :  { %1865 = vmatprep.subr.bf16.mxu1 %v4486_v60  ;;  %v4574_v60 = vld [vmem:[#allocation5 + $0x408] ss:$16 sps:$4 sm:$0xff]  }
  0xeb   :  { %1907 = vmatpush1.bf16.msra.mxu0 %v4487_v63  ;;  %v4585_v63 = vld [vmem:[#allocation5 + $0x60c] ss:$16 sps:$4 sm:$0xff]  }
  0xec   :  { %1866 = vmatpush2.bf16.msra.mxu1 %v4484_v62  ;;  %1908 = vmatprep.subr.bf16.mxu0 %v4495_v1  ;;  %v4582_v62 = vld [vmem:[#allocation5 + $0x5ec] ss:$16 sps:$4 sm:$0xff]   ;;  %v4583_v1 = vld [vmem:[#allocation5 + $0x608] ss:$16 sps:$4 sm:$0xff]  }
  0xed   :  { %1867 = vmatprep.subr.bf16.mxu1 %v4492_v0  ;;  %v4580_v0 = vld [vmem:[#allocation5 + $0x5e8] ss:$16 sps:$4 sm:$0xff]  }
  0xef   :  { %1909 = vmatpush2.bf16.msra.mxu0 %v4493_v3  ;;  %v4588_v3 = vld [vmem:[#allocation5 + $0x5cc] ss:$16 sps:$4 sm:$0xff]  }
  0xf0   :  { %1868 = vmatpush2.bf16.msra.mxu1 %v4490_v2  ;;  %1910 = vmatprep.subr.bf16.mxu0 %v4501_v5  ;;  %v387_v2 = vld [vmem:[#allocation5 + $0x7c8] sm:$0xff] }
  0xf1   :  { %1869 = vmatprep.subr.bf16.mxu1 %v4498_v4  ;;  %v3992_v4 = vcombine.high %v387_v2, %v387_v2  ;;  %v3991_v5 = vcombine.low %v387_v2, %v387_v2  ;;  %v4657_v2 = vld [vmem:[#allocation8 + $0x1a0] ss:$16 sps:$4 sm:$0xff]  }
  0xf3   :  { %1911 = vmatpush2.bf16.msra.mxu0 %v4499_v7  ;;  %v4593_v7 = vld [vmem:[#allocation5 + $0x5ac] ss:$16 sps:$4 sm:$0xff]  }
  0xf4   :  { %1870 = vmatpush2.bf16.msra.mxu1 %v4496_v6  ;;  %1912 = vmatprep.subr.bf16.mxu0 %v4507_v9  ;;  %v4586_v6 = vld [vmem:[#allocation5 + $0x5c8] ss:$16 sps:$4 sm:$0xff]   ;;  %v1672_v9 = vsel %vm1664_vm1, %v3991_v5, 0 }
  0xf5   :  { %1871 = vmatprep.subr.bf16.mxu1 %v4504_v8  ;;  %v4596_v8 = vld [vmem:[#allocation5 + $0x7ac] ss:$16 sps:$4 sm:$0xff]   ;;  %v4746_v5 = vld [vmem:[#allocation8 + $0x204] ss:$16 sps:$4 sm:$0xff]  }
  0xf7   :  { %1913 = vmatpush2.bf16.msra.mxu0 %v4505_v11  ;;  %v4594_v11 = vld [vmem:[#allocation5 + $0x7a8] ss:$16 sps:$4 sm:$0xff]  }
  0xf8   :  { %1872 = vmatpush2.bf16.msra.mxu1 %v4502_v10  ;;  %1914 = vmatprep.subr.bf16.mxu0 %v4513_v15  ;;  %v4591_v10 = vld [vmem:[#allocation5 + $0x5a8] ss:$16 sps:$4 sm:$0xff]   ;;  %v4602_v15 = vld [vmem:[#allocation5 + $0x78c] ss:$16 sps:$4 sm:$0xff]  }
  0xf9   :  { %1873 = vmatprep.subr.bf16.mxu1 %v4510_v14  ;;  %v4599_v14 = vld [vmem:[#allocation5 + $0x58c] ss:$16 sps:$4 sm:$0xff]  }
  0xfb   :  { %1915 = vmatpush2.bf16.msra.mxu0 %v4511_v17  ;;  %v4600_v17 = vld [vmem:[#allocation5 + $0x788] ss:$16 sps:$4 sm:$0xff]  }
  0xfc   :  { %1874 = vmatpush2.bf16.msra.mxu1 %v4508_v16  ;;  %1916 = vmatprep.subr.bf16.mxu0 %v4519_v19  ;;  %v4597_v16 = vld [vmem:[#allocation5 + $0x588] ss:$16 sps:$4 sm:$0xff]   ;;  %v4608_v19 = vld [vmem:[#allocation5 + $0x76c] ss:$16 sps:$4 sm:$0xff]  }
  0xfd   :  { %1875 = vmatprep.subr.bf16.mxu1 %v4516_v18  ;;  %v4605_v18 = vld [vmem:[#allocation5 + $0x56c] ss:$16 sps:$4 sm:$0xff]  }
  0xff   :  { %1917 = vmatpush2.bf16.msra.mxu0 %v4517_v21  ;;  %v4606_v21 = vld [vmem:[#allocation5 + $0x768] ss:$16 sps:$4 sm:$0xff]  }
 0x100   :  { %1876 = vmatpush2.bf16.msra.mxu1 %v4514_v20  ;;  %1918 = vmatprep.subr.bf16.mxu0 %v4525_v23  ;;  %v4603_v20 = vld [vmem:[#allocation5 + $0x568] ss:$16 sps:$4 sm:$0xff]   ;;  %v4614_v23 = vld [vmem:[#allocation5 + $0x74c] ss:$16 sps:$4 sm:$0xff]  }
 0x101   :  { %1877 = vmatprep.subr.bf16.mxu1 %v4522_v22  ;;  %v4611_v22 = vld [vmem:[#allocation5 + $0x54c] ss:$16 sps:$4 sm:$0xff]  }
 0x103   :  { %1919 = vmatpush2.bf16.msra.mxu0 %v4523_v25  ;;  %v4612_v25 = vld [vmem:[#allocation5 + $0x748] ss:$16 sps:$4 sm:$0xff]  }
 0x104   :  { %1878 = vmatpush2.bf16.msra.mxu1 %v4520_v24  ;;  %1920 = vmatprep.subr.bf16.mxu0 %v4531_v28  ;;  %v4609_v24 = vld [vmem:[#allocation5 + $0x548] ss:$16 sps:$4 sm:$0xff]   ;;  %v4620_v28 = vld [vmem:[#allocation5 + $0x72c] ss:$16 sps:$4 sm:$0xff]  }
 0x105   :  { %1879 = vmatprep.subr.bf16.mxu1 %v4528_v27  ;;  %v4617_v27 = vld [vmem:[#allocation5 + $0x52c] ss:$16 sps:$4 sm:$0xff]  }
 0x107   :  { %1921 = vmatpush2.bf16.msra.mxu0 %v4529_v30  ;;  %v4618_v30 = vld [vmem:[#allocation5 + $0x728] ss:$16 sps:$4 sm:$0xff]  }
 0x108   :  { %1880 = vmatpush2.bf16.msra.mxu1 %v4526_v29  ;;  %1922 = vmatprep.subr.bf16.mxu0 %v4534_v32  ;;  %v4615_v29 = vld [vmem:[#allocation5 + $0x528] ss:$16 sps:$4 sm:$0xff]   ;;  %v4623_v32 = vld [vmem:[#allocation5 + $0x50c] ss:$16 sps:$4 sm:$0xff]  }
 0x109   :  { %1935 = vmatprep.subr.bf16.mxu1 %v4537_v33  ;;  %v4626_v33 = vld [vmem:[#allocation5 + $0x70c] ss:$16 sps:$4 sm:$0xff]  }
 0x10b   :  { %1882 = vmatmul.mubr.bf16.vlgmr.msra.gmra.mxu1 %v5173_v12  ;;  %1923 = vmatpush2.bf16.msra.mxu0 %v4532_v34  ;;  %v4553_v12 = vld [vmem:[#allocation5 + $0x6a8] ss:$16 sps:$4 sm:$0xff]  }
 0x10c   :  { %1936 = vmatpush1.bf16.msra.mxu1 %v4535_v35  ;;  %1978 = vmatprep.subr.bf16.mxu0 %v4543_v37  ;;  %v4621_v34 = vld [vmem:[#allocation5 + $0x508] ss:$16 sps:$4 sm:$0xff]   ;;  %v4627_v37 = vld [vmem:[#allocation8 + $0xe0] ss:$16 sps:$4 sm:$0xff]  }
 0x10d   :  { %1937 = vmatprep.subr.bf16.mxu1 %v4540_v36  ;;  %1967 = vmatprep.mubr.bf16.mxu1 %v5183_v47  ;;  %v4556_v47 = vld [vmem:[#allocation5 + $0x468] ss:$16 sps:$4 sm:$0xff]  }
 0x10e   :  { %1925 = vmatmul.mubr.bf16.vlgmr.msra.gmra.mxu0 %v5175_v13  ;;  %v4564_v13 = vld [vmem:[#allocation5 + $0x44c] ss:$16 sps:$4 sm:$0xff]   ;;  %v4624_v35 = vld [vmem:[#allocation5 + $0x708] ss:$16 sps:$4 sm:$0xff]  }
 0x10f   :  { %1979 = vmatpush1.bf16.msra.mxu0 %v4541_v39  ;;  %3996 = vmatprep.mubr.msk.bf16.mxu0 %vm1660_vm0, %v5179_v40  ;;  %v4568_v40 = vld [vmem:[#allocation5 + $0x428] ss:$16 sps:$4 sm:$0xff]   ;;  %v4630_v39 = vld [vmem:[#allocation8 + $0xc0] ss:$16 sps:$4 sm:$0xff]  }
 0x110   :  { %1938 = vmatpush1.bf16.msra.mxu1 %v4538_v38  ;;  %1980 = vmatprep.subr.bf16.mxu0 %v4549_v42  ;;  %v4629_v36 = vld [vmem:[#allocation8 + $0xe4] ss:$16 sps:$4 sm:$0xff]   ;;  %v4633_v42 = vld [vmem:[#allocation8 + $0xa0] ss:$16 sps:$4 sm:$0xff]  }
 0x111   :  { %1939 = vmatprep.subr.bf16.mxu1 %v4546_v41  ;;  %v4632_v38 = vld [vmem:[#allocation8 + $0xc4] ss:$16 sps:$4 sm:$0xff]  }
 0x112   :  { %v4635_v41 = vld [vmem:[#allocation8 + $0xa4] ss:$16 sps:$4 sm:$0xff]  }
 0x113   :  { %1981 = vmatpush1.bf16.msra.mxu0 %v4547_v53  ;;  %v4636_v53 = vld [vmem:[#allocation8 + $0x80] ss:$16 sps:$4 sm:$0xff]  }
 0x114   :  { %1940 = vmatpush1.bf16.msra.mxu1 %v4544_v43  ;;  %1982 = vmatprep.subr.bf16.mxu0 %v4555_v45  ;;  %v4638_v43 = vld [vmem:[#allocation8 + $0x84] ss:$16 sps:$4 sm:$0xff]   ;;  %v4639_v45 = vld [vmem:[#allocation8 + $0x60] ss:$16 sps:$4 sm:$0xff]  }
 0x115   :  { %1941 = vmatprep.subr.bf16.mxu1 %v4552_v44  ;;  %v4641_v44 = vld [vmem:[#allocation8 + $0x64] ss:$16 sps:$4 sm:$0xff]  }
 0x117   :  { %1983 = vmatpush1.bf16.msra.mxu0 %v4553_v12  ;;  %v4720_v12 = vld [vmem:[#allocation8 + $0x2e0] ss:$16 sps:$4 sm:$0xff]  }
 0x118   :  { %1942 = vmatpush1.bf16.msra.mxu1 %v4550_v46  ;;  %1984 = vmatprep.subr.bf16.mxu0 %v4561_v49  ;;  %v4644_v46 = vld [vmem:[#allocation8 + $0x44] ss:$16 sps:$4 sm:$0xff]   ;;  %v4726_v49 = vld [vmem:[#allocation8 + $0x2c0] ss:$16 sps:$4 sm:$0xff]  }
 0x119   :  { %1943 = vmatprep.subr.bf16.mxu1 %v4558_v48  ;;  %v4647_v48 = vld [vmem:[#allocation8 + $0x24] ss:$16 sps:$4 sm:$0xff]  }
 0x11b   :  { %1985 = vmatpush1.bf16.msra.mxu0 %v4559_v54  ;;  %v4645_v54 = vld [vmem:[#allocation8 + $0x20] ss:$16 sps:$4 sm:$0xff]  }
 0x11c   :  { %1944 = vmatpush1.bf16.msra.mxu1 %v4556_v47  ;;  %1986 = vmatprep.subr.bf16.mxu0 %v4567_v50  ;;  %v4728_v47 = vld [vmem:[#allocation8 + $0x2c4] ss:$16 sps:$4 sm:$0xff]   ;;  %v4729_v50 = vld [vmem:[#allocation8 + $0x2a0] ss:$16 sps:$4 sm:$0xff]  }
 0x11d   :  { %1945 = vmatprep.subr.bf16.mxu1 %v4564_v13  ;;  %v4650_v13 = vld [vmem:[#allocation8 + $0x4] ss:$16 sps:$4 sm:$0xff]  }
 0x11f   :  { %1987 = vmatpush1.bf16.msra.mxu0 %v4565_v52  ;;  %v4734_v52 = vld [vmem:[#allocation8 + $0x284] ss:$16 sps:$4 sm:$0xff]  }
 0x120   :  { %1946 = vmatpush1.bf16.msra.mxu1 %v4562_v51  ;;  %1988 = vmatprep.subr.bf16.mxu0 %v4573_v56  ;;  %v4731_v51 = vld [vmem:[#allocation8 + $0x2a4] ss:$16 sps:$4 sm:$0xff]  }
 0x121   :  { %1947 = vmatprep.subr.bf16.mxu1 %v4570_v55  ;;  %v4648_v55 = vld [vmem:[#allocation8] ss:$16 sps:$4 sm:$0xff]   ;;  %v4653_v56 = vld [vmem:[#allocation8 + $0x1e4] ss:$16 sps:$4 sm:$0xff]  }
 0x123   :  { %1989 = vmatpush1.bf16.msra.mxu0 %v4571_v57  ;;  %v4737_v57 = vld [vmem:[#allocation8 + $0x264] ss:$16 sps:$4 sm:$0xff]  }
 0x124   :  { %1948 = vmatpush1.bf16.msra.mxu1 %v4568_v40  ;;  %1990 = vmatprep.subr.bf16.mxu0 %v4579_v59  ;;  %v4732_v40 = vld [vmem:[#allocation8 + $0x280] ss:$16 sps:$4 sm:$0xff]   ;;  %v4656_v59 = vld [vmem:[#allocation8 + $0x1c4] ss:$16 sps:$4 sm:$0xff]  }
 0x125   :  { %1949 = vmatprep.subr.bf16.mxu1 %v4576_v58  ;;  %v4651_v58 = vld [vmem:[#allocation8 + $0x1e0] ss:$16 sps:$4 sm:$0xff]  }
 0x127   :  { %1991 = vmatpush1.bf16.msra.mxu0 %v4577_v61  ;;  %v4740_v61 = vld [vmem:[#allocation8 + $0x244] ss:$16 sps:$4 sm:$0xff]  }
 0x128   :  { %1950 = vmatpush1.bf16.msra.mxu1 %v4574_v60  ;;  %1992 = vmatprep.subr.bf16.mxu0 %v4585_v63  ;;  %v4735_v60 = vld [vmem:[#allocation8 + $0x260] ss:$16 sps:$4 sm:$0xff]   ;;  %v4659_v63 = vld [vmem:[#allocation8 + $0x1a4] ss:$16 sps:$4 sm:$0xff]  }
 0x129   :  { %1951 = vmatprep.subr.bf16.mxu1 %v4582_v62  ;;  %v4654_v62 = vld [vmem:[#allocation8 + $0x1c0] ss:$16 sps:$4 sm:$0xff]  }
 0x12b   :  { %1993 = vmatpush1.bf16.msra.mxu0 %v4583_v1  ;;  %v4743_v1 = vld [vmem:[#allocation8 + $0x224] ss:$16 sps:$4 sm:$0xff]  }
 0x12c   :  { %1952 = vmatpush2.bf16.msra.mxu1 %v4580_v0  ;;  %3995 = vmatprep.subr.msk.bf16.mxu0 %vm1664_vm1, %v3992_v4  ;;  %v4738_v0 = vld [vmem:[#allocation8 + $0x240] ss:$16 sps:$4 sm:$0xff]  }
 0x12d   :  { %1953 = vmatprep.subr.bf16.mxu1 %v4588_v3  ;;  %v4662_v3 = vld [vmem:[#allocation8 + $0x184] ss:$16 sps:$4 sm:$0xff]   ;;  %v4741_v4 = vld [vmem:[#allocation8 + $0x220] ss:$16 sps:$4 sm:$0xff]  }
 0x12f   :  { %1997 = vmatpush2.bf16.msra.mxu0 %v1672_v9  ;;  %v4749_v9 = vld [vmem:[#allocation8 + $0x3e4] ss:$16 sps:$4 sm:$0xff]  }
 0x130   :  { %1954 = vmatpush2.bf16.msra.mxu1 %v4586_v6  ;;  %1998 = vmatprep.subr.bf16.mxu0 %v4596_v8  ;;  %v4660_v6 = vld [vmem:[#allocation8 + $0x180] ss:$16 sps:$4 sm:$0xff]  }
 0x131   :  { %1955 = vmatprep.subr.bf16.mxu1 %v4593_v7  ;;  %v4665_v7 = vld [vmem:[#allocation8 + $0x164] ss:$16 sps:$4 sm:$0xff]   ;;  %v4744_v8 = vld [vmem:[#allocation8 + $0x200] ss:$16 sps:$4 sm:$0xff]  }
 0x133   :  { %1999 = vmatpush2.bf16.msra.mxu0 %v4594_v11  ;;  %v4668_v11 = vld [vmem:[#allocation8 + $0x144] ss:$16 sps:$4 sm:$0xff]  }
 0x134   :  { %1956 = vmatpush2.bf16.msra.mxu1 %v4591_v10  ;;  %2000 = vmatprep.subr.bf16.mxu0 %v4602_v15  ;;  %v4663_v10 = vld [vmem:[#allocation8 + $0x160] ss:$16 sps:$4 sm:$0xff]   ;;  %v4752_v15 = vld [vmem:[#allocation8 + $0x3c4] ss:$16 sps:$4 sm:$0xff]  }
 0x135   :  { %1957 = vmatprep.subr.bf16.mxu1 %v4599_v14  ;;  %v4747_v14 = vld [vmem:[#allocation8 + $0x3e0] ss:$16 sps:$4 sm:$0xff]  }
 0x137   :  { %2001 = vmatpush2.bf16.msra.mxu0 %v4600_v17  ;;  %v4666_v17 = vld [vmem:[#allocation8 + $0x140] ss:$16 sps:$4 sm:$0xff]  }
 0x138   :  { %1958 = vmatpush2.bf16.msra.mxu1 %v4597_v16  ;;  %2002 = vmatprep.subr.bf16.mxu0 %v4608_v19  ;;  %v390_v16 = vlaneseq  ;;  %v4750_v19 = vld [vmem:[#allocation8 + $0x3c0] ss:$16 sps:$4 sm:$0xff]  }
 0x139   :  { %1959 = vmatprep.subr.bf16.mxu1 %v4605_v18  ;;  %v4671_v18 = vld [vmem:[#allocation8 + $0x124] ss:$16 sps:$4 sm:$0xff]  }
 0x13b   :  { %2003 = vmatpush2.bf16.msra.mxu0 %v4606_v21  ;;  %v4755_v21 = vld [vmem:[#allocation8 + $0x3a4] ss:$16 sps:$4 sm:$0xff]  }
 0x13c   :  { %1960 = vmatpush2.bf16.msra.mxu1 %v4603_v20  ;;  %2004 = vmatprep.subr.bf16.mxu0 %v4614_v23  ;;  %v4669_v23 = vld [vmem:[#allocation8 + $0x120] ss:$16 sps:$4 sm:$0xff]  }
 0x13d   :  { %1961 = vmatprep.subr.bf16.mxu1 %v4611_v22  ;;  %v5205_v22 = vshrl.u32 %v390_v16, 7 }
 0x13f   :  { %2005 = vmatpush2.bf16.msra.mxu0 %v4612_v25  ;;  %v4674_v25 = vld [vmem:[#allocation8 + $0x104] ss:$16 sps:$4 sm:$0xff]  }
 0x140   :  { %1962 = vmatpush2.bf16.msra.mxu1 %v4609_v24  ;;  %2006 = vmatprep.subr.bf16.mxu0 %v4620_v28 }
 0x141   :  { %1963 = vmatprep.subr.bf16.mxu1 %v4617_v27  ;;  %v4753_v27 = vld [vmem:[#allocation8 + $0x3a0] ss:$16 sps:$4 sm:$0xff]  }
 0x143   :  { %2007 = vmatpush2.bf16.msra.mxu0 %v4618_v30  ;;  %v5208_v30 = vsub.s32 0, %v5205_v22 }
 0x144   :  { %1964 = vmatpush2.bf16.msra.mxu1 %v4615_v29  ;;  %2008 = vmatprep.subr.bf16.mxu0 %v4626_v33  ;;  %v4758_v29 = vld [vmem:[#allocation8 + $0x384] ss:$16 sps:$4 sm:$0xff]   ;;  %v4672_v33 = vld [vmem:[#allocation8 + $0x100] ss:$16 sps:$4 sm:$0xff]  }
 0x145   :  { %1965 = vmatprep.subr.bf16.mxu1 %v4623_v32  ;;  %v5211_v32 = vsub.s32 1, %v5205_v22 }
 0x147   :  { %2009 = vmatpush2.bf16.msra.mxu0 %v4624_v35 }
 0x148   :  { %1966 = vmatpush2.bf16.msra.mxu1 %v4621_v34  ;;  %2839 = vmatprep.subr.bf16.mxu0 %v4629_v36  ;;  %v5213_v34 = vld [vmem:[#allocation7] sm:$0xf] }
 0x149   :  { %v4677_v36 = vld [vmem:[#allocation8 + $0xec] ss:$16 sps:$4 sm:$0xff]  }
 0x14a   :  { %2011 = vmatmul.mubr.bf16.vlgmr.msra.gmra.mxu0 %v5188_v26  ;;  %v4642_v26 = vld [vmem:[#allocation8 + $0x40] ss:$16 sps:$4 sm:$0xff]  }
 0x14b   :  { %1968 = vmatmul.mubr.bf16.vlgmr.msra.gmra.mxu1 %v5191_v31  ;;  %2840 = vmatpush1.bf16.msra.mxu0 %v4627_v37  ;;  %v4722_v31 = vld [vmem:[#allocation8 + $0x2e4] ss:$16 sps:$4 sm:$0xff]   ;;  %v4756_v37 = vld [vmem:[#allocation8 + $0x380] ss:$16 sps:$4 sm:$0xff]  }
 0x14c   :  { %2841 = vmatprep.subr.bf16.mxu0 %v4632_v38  ;;  %2882 = vmatprep.subr.bf16.mxu1 %v4722_v31 }
 0x14d   :  { %2883 = vmatpush1.bf16.msra.mxu1 %v4720_v12  ;;  %v4759_v12 = vld [vmem:[#allocation8 + $0x360] ss:$16 sps:$4 sm:$0xff]  }
 0x14e   :  { %2884 = vmatprep.subr.bf16.mxu1 %v4728_v47  ;;  %v1711_v24 = vpop.f32.mrf.mxu0 }
 0x14f   :  { %2842 = vmatpush1.bf16.msra.mxu0 %v4630_v39  ;;  %v1754_v20 = vpop.f32.mrf.mxu1  ;;  %v393_v39 = vrot.slane %v5213_v34, %v5208_v30 }
 0x150   :  { %2843 = vmatprep.subr.bf16.mxu0 %v4635_v41  ;;  %v1713_v35 = vpop.f32.mrf.mxu0  ;;  %v397_v41 = vrot.slane %v5213_v34, %v5211_v32 }
 0x151   :  { %2885 = vmatpush1.bf16.msra.mxu1 %v4726_v49  ;;  %v1756_v28 = vpop.f32.mrf.mxu1  ;;  %v4764_v49 = vld [vmem:[#allocation8 + $0x344] ss:$16 sps:$4 sm:$0xff]  }
 0x152   :  { %2886 = vmatprep.subr.bf16.mxu1 %v4731_v51 }
 0x153   :  { %2844 = vmatpush1.bf16.msra.mxu0 %v4633_v42  ;;  %v1758_v38 = vpop.f32.mrf.mxu1  ;;  %v1715_v42 = vpop.f32.mrf.mxu0 }
 0x154   :  { %2845 = vmatprep.subr.bf16.mxu0 %v4638_v43 }
 0x155   :  { %2887 = vmatpush1.bf16.msra.mxu1 %v4729_v50  ;;  %v1760_v43 = vpop.f32.mrf.mxu1  ;;  %v1717_v31 = vpop.f32.mrf.mxu0  ;;  %v4762_v50 = vld [vmem:[#allocation8 + $0x340] ss:$16 sps:$4 sm:$0xff]  }
 0x156   :  { %2888 = vmatprep.subr.bf16.mxu1 %v4734_v52  ;;  %v1718_v51 = vadd.f32 %v1717_v31, %v397_v41  ;;  %v4710_v31 = vld [vmem:[#allocation8 + $0x18c] ss:$16 sps:$4 sm:$0xff]  }
 0x157   :  { %2846 = vmatpush1.bf16.msra.mxu0 %v4636_v53  ;;  %v4761_v53 = vld [vmem:[#allocation8 + $0x364] ss:$16 sps:$4 sm:$0xff]  }
 0x158   :  { %2847 = vmatprep.subr.bf16.mxu0 %v4641_v44  ;;  %v1712_v44 = vadd.f32 %v1711_v24, %v393_v39  ;;  %v4678_v24 = vld [vmem:[#allocation8 + $0xc8] ss:$16 sps:$4 sm:$0xff]  }
 0x159   :  { %2889 = vmatpush1.bf16.msra.mxu1 %v4732_v40 }
 0x15a   :  { %2890 = vmatprep.subr.bf16.mxu1 %v4737_v57  ;;  %v1755_v47 = vadd.f32 %v1754_v20, %v1712_v44  ;;  %v4675_v20 = vld [vmem:[#allocation8 + $0xe8] ss:$16 sps:$4 sm:$0xff]   ;;  %v4704_v44 = vld [vmem:[#allocation8 + $0x1cc] ss:$16 sps:$4 sm:$0xff]  }
 0x15b   :  { %2848 = vmatpush1.bf16.msra.mxu0 %v4639_v45  ;;  %v1714_v45 = vadd.f32 %v1713_v35, %v397_v41  ;;  %v4687_v35 = vld [vmem:[#allocation8 + $0x68] ss:$16 sps:$4 sm:$0xff]   ;;  %v4698_v41 = vld [vmem:[#allocation8 + $0xc] ss:$16 sps:$4 sm:$0xff]  }
 0x15c   :  { %2849 = vmatprep.subr.bf16.mxu0 %v4644_v46 }
 0x15d   :  { %2891 = vmatpush1.bf16.msra.mxu1 %v4735_v60 }
 0x15e   :  { %2892 = vmatprep.subr.bf16.mxu1 %v4740_v61  ;;  %v4765_v61 = vld [vmem:[#allocation8 + $0x320] ss:$16 sps:$4 sm:$0xff]  }
 0x15f   :  { %2850 = vmatpush1.bf16.msra.mxu0 %v4642_v26  ;;  %v1716_v26 = vadd.f32 %v1715_v42, %v393_v39  ;;  %v4693_v39 = vld [vmem:[#allocation8 + $0x28] ss:$16 sps:$4 sm:$0xff]  }
 0x160   :  { %2851 = vmatprep.subr.bf16.mxu0 %v4647_v48  ;;  %v4696_v42 = vld [vmem:[#allocation8 + $0x8] ss:$16 sps:$4 sm:$0xff]  }
 0x161   :  { %2893 = vmatpush1.bf16.msra.mxu1 %v4738_v0 }
 0x162   :  { %2894 = vmatprep.subr.bf16.mxu1 %v4743_v1 }
 0x163   :  { %2852 = vmatpush1.bf16.msra.mxu0 %v4645_v54  ;;  %v1757_v54 = vadd.f32 %v1756_v28, %v1714_v45  ;;  %v4686_v28 = vld [vmem:[#allocation8 + $0x8c] ss:$16 sps:$4 sm:$0xff]   ;;  %v4702_v45 = vld [vmem:[#allocation8 + $0x1c8] ss:$16 sps:$4 sm:$0xff]  }
 0x164   :  { %2853 = vmatprep.subr.bf16.mxu0 %v4650_v13 }
 0x165   :  { %2895 = vmatpush1.bf16.msra.mxu1 %v4741_v4  ;;  %v4768_v4 = vld [vmem:[#allocation8 + $0x300] ss:$16 sps:$4 sm:$0xff]  }
 0x166   :  { %2896 = vmatprep.subr.bf16.mxu1 %v4746_v5  ;;  %v4770_v5 = vld [vmem:[#allocation8 + $0x304] ss:$16 sps:$4 sm:$0xff]  }
 0x167   :  { %2854 = vmatpush1.bf16.msra.mxu0 %v4648_v55  ;;  %v1759_v55 = vadd.f32 %v1758_v38, %v1716_v26  ;;  %v4695_v38 = vld [vmem:[#allocation8 + $0x2c] ss:$16 sps:$4 sm:$0xff]   ;;  %v4708_v26 = vld [vmem:[#allocation8 + $0x188] ss:$16 sps:$4 sm:$0xff]  }
 0x168   :  { %2855 = vmatprep.subr.bf16.mxu0 %v4653_v56 }
 0x169   :  { %2897 = vmatpush1.bf16.msra.mxu1 %v4744_v8 }
 0x16a   :  { %2898 = vmatprep.subr.bf16.mxu1 %v4749_v9 }
 0x16b   :  { %2856 = vmatpush2.bf16.msra.mxu0 %v4651_v58  ;;  %v4767_v58 = vld [vmem:[#allocation8 + $0x324] ss:$16 sps:$4 sm:$0xff]  }
 0x16c   :  { %2857 = vmatprep.subr.bf16.mxu0 %v4656_v59 }
 0x16d   :  { %2899 = vmatpush2.bf16.msra.mxu1 %v4747_v14  ;;  %v4773_v14 = vld [vmem:[#allocation8 + $0x2ec] ss:$16 sps:$4 sm:$0xff]  }
 0x16e   :  { %2900 = vmatprep.subr.bf16.mxu1 %v4752_v15 }
 0x16f   :  { %2858 = vmatpush2.bf16.msra.mxu0 %v4654_v62  ;;  %v1761_v62 = vadd.f32 %v1760_v43, %v1718_v51  ;;  %v4701_v43 = vld [vmem:[#allocation8 + $0x1ec] ss:$16 sps:$4 sm:$0xff]  }
 0x170   :  { %2859 = vmatprep.subr.bf16.mxu0 %v4659_v63  ;;  %v4725_v51 = vld [vmem:[#allocation8 + $0x10c] ss:$16 sps:$4 sm:$0xff]  }
 0x171   :  { %2901 = vmatpush2.bf16.msra.mxu1 %v4750_v19 }
 0x172   :  { %2902 = vmatprep.subr.bf16.mxu1 %v4755_v21 }
 0x173   :  { %2860 = vmatpush2.bf16.msra.mxu0 %v4657_v2 }
 0x174   :  { %2861 = vmatprep.subr.bf16.mxu0 %v4662_v3 }
 0x175   :  { %2903 = vmatpush2.bf16.msra.mxu1 %v4753_v27  ;;  %v4681_v27 = vld [vmem:[#allocation8 + $0xa8] ss:$16 sps:$4 sm:$0xff]  }
 0x176   :  { %2904 = vmatprep.subr.bf16.mxu1 %v4758_v29  ;;  %v4684_v29 = vld [vmem:[#allocation8 + $0x88] ss:$16 sps:$4 sm:$0xff]  }
 0x177   :  { %2862 = vmatpush2.bf16.msra.mxu0 %v4660_v6 }
 0x178   :  { %2863 = vmatprep.subr.bf16.mxu0 %v4665_v7 }
 0x179   :  { %2905 = vmatpush2.bf16.msra.mxu1 %v4756_v37  ;;  %v4690_v37 = vld [vmem:[#allocation8 + $0x48] ss:$16 sps:$4 sm:$0xff]  }
 0x17a   :  { %2906 = vmatprep.subr.bf16.mxu1 %v4761_v53  ;;  %v4699_v53 = vld [vmem:[#allocation8 + $0x1e8] ss:$16 sps:$4 sm:$0xff]  }
 0x17b   :  { %2864 = vmatpush2.bf16.msra.mxu0 %v4663_v10 }
 0x17c   :  { %2865 = vmatprep.subr.bf16.mxu0 %v4668_v11 }
 0x17d   :  { %2907 = vmatpush2.bf16.msra.mxu1 %v4759_v12  ;;  %v4705_v12 = vld [vmem:[#allocation8 + $0x1a8] ss:$16 sps:$4 sm:$0xff]  }
 0x17e   :  { %2908 = vmatprep.subr.bf16.mxu1 %v4764_v49  ;;  %v4711_v49 = vld [vmem:[#allocation8 + $0x168] ss:$16 sps:$4 sm:$0xff]  }
 0x17f   :  { %2866 = vmatpush2.bf16.msra.mxu0 %v4666_v17 }
 0x180   :  { %2867 = vmatprep.subr.bf16.mxu0 %v4671_v18 }
 0x181   :  { %2909 = vmatpush2.bf16.msra.mxu1 %v4762_v50  ;;  %v4717_v50 = vld [vmem:[#allocation8 + $0x128] ss:$16 sps:$4 sm:$0xff]  }
 0x182   :  { %2910 = vmatprep.subr.bf16.mxu1 %v4767_v58 }
 0x183   :  { %2868 = vmatpush2.bf16.msra.mxu0 %v4669_v23  ;;  %v4680_v23 = vld [vmem:[#allocation8 + $0xcc] ss:$16 sps:$4 sm:$0xff]  }
 0x184   :  { %2869 = vmatprep.subr.bf16.mxu0 %v4674_v25  ;;  %v4683_v25 = vld [vmem:[#allocation8 + $0xac] ss:$16 sps:$4 sm:$0xff]  }
 0x185   :  { %2911 = vmatpush2.bf16.msra.mxu1 %v4765_v61 }
 0x186   :  { %2912 = vmatprep.subr.bf16.mxu1 %v4770_v5 }
 0x187   :  { %2870 = vmatpush2.bf16.msra.mxu0 %v4672_v33  ;;  %v4689_v33 = vld [vmem:[#allocation8 + $0x6c] ss:$16 sps:$4 sm:$0xff]  }
 0x188   :  { %2925 = vmatprep.subr.bf16.mxu0 %v4677_v36  ;;  %v4692_v36 = vld [vmem:[#allocation8 + $0x4c] ss:$16 sps:$4 sm:$0xff]  }
 0x189   :  { %2913 = vmatpush2.bf16.msra.mxu1 %v4768_v4 }
 0x18a   :  { %2968 = vmatprep.subr.bf16.mxu1 %v4773_v14 }
 0x18b   :  { %v1840_v46 = vpop.f32.mrf.mxu1 }
 0x18d   :  { %v1842_v13 = vpop.f32.mrf.mxu1 }
 0x18e   :  { %v1797_v48 = vpop.f32.mrf.mxu0 }
 0x18f   :  { %v1798_v56 = vadd.f32 %v1797_v48, %v1755_v47  ;;  %v1844_v59 = vpop.f32.mrf.mxu1  ;;  %v4713_v48 = vld [vmem:[#allocation8 + $0x16c] ss:$16 sps:$4 sm:$0xff]  }
 0x190   :  { %v1799_v52 = vpop.f32.mrf.mxu0  ;;  %v4716_v47 = vld [vmem:[#allocation8 + $0x14c] ss:$16 sps:$4 sm:$0xff]  }
 0x191   :  { %v1800_v40 = vadd.f32 %v1799_v52, %v1757_v54  ;;  %v1841_v1 = vadd.f32 %v1840_v46, %v1798_v56  ;;  %v1846_v6 = vpop.f32.mrf.mxu1  ;;  %v4707_v46 = vld [vmem:[#allocation8 + $0x1ac] ss:$16 sps:$4 sm:$0xff]   ;;  %v4714_v54 = vld [vmem:[#allocation8 + $0x148] ss:$16 sps:$4 sm:$0xff]  }
 0x192   :  { %v1801_v57 = vpop.f32.mrf.mxu0  ;;  %v4723_v52 = vld [vmem:[#allocation8 + $0x108] ss:$16 sps:$4 sm:$0xff]  }
 0x193   :  { %v1802_v60 = vadd.f32 %v1801_v57, %v1759_v55  ;;  %v1843_v63 = vadd.f32 %v1842_v13, %v1800_v40  ;;  %v2029_v10 = vmul.f32 0.01, %v1841_v1  ;;  %vm2021_vm4 = vcmp.gt.f32.partialorder %v1841_v1, 0.0  ;;  %v4719_v13 = vld [vmem:[#allocation8 + $0x12c] ss:$16 sps:$4 sm:$0xff]  }
 0x194   :  { %v1803_v0 = vpop.f32.mrf.mxu0  ;;  %v400_v40 = vsub.s32 2, %v5205_v22 }
 0x195   :  { %v1845_v2 = vadd.f32 %v1844_v59, %v1802_v60  ;;  %v1804_v3 = vadd.f32 %v1803_v0, %v1761_v62  ;;  %v2030_v8 = vmul.f32 0.01, %v1843_v63  ;;  %vm2022_vm3 = vcmp.gt.f32.partialorder %v1843_v63, 0.0 }
 0x196   :  { %v2037_v18 = vsel %vm2021_vm4, %v1841_v1, %v2029_v10  ;;  %v404_v59 = vsub.s32 3, %v5205_v22  ;;  %v401_v60 = vrot.slane %v5213_v34, %v400_v40 }
 0x197   :  { %v2033_v7 = vmul.f32 0.01, %v1845_v2  ;;  %vm2025_vm2 = vcmp.gt.f32.partialorder %v1845_v2, 0.0  ;;  %v1847_v9 = vadd.f32 %v1846_v6, %v1804_v3  ;;  %v2038_v16 = vsel %vm2022_vm3, %v1843_v63, %v2030_v8 }
 0x198   :  { %v405_v63 = vrot.slane %v5213_v34, %v404_v59 }
 0x199   :  { %vm2026_vm5 = vcmp.gt.f32.partialorder %v1847_v9, 0.0  ;;  %v2034_v11 = vmul.f32 0.01, %v1847_v9  ;;  %v2041_v15 = vsel %vm2025_vm2, %v1845_v2, %v2033_v7 }
 0x19a   :  { %v5219_v21 = vpack.c.bf16 %v2041_v15, %v2037_v18 }
 0x19b   :  { %v2042_v17 = vsel %vm2026_vm5, %v1847_v9, %v2034_v11 }
 0x19c   :  { %v2046_v19 = vpack.c.bf16 %v2042_v17, %v2038_v16 }
 0x19e   :  { %2871 = vmatprep.mubr.bf16.mxu0 %v2046_v19 }
 0x19f   :  { %2872 = vmatmul.mubr.bf16.vlgmr.msra.gmra.mxu0 %v5219_v21 }
 0x1a0   :  { %2926 = vmatpush1.bf16.msra.mxu0 %v4675_v20  ;;  %2957 = vmatprep.mubr.bf16.mxu0 %v2046_v19 }
 0x1a1   :  { %2927 = vmatprep.subr.bf16.mxu0 %v4680_v23 }
 0x1a4   :  { %2928 = vmatpush1.bf16.msra.mxu0 %v4678_v24 }
 0x1a5   :  { %2929 = vmatprep.subr.bf16.mxu0 %v4683_v25 }
 0x1a8   :  { %2930 = vmatpush1.bf16.msra.mxu0 %v4681_v27 }
 0x1a9   :  { %2931 = vmatprep.subr.bf16.mxu0 %v4686_v28 }
 0x1ac   :  { %2932 = vmatpush1.bf16.msra.mxu0 %v4684_v29 }
 0x1ad   :  { %2933 = vmatprep.subr.bf16.mxu0 %v4689_v33 }
 0x1b0   :  { %2934 = vmatpush1.bf16.msra.mxu0 %v4687_v35 }
 0x1b1   :  { %2935 = vmatprep.subr.bf16.mxu0 %v4692_v36 }
 0x1b4   :  { %2936 = vmatpush1.bf16.msra.mxu0 %v4690_v37 }
 0x1b5   :  { %2937 = vmatprep.subr.bf16.mxu0 %v4695_v38 }
 0x1b8   :  { %2938 = vmatpush1.bf16.msra.mxu0 %v4693_v39 }
 0x1b9   :  { %2939 = vmatprep.subr.bf16.mxu0 %v4698_v41 }
 0x1bc   :  { %2940 = vmatpush1.bf16.msra.mxu0 %v4696_v42 }
 0x1bd   :  { %2941 = vmatprep.subr.bf16.mxu0 %v4701_v43  ;;  %v4771_v43 = vld [vmem:[#allocation8 + $0x2e8] ss:$16 sps:$4 sm:$0xff]  }
 0x1c0   :  { %2942 = vmatpush2.bf16.msra.mxu0 %v4699_v53 }
 0x1c1   :  { %2943 = vmatprep.subr.bf16.mxu0 %v4704_v44  ;;  %v4776_v44 = vld [vmem:[#allocation8 + $0x2cc] ss:$16 sps:$4 sm:$0xff]  }
 0x1c4   :  { %2944 = vmatpush2.bf16.msra.mxu0 %v4702_v45  ;;  %v4774_v45 = vld [vmem:[#allocation8 + $0x2c8] ss:$16 sps:$4 sm:$0xff]  }
 0x1c5   :  { %2945 = vmatprep.subr.bf16.mxu0 %v4707_v46  ;;  %v4779_v46 = vld [vmem:[#allocation8 + $0x2ac] ss:$16 sps:$4 sm:$0xff]  }
 0x1c8   :  { %2946 = vmatpush2.bf16.msra.mxu0 %v4705_v12  ;;  %v4777_v12 = vld [vmem:[#allocation8 + $0x2a8] ss:$16 sps:$4 sm:$0xff]  }
 0x1c9   :  { %2947 = vmatprep.subr.bf16.mxu0 %v4710_v31  ;;  %v4782_v31 = vld [vmem:[#allocation8 + $0x28c] ss:$16 sps:$4 sm:$0xff]  }
 0x1cb   :  { %v1883_v55 = vpop.f32.mrf.mxu1 }
 0x1cc   :  { %2948 = vmatpush2.bf16.msra.mxu0 %v4708_v26  ;;  %v1884_v0 = vadd.f32 %v1883_v55, %v401_v60  ;;  %v4780_v26 = vld [vmem:[#allocation8 + $0x288] ss:$16 sps:$4 sm:$0xff]  }
 0x1cd   :  { %2949 = vmatprep.subr.bf16.mxu0 %v4713_v48  ;;  %v1885_v57 = vpop.f32.mrf.mxu1  ;;  %v4785_v48 = vld [vmem:[#allocation8 + $0x26c] ss:$16 sps:$4 sm:$0xff]   ;;  %v4786_v55 = vld [vmem:[#allocation8 + $0x248] ss:$16 sps:$4 sm:$0xff]  }
 0x1ce   :  { %v1926_v56 = vpop.f32.mrf.mxu0  ;;  %v1886_v3 = vadd.f32 %v1885_v57, %v405_v63  ;;  %v4825_v57 = vld [vmem:[#allocation10 + $0x50] ss:$8 sps:$4 sm:$0xff]  }
 0x1cf   :  { %v1887_v61 = vpop.f32.mrf.mxu1  ;;  %v1927_v7 = vadd.f32 %v1926_v56, %v1884_v0  ;;  %v4791_v56 = vld [vmem:[#allocation8 + $0x22c] ss:$16 sps:$4 sm:$0xff]   ;;  %v4792_v0 = vld [vmem:[#allocation8 + $0x208] ss:$16 sps:$4 sm:$0xff]  }
 0x1d0   :  { %2950 = vmatpush2.bf16.msra.mxu0 %v4711_v49  ;;  %v1928_v58 = vpop.f32.mrf.mxu0  ;;  %v1888_v6 = vadd.f32 %v1887_v61, %v401_v60  ;;  %v4819_v49 = vld [vmem:[#allocation10 + $0x70] ss:$8 sps:$4 sm:$0xff]   ;;  %v4794_v61 = vld [vmem:[#allocation8 + $0x20c] ss:$16 sps:$4 sm:$0xff]  }
 0x1d1   :  { %2951 = vmatprep.subr.bf16.mxu0 %v4716_v47  ;;  %v1889_v1 = vpop.f32.mrf.mxu1  ;;  %v1929_v8 = vadd.f32 %v1928_v58, %v1886_v3  ;;  %v4821_v47 = vld [vmem:[#allocation10 + $0x74] ss:$8 sps:$4 sm:$0xff]   ;;  %v4830_v58 = vld [vmem:[#allocation10 + $0x44] ss:$8 sps:$4 sm:$0xff]   ;;  %v4789_v60 = vld [vmem:[#allocation8 + $0x228] ss:$16 sps:$4 sm:$0xff]  }
 0x1d2   :  { %v1930_v62 = vpop.f32.mrf.mxu0  ;;  %v1890_v16 = vadd.f32 %v1889_v1, %v405_v63  ;;  %v4833_v63 = vld [vmem:[#allocation10 + $0x34] ss:$8 sps:$4 sm:$0xff]   ;;  %v4836_v3 = vld [vmem:[#allocation10 + $0x24] ss:$8 sps:$4 sm:$0xff]  }
 0x1d3   :  { %v1931_v11 = vadd.f32 %v1930_v62, %v1888_v6  ;;  %v4828_v62 = vld [vmem:[#allocation10 + $0x40] ss:$8 sps:$4 sm:$0xff]   ;;  %v4797_v1 = vld [vmem:[#allocation8 + $0x3ec] ss:$16 sps:$4 sm:$0xff]  }
 0x1d4   :  { %2952 = vmatpush2.bf16.msra.mxu0 %v4714_v54  ;;  %v1932_v2 = vpop.f32.mrf.mxu0  ;;  %v4824_v54 = vld [vmem:[#allocation10 + $0x64] ss:$8 sps:$4 sm:$0xff]   ;;  %v4834_v6 = vld [vmem:[#allocation10 + $0x20] ss:$8 sps:$4 sm:$0xff]  }
 0x1d5   :  { %2953 = vmatprep.subr.bf16.mxu0 %v4719_v13  ;;  %v1933_v20 = vadd.f32 %v1932_v2, %v1890_v16  ;;  %v4783_v13 = vld [vmem:[#allocation8 + $0x268] ss:$16 sps:$4 sm:$0xff]  }
 0x1d6   :  { %v4831_v2 = vld [vmem:[#allocation10 + $0x30] ss:$8 sps:$4 sm:$0xff]   ;;  %v4840_v16 = vld [vmem:[#allocation10] ss:$8 sps:$4 sm:$0xff]  }
 0x1d8   :  { %2954 = vmatpush2.bf16.msra.mxu0 %v4717_v50  ;;  %v4788_v50 = vld [vmem:[#allocation8 + $0x24c] ss:$16 sps:$4 sm:$0xff]  }
 0x1d9   :  { %2955 = vmatprep.subr.bf16.mxu0 %v4725_v51  ;;  %v4822_v51 = vld [vmem:[#allocation10 + $0x60] ss:$8 sps:$4 sm:$0xff]  }
 0x1dc   :  { %2956 = vmatpush2.bf16.msra.mxu0 %v4723_v52  ;;  %v4827_v52 = vld [vmem:[#allocation10 + $0x54] ss:$8 sps:$4 sm:$0xff]  }
 0x1dd   :  { %3435 = vmatprep.subr.bf16.mxu0 %v4821_v47  ;;  %v4873_v47 = vld [vmem:[#allocation10 + $0x150] ss:$8 sps:$4 sm:$0xff]  }
 0x1df   :  { %2958 = vmatmul.mubr.bf16.vlgmr.msra.gmra.mxu0 %v5219_v21 }
 0x1e0   :  { %3436 = vmatpush1.bf16.msra.mxu0 %v4819_v49  ;;  %v4870_v49 = vld [vmem:[#allocation10 + $0x160] ss:$8 sps:$4 sm:$0xff]  }
 0x1e1   :  { %3437 = vmatprep.subr.bf16.mxu0 %v4824_v54  ;;  %v4878_v54 = vld [vmem:[#allocation10 + $0x144] ss:$8 sps:$4 sm:$0xff]  }
 0x1e4   :  { %3438 = vmatpush1.bf16.msra.mxu0 %v4822_v51  ;;  %v4879_v51 = vld [vmem:[#allocation10 + $0x130] ss:$8 sps:$4 sm:$0xff]  }
 0x1e5   :  { %3439 = vmatprep.subr.bf16.mxu0 %v4827_v52  ;;  %v4884_v52 = vld [vmem:[#allocation10 + $0x124] ss:$8 sps:$4 sm:$0xff]  }
 0x1e8   :  { %3440 = vmatpush1.bf16.msra.mxu0 %v4825_v57  ;;  %v4885_v57 = vld [vmem:[#allocation10 + $0x110] ss:$8 sps:$4 sm:$0xff]  }
 0x1e9   :  { %3441 = vmatprep.subr.bf16.mxu0 %v4830_v58  ;;  %v4890_v58 = vld [vmem:[#allocation10 + $0x104] ss:$8 sps:$4 sm:$0xff]  }
 0x1ec   :  { %3442 = vmatpush1.bf16.msra.mxu0 %v4828_v62  ;;  %v4891_v62 = vld [vmem:[#allocation10 + $0x1f0] ss:$8 sps:$4 sm:$0xff]  }
 0x1ed   :  { %3443 = vmatprep.subr.bf16.mxu0 %v4833_v63  ;;  %v4896_v63 = vld [vmem:[#allocation10 + $0x1e4] ss:$8 sps:$4 sm:$0xff]  }
 0x1f0   :  { %3444 = vmatpush1.bf16.msra.mxu0 %v4831_v2  ;;  %v4897_v2 = vld [vmem:[#allocation10 + $0x1d0] ss:$8 sps:$4 sm:$0xff]  }
 0x1f1   :  { %3445 = vmatprep.subr.bf16.mxu0 %v4836_v3  ;;  %v4902_v3 = vld [vmem:[#allocation10 + $0x1c4] ss:$8 sps:$4 sm:$0xff]  }
 0x1f4   :  { %3446 = vmatpush1.bf16.msra.mxu0 %v4834_v6  ;;  %v4903_v6 = vld [vmem:[#allocation10 + $0x1b0] ss:$8 sps:$4 sm:$0xff]  }
 0x20a   :  { %v2012_v5 = vpop.f32.mrf.mxu0 }
 0x20b   :  { %v1969_v4 = vpop.f32.mrf.mxu1 }
 0x20c   :  { %v2014_v10 = vpop.f32.mrf.mxu0  ;;  %v1970_v14 = vadd.f32 %v1969_v4, %v1927_v7  ;;  %v4795_v4 = vld [vmem:[#allocation8 + $0x3e8] ss:$16 sps:$4 sm:$0xff]   ;;  %v4839_v7 = vld [vmem:[#allocation10 + $0x14] ss:$8 sps:$4 sm:$0xff]  }
 0x20d   :  { %v1971_v9 = vpop.f32.mrf.mxu1  ;;  %3447 = vmatprep.subr.bf16.mxu0 %v4839_v7  ;;  %v4908_v7 = vld [vmem:[#allocation10 + $0x1a4] ss:$8 sps:$4 sm:$0xff]  }
 0x20e   :  { %v1972_v15 = vadd.f32 %v1971_v9, %v1929_v8  ;;  %v2016_v19 = vpop.f32.mrf.mxu0  ;;  %v2013_v23 = vadd.f32 %v2012_v5, %v1970_v14  ;;  %v4800_v5 = vld [vmem:[#allocation8 + $0x3cc] ss:$16 sps:$4 sm:$0xff]   ;;  %v4798_v8 = vld [vmem:[#allocation8 + $0x3c8] ss:$16 sps:$4 sm:$0xff]  }
 0x20f   :  { %v1973_v17 = vpop.f32.mrf.mxu1  ;;  %v4803_v9 = vld [vmem:[#allocation8 + $0x3ac] ss:$16 sps:$4 sm:$0xff]   ;;  %v4801_v14 = vld [vmem:[#allocation8 + $0x3a8] ss:$16 sps:$4 sm:$0xff]  }
 0x210   :  { %v1974_v18 = vadd.f32 %v1973_v17, %v1931_v11  ;;  %v2015_v34 = vadd.f32 %v2014_v10, %v1972_v15  ;;  %v2018_v28 = vpop.f32.mrf.mxu0  ;;  %v2031_v35 = vmul.f32 0.01, %v2013_v23  ;;  %vm2023_vm8 = vcmp.gt.f32.partialorder %v2013_v23, 0.0  ;;  %v4837_v10 = vld [vmem:[#allocation10 + $0x10] ss:$8 sps:$4 sm:$0xff]  }
 0x211   :  { %v1975_v21 = vpop.f32.mrf.mxu1  ;;  %v4842_v11 = vld [vmem:[#allocation10 + $0x4] ss:$8 sps:$4 sm:$0xff]   ;;  %3448 = vmatpush1.bf16.msra.mxu0 %v4837_v10  ;;  %v4845_v17 = vld [vmem:[#allocation10 + $0xf4] ss:$8 sps:$4 sm:$0xff]   ;;  %v4909_v10 = vld [vmem:[#allocation10 + $0x190] ss:$8 sps:$4 sm:$0xff]  }
 0x212   :  { %v2017_v24 = vadd.f32 %v2016_v19, %v1974_v18  ;;  %v1976_v25 = vadd.f32 %v1975_v21, %v1933_v20  ;;  %v2032_v29 = vmul.f32 0.01, %v2015_v34  ;;  %vm2024_vm7 = vcmp.gt.f32.partialorder %v2015_v34, 0.0  ;;  %v4806_v15 = vld [vmem:[#allocation8 + $0x38c] ss:$16 sps:$4 sm:$0xff]   ;;  %3449 = vmatprep.subr.bf16.mxu0 %v4842_v11 }
 0x213   :  { %v2039_v41 = vsel %vm2023_vm8, %v2013_v23, %v2031_v35  ;;  %v4804_v18 = vld [vmem:[#allocation8 + $0x388] ss:$16 sps:$4 sm:$0xff]   ;;  %v4809_v19 = vld [vmem:[#allocation8 + $0x36c] ss:$16 sps:$4 sm:$0xff]  }
 0x214   :  { %v2035_v27 = vmul.f32 0.01, %v2017_v24  ;;  %vm2027_vm6 = vcmp.gt.f32.partialorder %v2017_v24, 0.0  ;;  %v2019_v33 = vadd.f32 %v2018_v28, %v1976_v25  ;;  %v2040_v38 = vsel %vm2024_vm7, %v2015_v34, %v2032_v29  ;;  %v4843_v20 = vld [vmem:[#allocation10 + $0xf0] ss:$8 sps:$4 sm:$0xff]  }
 0x215   :  { %3450 = vmatpush1.bf16.msra.mxu0 %v4840_v16  ;;  %v4848_v34 = vld [vmem:[#allocation10 + $0xe4] ss:$8 sps:$4 sm:$0xff]   ;;  %v4807_v21 = vld [vmem:[#allocation8 + $0x368] ss:$16 sps:$4 sm:$0xff]   ;;  %v4851_v25 = vld [vmem:[#allocation10 + $0xd4] ss:$8 sps:$4 sm:$0xff]  }
 0x216   :  { %vm2028_vm9 = vcmp.gt.f32.partialorder %v2019_v33, 0.0  ;;  %v2036_v36 = vmul.f32 0.01, %v2019_v33  ;;  %v2043_v37 = vsel %vm2027_vm6, %v2017_v24, %v2035_v27  ;;  %3451 = vmatprep.subr.bf16.mxu0 %v4845_v17  ;;  %v4812_v23 = vld [vmem:[#allocation8 + $0x34c] ss:$16 sps:$4 sm:$0xff]  }
 0x217   :  { %v5231_v53 = vpack.c.bf16 %v2043_v37, %v2039_v41  ;;  %v4846_v24 = vld [vmem:[#allocation10 + $0xe0] ss:$8 sps:$4 sm:$0xff]   ;;  %v4815_v28 = vld [vmem:[#allocation8 + $0x32c] ss:$16 sps:$4 sm:$0xff]   ;;  %v4849_v29 = vld [vmem:[#allocation10 + $0xd0] ss:$8 sps:$4 sm:$0xff]  }
 0x218   :  { %v2044_v39 = vsel %vm2028_vm9, %v2019_v33, %v2036_v36  ;;  %v4810_v27 = vld [vmem:[#allocation8 + $0x348] ss:$16 sps:$4 sm:$0xff]   ;;  %v4854_v33 = vld [vmem:[#allocation10 + $0xc4] ss:$8 sps:$4 sm:$0xff]  }
 0x219   :  { %v2048_v42 = vpack.c.bf16 %v2044_v39, %v2040_v38  ;;  %3452 = vmatpush2.bf16.msra.mxu0 %v4843_v20  ;;  %v4813_v35 = vld [vmem:[#allocation8 + $0x328] ss:$16 sps:$4 sm:$0xff]   ;;  %v4818_v36 = vld [vmem:[#allocation8 + $0x30c] ss:$16 sps:$4 sm:$0xff]  }
 0x21a   :  { %3453 = vmatprep.subr.bf16.mxu0 %v4848_v34  ;;  %v4852_v37 = vld [vmem:[#allocation10 + $0xc0] ss:$8 sps:$4 sm:$0xff]   ;;  %v4857_v38 = vld [vmem:[#allocation10 + $0xb4] ss:$8 sps:$4 sm:$0xff]   ;;  %v4855_v41 = vld [vmem:[#allocation10 + $0xb0] ss:$8 sps:$4 sm:$0xff]  }
 0x21b   :  { %2914 = vmatprep.mubr.bf16.mxu1 %v2048_v42  ;;  %v4816_v39 = vld [vmem:[#allocation8 + $0x308] ss:$16 sps:$4 sm:$0xff]   ;;  %v4914_v11 = vld [vmem:[#allocation10 + $0x184] ss:$8 sps:$4 sm:$0xff]  }
 0x21c   :  { %2915 = vmatmul.mubr.bf16.vlgmr.msra.gmra.mxu1 %v5231_v53  ;;  %v2177_v17 = vld [vmem:[%s5262_s4] sm:$0xf] }
 0x21d   :  { %2969 = vmatpush1.bf16.msra.mxu1 %v4771_v43  ;;  %3000 = vmatprep.mubr.bf16.mxu1 %v2048_v42  ;;  %v4860_v42 = vld [vmem:[#allocation10 + $0xa4] ss:$8 sps:$4 sm:$0xff]   ;;  %v4858_v43 = vld [vmem:[#allocation10 + $0xa0] ss:$8 sps:$4 sm:$0xff]  }
 0x21e   :  { %2970 = vmatprep.subr.bf16.mxu1 %v4776_v44  ;;  %3454 = vmatpush2.bf16.msra.mxu0 %v4846_v24  ;;  %v4863_v44 = vld [vmem:[#allocation10 + $0x94] ss:$8 sps:$4 sm:$0xff]  }
 0x21f   :  { %3455 = vmatprep.subr.bf16.mxu0 %v4851_v25 }
 0x221   :  { %2971 = vmatpush1.bf16.msra.mxu1 %v4774_v45  ;;  %v4861_v45 = vld [vmem:[#allocation10 + $0x90] ss:$8 sps:$4 sm:$0xff]  }
 0x222   :  { %2972 = vmatprep.subr.bf16.mxu1 %v4779_v46  ;;  %3456 = vmatpush2.bf16.msra.mxu0 %v4849_v29  ;;  %v4864_v46 = vld [vmem:[#allocation10 + $0x80] ss:$8 sps:$4 sm:$0xff]  }
 0x223   :  { %3457 = vmatprep.subr.bf16.mxu0 %v4854_v33 }
 0x225   :  { %2973 = vmatpush1.bf16.msra.mxu1 %v4777_v12  ;;  %v4866_v12 = vld [vmem:[#allocation10 + $0x84] ss:$8 sps:$4 sm:$0xff]  }
 0x226   :  { %2974 = vmatprep.subr.bf16.mxu1 %v4782_v31  ;;  %3458 = vmatpush2.bf16.msra.mxu0 %v4852_v37  ;;  %v4869_v31 = vld [vmem:[#allocation10 + $0x174] ss:$8 sps:$4 sm:$0xff]  }
 0x227   :  { %3459 = vmatprep.subr.bf16.mxu0 %v4857_v38 }
 0x229   :  { %2975 = vmatpush1.bf16.msra.mxu1 %v4780_v26  ;;  %v4867_v26 = vld [vmem:[#allocation10 + $0x170] ss:$8 sps:$4 sm:$0xff]  }
 0x22a   :  { %2976 = vmatprep.subr.bf16.mxu1 %v4785_v48  ;;  %3460 = vmatpush2.bf16.msra.mxu0 %v4855_v41  ;;  %v4872_v48 = vld [vmem:[#allocation10 + $0x164] ss:$8 sps:$4 sm:$0xff]  }
 0x22b   :  { %3461 = vmatprep.subr.bf16.mxu0 %v4860_v42 }
 0x22d   :  { %2977 = vmatpush1.bf16.msra.mxu1 %v4783_v13  ;;  %v4876_v13 = vld [vmem:[#allocation10 + $0x140] ss:$8 sps:$4 sm:$0xff]  }
 0x22e   :  { %2978 = vmatprep.subr.bf16.mxu1 %v4788_v50  ;;  %3462 = vmatpush2.bf16.msra.mxu0 %v4858_v43  ;;  %v4881_v50 = vld [vmem:[#allocation10 + $0x134] ss:$8 sps:$4 sm:$0xff]  }
 0x22f   :  { %3463 = vmatprep.subr.bf16.mxu0 %v4863_v44 }
 0x231   :  { %2979 = vmatpush1.bf16.msra.mxu1 %v4786_v55  ;;  %v4882_v55 = vld [vmem:[#allocation10 + $0x120] ss:$8 sps:$4 sm:$0xff]  }
 0x232   :  { %2980 = vmatprep.subr.bf16.mxu1 %v4791_v56  ;;  %3464 = vmatpush2.bf16.msra.mxu0 %v4861_v45  ;;  %v4887_v56 = vld [vmem:[#allocation10 + $0x114] ss:$8 sps:$4 sm:$0xff]  }
 0x233   :  { %3465 = vmatprep.subr.bf16.mxu0 %v4866_v12 }
 0x235   :  { %2981 = vmatpush1.bf16.msra.mxu1 %v4789_v60  ;;  %v4888_v60 = vld [vmem:[#allocation10 + $0x100] ss:$8 sps:$4 sm:$0xff]  }
 0x236   :  { %2982 = vmatprep.subr.bf16.mxu1 %v4794_v61  ;;  %3466 = vmatpush2.bf16.msra.mxu0 %v4864_v46  ;;  %v4893_v61 = vld [vmem:[#allocation10 + $0x1f4] ss:$8 sps:$4 sm:$0xff]  }
 0x239   :  { %2983 = vmatpush1.bf16.msra.mxu1 %v4792_v0  ;;  %v4894_v0 = vld [vmem:[#allocation10 + $0x1e0] ss:$8 sps:$4 sm:$0xff]  }
 0x23a   :  { %2984 = vmatprep.subr.bf16.mxu1 %v4797_v1  ;;  %v4899_v1 = vld [vmem:[#allocation10 + $0x1d4] ss:$8 sps:$4 sm:$0xff]  }
 0x23d   :  { %2985 = vmatpush2.bf16.msra.mxu1 %v4795_v4  ;;  %v4900_v4 = vld [vmem:[#allocation10 + $0x1c0] ss:$8 sps:$4 sm:$0xff]  }
 0x23e   :  { %2986 = vmatprep.subr.bf16.mxu1 %v4800_v5  ;;  %v4905_v5 = vld [vmem:[#allocation10 + $0x1b4] ss:$8 sps:$4 sm:$0xff]  }
 0x241   :  { %2987 = vmatpush2.bf16.msra.mxu1 %v4798_v8  ;;  %v4906_v8 = vld [vmem:[#allocation10 + $0x1a0] ss:$8 sps:$4 sm:$0xff]  }
 0x242   :  { %2988 = vmatprep.subr.bf16.mxu1 %v4803_v9  ;;  %v4911_v9 = vld [vmem:[#allocation10 + $0x194] ss:$8 sps:$4 sm:$0xff]  }
 0x245   :  { %2989 = vmatpush2.bf16.msra.mxu1 %v4801_v14  ;;  %v4912_v14 = vld [vmem:[#allocation10 + $0x180] ss:$8 sps:$4 sm:$0xff]  }
 0x246   :  { %2990 = vmatprep.subr.bf16.mxu1 %v4806_v15 }
 0x249   :  { %2991 = vmatpush2.bf16.msra.mxu1 %v4804_v18  ;;  %v2186_v18 = vrot.slane %v2177_v17, %v5211_v32 }
 0x24a   :  { %2992 = vmatprep.subr.bf16.mxu1 %v4809_v19  ;;  %v2182_v19 = vrot.slane %v2177_v17, %v5208_v30 }
 0x24d   :  { %2993 = vmatpush2.bf16.msra.mxu1 %v4807_v21 }
 0x24e   :  { %2994 = vmatprep.subr.bf16.mxu1 %v4812_v23 }
 0x251   :  { %2995 = vmatpush2.bf16.msra.mxu1 %v4810_v27 }
 0x252   :  { %2996 = vmatprep.subr.bf16.mxu1 %v4815_v28 }
 0x255   :  { %2997 = vmatpush2.bf16.msra.mxu1 %v4813_v35 }
 0x256   :  { %2998 = vmatprep.subr.bf16.mxu1 %v4818_v36 }
 0x259   :  { %2999 = vmatpush2.bf16.msra.mxu1 %v4816_v39 }
 0x25a   :  { %3478 = vmatprep.subr.bf16.mxu1 %v4869_v31 }
 0x25c   :  { %3001 = vmatmul.mubr.bf16.vlgmr.msra.gmra.mxu1 %v5231_v53  ;;  %v4875_v53 = vld [vmem:[#allocation10 + $0x154] ss:$8 sps:$4 sm:$0xff]  }
 0x25d   :  { %3479 = vmatpush1.bf16.msra.mxu1 %v4867_v26 }
 0x25e   :  { %3480 = vmatprep.subr.bf16.mxu1 %v4872_v48 }
 0x25f   :  { %v2873_v15 = vpop.f32.mrf.mxu0 }
 0x260   :  { %v2874_v23 = vadd.f32 %v2873_v15, %v2182_v19  ;;  %v4920_v15 = vld [vmem:[#allocation11 + $0x28] sm:$0xff]  }
 0x261   :  { %3481 = vmatpush1.bf16.msra.mxu1 %v4870_v49  ;;  %v2875_v16 = vpop.f32.mrf.mxu0 }
 0x262   :  { %3482 = vmatprep.subr.bf16.mxu1 %v4875_v53  ;;  %v2876_v21 = vadd.f32 %v2875_v16, %v2186_v18  ;;  %v2194_v53 = vrot.slane %v2177_v17, %v404_v59  ;;  %v4921_v16 = vld [vmem:[#allocation11 + $0x60] sm:$0xff]  }
 0x263   :  { %v2877_v20 = vpop.f32.mrf.mxu0 }
 0x264   :  { %v2878_v27 = vadd.f32 %v2877_v20, %v2182_v19  ;;  %v4924_v19 = vld [vmem:[#allocation11 + $0x18] sm:$0xff]   ;;  %v4925_v20 = vld [vmem:[#allocation11 + $0x50] sm:$0xff]  }
 0x265   :  { %3483 = vmatpush1.bf16.msra.mxu1 %v4873_v47  ;;  %v2879_v24 = vpop.f32.mrf.mxu0  ;;  %v2190_v47 = vrot.slane %v2177_v17, %v400_v40  ;;  %v4922_v17 = vld [vmem:[#allocation11 + $0x20] sm:$0xff]  }
 0x266   :  { %3484 = vmatprep.subr.bf16.mxu1 %v4878_v54  ;;  %v2880_v35 = vadd.f32 %v2879_v24, %v2186_v18  ;;  %v4923_v18 = vld [vmem:[#allocation11 + $0x58] sm:$0xff]   ;;  %v4929_v24 = vld [vmem:[#allocation11 + $0x40] sm:$0xff]  }
 0x269   :  { %3485 = vmatpush1.bf16.msra.mxu1 %v4876_v13 }
 0x26a   :  { %3486 = vmatprep.subr.bf16.mxu1 %v4881_v50 }
 0x26d   :  { %3487 = vmatpush1.bf16.msra.mxu1 %v4879_v51 }
 0x26e   :  { %3488 = vmatprep.subr.bf16.mxu1 %v4884_v52 }
 0x271   :  { %3489 = vmatpush1.bf16.msra.mxu1 %v4882_v55 }
 0x272   :  { %3490 = vmatprep.subr.bf16.mxu1 %v4887_v56 }
 0x275   :  { %3491 = vmatpush1.bf16.msra.mxu1 %v4885_v57 }
 0x276   :  { %3492 = vmatprep.subr.bf16.mxu1 %v4890_v58 }
 0x279   :  { %3493 = vmatpush1.bf16.msra.mxu1 %v4888_v60 }
 0x27a   :  { %3494 = vmatprep.subr.bf16.mxu1 %v4893_v61 }
 0x27d   :  { %3495 = vmatpush2.bf16.msra.mxu1 %v4891_v62 }
 0x27e   :  { %3496 = vmatprep.subr.bf16.mxu1 %v4896_v63 }
 0x281   :  { %3497 = vmatpush2.bf16.msra.mxu1 %v4894_v0 }
 0x282   :  { %3498 = vmatprep.subr.bf16.mxu1 %v4899_v1 }
 0x285   :  { %3499 = vmatpush2.bf16.msra.mxu1 %v4897_v2 }
 0x286   :  { %3500 = vmatprep.subr.bf16.mxu1 %v4902_v3 }
 0x289   :  { %3501 = vmatpush2.bf16.msra.mxu1 %v4900_v4 }
 0x28a   :  { %3502 = vmatprep.subr.bf16.mxu1 %v4905_v5 }
 0x28d   :  { %3503 = vmatpush2.bf16.msra.mxu1 %v4903_v6 }
 0x28e   :  { %3504 = vmatprep.subr.bf16.mxu1 %v4908_v7 }
 0x291   :  { %3505 = vmatpush2.bf16.msra.mxu1 %v4906_v8  ;;  %v4915_v8 = vld [vmem:[#allocation11 + $0x78] sm:$0xff]  }
 0x292   :  { %3506 = vmatprep.subr.bf16.mxu1 %v4911_v9  ;;  %v4916_v9 = vld [vmem:[#allocation11 + $0x38] sm:$0xff]   ;;  %4215 = vmatprep.subr.bf16.mxu0 %v4915_v8 }
 0x295   :  { %3507 = vmatpush2.bf16.msra.mxu1 %v4909_v10  ;;  %v4917_v10 = vld [vmem:[#allocation11 + $0x70] sm:$0xff]  }
 0x296   :  { %3508 = vmatprep.subr.bf16.mxu1 %v4914_v11  ;;  %v4918_v11 = vld [vmem:[#allocation11 + $0x30] sm:$0xff]  }
 0x299   :  { %3509 = vmatpush2.bf16.msra.mxu1 %v4912_v14  ;;  %v4919_v14 = vld [vmem:[#allocation11 + $0x68] sm:$0xff]  }
 0x29f   :  { %v2959_v48 = vpop.f32.mrf.mxu0 }
 0x2a0   :  { %v2960_v51 = vadd.f32 %v2959_v48, %v2190_v47 }
 0x2a1   :  { %v2961_v49 = vpop.f32.mrf.mxu0 }
 0x2a2   :  { %v2962_v50 = vadd.f32 %v2961_v49, %v2194_v53 }
 0x2a3   :  { %v2963_v54 = vpop.f32.mrf.mxu0 }
 0x2a4   :  { %v2964_v56 = vadd.f32 %v2963_v54, %v2190_v47 }
 0x2a5   :  { %v2965_v52 = vpop.f32.mrf.mxu0 }
 0x2a6   :  { %v2966_v61 = vadd.f32 %v2965_v52, %v2194_v53 }
 0x2dc   :  { %v2916_v34 = vpop.f32.mrf.mxu1 }
 0x2dd   :  { %v2917_v29 = vadd.f32 %v2916_v34, %v2874_v23  ;;  %v4926_v34 = vld [vmem:[#allocation11 + $0x10] sm:$0xff]   ;;  %v4928_v23 = vld [vmem:[#allocation11 + $0x8] sm:$0xff]  }
 0x2de   :  { %v2918_v25 = vpop.f32.mrf.mxu1 }
 0x2df   :  { %v2919_v28 = vadd.f32 %v2918_v25, %v2876_v21  ;;  %v3019_v42 = vmul.f32 0.01, %v2917_v29  ;;  %vm3011_vm12 = vcmp.gt.f32.partialorder %v2917_v29, 0.0  ;;  %v4927_v21 = vld [vmem:[#allocation11 + $0x48] sm:$0xff]   ;;  %v4930_v25 = vld [vmem:[#allocation11] sm:$0xff]  }
 0x2e0   :  { %v2920_v33 = vpop.f32.mrf.mxu1 }
 0x2e1   :  { %v2921_v36 = vadd.f32 %v2920_v33, %v2878_v27  ;;  %v3020_v38 = vmul.f32 0.01, %v2919_v28  ;;  %vm3012_vm11 = vcmp.gt.f32.partialorder %v2919_v28, 0.0  ;;  %v3027_v12 = vsel %vm3011_vm12, %v2917_v29, %v3019_v42  ;;  %v3103_v29 = vld [vmem:[%s5264_s6] sm:$0x3] }
 0x2e2   :  { %v2922_v37 = vpop.f32.mrf.mxu1  ;;  %v3112_v33 = vrot.slane %v3103_v29, %v5211_v32 }
 0x2e3   :  { %vm3015_vm10 = vcmp.gt.f32.partialorder %v2921_v36, 0.0  ;;  %v3023_v39 = vmul.f32 0.01, %v2921_v36  ;;  %v2923_v41 = vadd.f32 %v2922_v37, %v2880_v35  ;;  %v3028_v45 = vsel %vm3012_vm11, %v2919_v28, %v3020_v38 }
 0x2e4   :  { %v3108_v35 = vrot.slane %v3103_v29, %v5208_v30 }
 0x2e5   :  { %vm3016_vm13 = vcmp.gt.f32.partialorder %v2923_v41, 0.0  ;;  %v3024_v43 = vmul.f32 0.01, %v2923_v41  ;;  %v3031_v44 = vsel %vm3015_vm10, %v2921_v36, %v3023_v39 }
 0x2e6   :  { %v3035_v26 = vpack.c.bf16 %v3031_v44, %v3027_v12 }
 0x2e7   :  { %v3032_v46 = vsel %vm3016_vm13, %v2923_v41, %v3024_v43 }
 0x2e8   :  { %v3036_v31 = vpack.c.bf16 %v3032_v46, %v3028_v45 }
 0x2ea   :  { %3467 = vmatprep.mubr.bf16.mxu0 %v3036_v31 }
 0x2eb   :  { %3468 = vmatmul.mubr.bf16.vlgmr.msra.gmra.mxu0 %v3035_v26 }
 0x2ec   :  { %4216 = vmatpush3.bf16.msra.mxu0 %v4916_v9 }
 0x2ed   :  { %4217 = vmatprep.subr.bf16.mxu0 %v4917_v10 }
 0x2f0   :  { %4218 = vmatpush3.bf16.msra.mxu0 %v4918_v11 }
 0x2f1   :  { %4219 = vmatprep.subr.bf16.mxu0 %v4919_v14 }
 0x2f4   :  { %4220 = vmatpush3.bf16.msra.mxu0 %v4920_v15 }
 0x2f5   :  { %4221 = vmatprep.subr.bf16.mxu0 %v4921_v16 }
 0x2f8   :  { %4222 = vmatpush3.bf16.msra.mxu0 %v4922_v17 }
 0x2f9   :  { %4223 = vmatprep.subr.bf16.mxu0 %v4923_v18 }
 0x2fc   :  { %4224 = vmatpush3.bf16.msra.mxu0 %v4924_v19 }
 0x2fd   :  { %4225 = vmatprep.subr.bf16.mxu0 %v4925_v20 }
 0x300   :  { %4226 = vmatpush3.bf16.msra.mxu0 %v4926_v34 }
 0x301   :  { %4227 = vmatprep.subr.bf16.mxu0 %v4927_v21 }
 0x304   :  { %4228 = vmatpush3.bf16.msra.mxu0 %v4928_v23 }
 0x305   :  { %4229 = vmatprep.subr.bf16.mxu0 %v4929_v24 }
 0x308   :  { %4230 = vmatpush3.bf16.msra.mxu0 %v4930_v25 }
 0x31c   :  { %v3002_v13 = vpop.f32.mrf.mxu1 }
 0x31d   :  { %v3003_v58 = vadd.f32 %v3002_v13, %v2960_v51 }
 0x31e   :  { %v3004_v55 = vpop.f32.mrf.mxu1 }
 0x31f   :  { %v3005_v57 = vadd.f32 %v3004_v55, %v2962_v50  ;;  %v3021_v2 = vmul.f32 0.01, %v3003_v58  ;;  %vm3013_vm0 = vcmp.gt.f32.partialorder %v3003_v58, 0.0 }
 0x320   :  { %v3006_v60 = vpop.f32.mrf.mxu1 }
 0x321   :  { %v3007_v62 = vadd.f32 %v3006_v60, %v2964_v56  ;;  %v3022_v0 = vmul.f32 0.01, %v3005_v57  ;;  %vm3014_vm15 = vcmp.gt.f32.partialorder %v3005_v57, 0.0  ;;  %v3029_v5 = vsel %vm3013_vm0, %v3003_v58, %v3021_v2  ;;  %v4189_v60 = vld [vmem:[%s5266_s8] ss:$0 sm:$0xff] }
 0x322   :  { %v3008_v63 = vpop.f32.mrf.mxu1 }
 0x323   :  { %vm3017_vm14 = vcmp.gt.f32.partialorder %v3007_v62, 0.0  ;;  %v3025_v1 = vmul.f32 0.01, %v3007_v62  ;;  %v3009_v59 = vadd.f32 %v3008_v63, %v2966_v61  ;;  %v3030_v3 = vsel %vm3014_vm15, %v3005_v57, %v3022_v0 }
 0x325   :  { %vm3018_vm1 = vcmp.gt.f32.partialorder %v3009_v59, 0.0  ;;  %v3026_v22 = vmul.f32 0.01, %v3009_v59  ;;  %v3033_v40 = vsel %vm3017_vm14, %v3007_v62, %v3025_v1 }
 0x326   :  { %v3037_v7 = vpack.c.bf16 %v3033_v40, %v3029_v5 }
 0x327   :  { %v3034_v4 = vsel %vm3018_vm1, %v3009_v59, %v3026_v22 }
 0x328   :  { %v3038_v6 = vpack.c.bf16 %v3034_v4, %v3030_v3 }
 0x32a   :  { %3510 = vmatprep.mubr.bf16.mxu1 %v3038_v6 }
 0x32b   :  { %3511 = vmatmul.mubr.bf16.vlgmr.msra.gmra.mxu1 %v3037_v7 }
 0x3ab   :  { %v3469_v27 = vpop.f32.mrf.mxu0 }
 0x3ac   :  { %v3470_v39 = vadd.f32 %v3469_v27, %v3108_v35 }
 0x3ad   :  { %v3471_v28 = vpop.f32.mrf.mxu0 }
 0x3ae   :  { %v3472_v38 = vadd.f32 %v3471_v28, %v3112_v33 }
 0x3af   :  { %v3473_v36 = vpop.f32.mrf.mxu0 }
 0x3b0   :  { %v3474_v43 = vadd.f32 %v3473_v36, %v3108_v35 }
 0x3b1   :  { %v3475_v41 = vpop.f32.mrf.mxu0 }
 0x3b2   :  { %v3476_v12 = vadd.f32 %v3475_v41, %v3112_v33 }
 0x3eb   :  { %v3512_v37 = vpop.f32.mrf.mxu1 }
 0x3ec   :  { %v3513_v45 = vadd.f32 %v3512_v37, %v3470_v39 }
 0x3ed   :  { %v3514_v42 = vpop.f32.mrf.mxu1 }
 0x3ee   :  { %v3515_v44 = vadd.f32 %v3514_v42, %v3472_v38  ;;  %v3525_v32 = vmul.f32 0.01, %v3513_v45  ;;  %vm3521_vm4 = vcmp.gt.f32.partialorder %v3513_v45, 0.0 }
 0x3ef   :  { %v3516_v46 = vpop.f32.mrf.mxu1 }
 0x3f0   :  { %v3517_v31 = vadd.f32 %v3516_v46, %v3474_v43  ;;  %v3526_v48 = vmul.f32 0.01, %v3515_v44  ;;  %vm3522_vm3 = vcmp.gt.f32.partialorder %v3515_v44, 0.0  ;;  %v3529_v50 = vsel %vm3521_vm4, %v3513_v45, %v3525_v32 }
 0x3f1   :  { %v3518_v26 = vpop.f32.mrf.mxu1 }
 0x3f2   :  { %vm3523_vm2 = vcmp.gt.f32.partialorder %v3517_v31, 0.0  ;;  %v3527_v49 = vmul.f32 0.01, %v3517_v31  ;;  %v3519_v53 = vadd.f32 %v3518_v26, %v3476_v12  ;;  %v3530_v54 = vsel %vm3522_vm3, %v3515_v44, %v3526_v48 }
 0x3f4   :  { %vm3524_vm5 = vcmp.gt.f32.partialorder %v3519_v53, 0.0  ;;  %v3528_v30 = vmul.f32 0.01, %v3519_v53  ;;  %v3531_v47 = vsel %vm3523_vm2, %v3517_v31, %v3527_v49 }
 0x3f5   :  { %v3533_v52 = vpack.c.bf16 %v3531_v47, %v3529_v50 }
 0x3f6   :  { %v3532_v13 = vsel %vm3524_vm5, %v3519_v53, %v3528_v30 }
 0x3f7   :  { %v3534_v51 = vpack.c.bf16 %v3532_v13, %v3530_v54 }
 0x3f9   :  { %3702 = vmatprep.mubr.bf16.mxu0 %v3534_v51 }
 0x3fa   :  { %3703 = vmatmul.mubr.bf16.vlgmr.msra.gmra.mxu0 %v3533_v52 }
 0x4ba   :  { %v4231_v55 = vpop.f32.mrf.mxu0 }
 0x4bc   :  { %v4232_v56 = vpop.f32.mrf.mxu0 }
 0x4bd   :  { %v4233_v58 = vadd.f32 %v4232_v56, %v4231_v55 }
 0x4be   :  { %v4234_v57 = vpop.f32.mrf.mxu0 }
 0x4bf   :  { %v3705_v63 = vadd.f32 %v4233_v58, %v4189_v60 }
 0x4c0   :  { %v4235_v61 = vpop.f32.mrf.mxu0 }
 0x4c1   :  { %v4236_v62 = vadd.f32 %v4235_v61, %v4234_v57 }
 0x4c3   :  { %v3708_v0 = vadd.f32 %v4236_v62, %v4189_v60 }
 0x4c5   :  { %v4213_v1 = vpack.c.bf16 %v3708_v0, %v3705_v63 }
 0x4c7   :  { %4214 = vst [vmem:[#allocation13] sm:$0xff] %v4213_v1  }
 0x4c8   :  { %5062 = shalt.err (!%p5059_p6)
}
 0x4c9   :  { %3732 = dma.vmem_to_hbm [thread:$0]  %s3727_s1, 128, %s5267_s9, [#allocation4], %s5087_s24, %s5087_s24, %s5093_s2  }
 0x4ca   :  { %5079 = dma.done.wait [#allocation4], 128  }
 0x4cb   :  { %5080 = vsyncadd [#allocation4], 4294967168 }
 0x4cc   :  { %3736 = vsyncpa [#allocation3], 1 }
 0x4cd   :  { %3737 = vsyncpa [#allocation6], 1 }
 0x4ce   :  { %3738 = vsyncpa [#allocation9], 1 }
 0x4cf   :  { %3739 = vsyncpa [#allocation12], 1 }
 0x4d0   :  { %3740 = vsyncpa [#allocation4], 1 }

</bundles_post_ra>
